<compile_context>
chip_gen: v7x
topology: tpu7x:2x2x1
jax: 0.10.0
libtpu: 0.0.40
codegen_flags: <defaults>
</compile_context>

<pallas_src>
import jax
import jax.numpy as jnp
from jax import lax
from jax.experimental import pallas as pl
from jax.experimental.pallas import tpu as pltpu

# ----------------------------- tiny synthetic config -----------------------------
B = 2                 # batch
C_IN = 3              # image channels
IMG = 16              # image height/width
PATCH = 8             # patch size
GRID_HW = IMG // PATCH          # 2
N_PATCH = GRID_HW * GRID_HW     # 4
SEQ = N_PATCH + 1               # 5 valid tokens (cls + patches)
SEQ_PAD = 8                     # sublane-aligned tokens per image
TOK = B * SEQ_PAD               # 16 tokens total (B folded into token axis)
D = 128               # vision hidden size (lane-dense; stands in for 768/1024)
HEADS = 4
HEAD_DIM = D // HEADS           # 32
MLP = 4 * D
LAYERS = 2
PROJ = 128            # CLIP visual projection dim
CLIP_DIM = 128        # config.clip_dim
T5_DIM = 128          # config.t5_dim
EPS = 1e-5
NEG_INF = -1e30


# ----------------------------- in-kernel math helpers -----------------------------
def _ln(x, g, b):
    # PyTorch nn.LayerNorm semantics (biased variance) over the last dim.
    mu = jnp.mean(x, axis=-1, keepdims=True)
    var = jnp.mean(jnp.square(x - mu), axis=-1, keepdims=True)
    return (x - mu) * lax.rsqrt(var + EPS) * g + b


def _gelu_tanh(x):
    # nn.GELU (tanh approximation) -- tanh runs on the EUP, off the VALU path.
    # TODO(synk): exact erf-GELU if bit-matching PyTorch nn.GELU is required.
    c = 0.7978845608028654  # sqrt(2/pi)
    return 0.5 * x * (1.0 + jnp.tanh(c * (x + 0.044715 * x * x * x)))


def _quick_gelu(x):
    # HF CLIP vision MLP activation.
    return x * jax.nn.sigmoid(1.702 * x)


def _softmax_rows(s):
    s = s - jnp.max(s, axis=-1, keepdims=True)
    p = jnp.exp(s)
    return p * pl.reciprocal(jnp.sum(p, axis=-1, keepdims=True), approx=True)


def _proj_head_math(x, g, b, w1, b1, w2, b2):
    # Sequential(LayerNorm, Linear, GELU, Linear)
    h = _ln(x, g, b)
    h = jnp.dot(h, w1, preferred_element_type=jnp.float32) + b1
    h = _gelu_tanh(h)
    return jnp.dot(h, w2, preferred_element_type=jnp.float32) + b2


# ----------------------------- the fused kernel -----------------------------
def _metaclip_kernel(
    # embedding inputs (constant across grid)
    patches_ref, w_patch_ref, cls_ref, pos_ref, kmask_ref, pre_g_ref, pre_b_ref,
    # per-layer stacks (leading LAYERS axis, block index = grid index)
    ln1_g_ref, ln1_b_ref, wqkv_ref, bqkv_ref, wo_ref, bo_ref,
    ln2_g_ref, ln2_b_ref, w1_ref, b1_ref, w2_ref, b2_ref,
    # tail weights (constant across grid)
    post_g_ref, post_b_ref, w_vis_ref,
    cg_ref, cb_ref, cw1_ref, cb1_ref, cw2_ref, cb2_ref,
    tg_ref, tb_ref, tw1_ref, tb1_ref, tw2_ref, tb2_ref,
    # outputs
    cls_out_ref, clip_out_ref, t5_out_ref,
    # scratch: activations resident in VMEM across layers
    h_scr,
):
    layer = pl.program_id(0)

    # ---- layer 0: patch embedding (conv as matmul, bias=False) + cls/pos + pre-LN ----
    @pl.when(layer == 0)
    def _embed():
        pe = jnp.dot(patches_ref[...], w_patch_ref[...],
                     preferred_element_type=jnp.float32)           # (B*N_PATCH, D)
        pad = jnp.zeros((SEQ_PAD - SEQ, D), jnp.float32)
        parts = []
        for b in range(B):
            parts.append(cls_ref[...])                             # (1, D) class embedding
            parts.append(pe[b * N_PATCH:(b + 1) * N_PATCH, :])     # (N_PATCH, D)
            parts.append(pad)                                      # sublane padding rows
        h0 = jnp.concatenate(parts, axis=0)                        # (TOK, D)
        pos = jnp.concatenate([pos_ref[...]] * B, axis=0)          # (TOK, D), pre-padded
        h_scr[...] = _ln(h0 + pos, pre_g_ref[...], pre_b_ref[...])  # pre_layrnorm

    # ---- encoder layer `layer` (pre-norm CLIP layer) ----
    x = h_scr[...]                                                 # (TOK, D)

    # self-attention block (fused qkv, padded keys masked out)
    hn = _ln(x, ln1_g_ref[0], ln1_b_ref[0])
    qkv = jnp.dot(hn, wqkv_ref[0], preferred_element_type=jnp.float32) + bqkv_ref[0]
    q = qkv[:, :D] * (HEAD_DIM ** -0.5)
    k = qkv[:, D:2 * D]
    v = qkv[:, 2 * D:]
    key_bias = kmask_ref[...]                                      # (1, SEQ_PAD): 0 / -1e30

    ctx_rows = []
    for b in range(B):                 # static tiny loops: B=2, HEADS=4
        r = slice(b * SEQ_PAD, (b + 1) * SEQ_PAD)
        qb, kb, vb = q[r, :], k[r, :], v[r, :]
        heads = []
        for hh in range(HEADS):
            c = slice(hh * HEAD_DIM, (hh + 1) * HEAD_DIM)
            s = lax.dot_general(qb[:, c], kb[:, c], (((1,), (1,)), ((), ())),
                                preferred_element_type=jnp.float32)   # (SEQ_PAD, SEQ_PAD)
            p = _softmax_rows(s + key_bias)
            heads.append(jnp.dot(p, vb[:, c], preferred_element_type=jnp.float32))
        ctx_rows.append(jnp.concatenate(heads, axis=-1))              # (SEQ_PAD, D)
    ctx = jnp.concatenate(ctx_rows, axis=0)                           # (TOK, D)
    x = x + jnp.dot(ctx, wo_ref[0], preferred_element_type=jnp.float32) + bo_ref[0]

    # MLP block (quick_gelu, as in HF CLIP vision)
    hn = _ln(x, ln2_g_ref[0], ln2_b_ref[0])
    hn = jnp.dot(hn, w1_ref[0], preferred_element_type=jnp.float32) + b1_ref[0]
    hn = _quick_gelu(hn)
    x = x + jnp.dot(hn, w2_ref[0], preferred_element_type=jnp.float32) + b2_ref[0]
    h_scr[...] = x

    # ---- tail: post-LN pooler -> visual_projection -> both projection heads ----
    @pl.when(layer == pl.num_programs(0) - 1)
    def _tail():
        pooled = jnp.concatenate(
            [x[b * SEQ_PAD:b * SEQ_PAD + 1, :] for b in range(B)], axis=0)  # (B, D) cls
        pooled = _ln(pooled, post_g_ref[...], post_b_ref[...])        # post_layernorm
        class_tok = jnp.dot(pooled, w_vis_ref[...],
                            preferred_element_type=jnp.float32)       # (B, PROJ), bias=False
        cls_out_ref[...] = class_tok
        clip_out_ref[...] = _proj_head_math(class_tok, cg_ref[...], cb_ref[...],
                                            cw1_ref[...], cb1_ref[...],
                                            cw2_ref[...], cb2_ref[...])
        t5_out_ref[...] = _proj_head_math(class_tok, tg_ref[...], tb_ref[...],
                                          tw1_ref[...], tb1_ref[...],
                                          tw2_ref[...], tb2_ref[...])


# ----------------------------- BlockSpec helpers -----------------------------
def _const_spec(shape):
    n = len(shape)
    return pl.BlockSpec(tuple(shape), lambda l, _n=n: (0,) * _n)


def _stacked_spec(shape):
    # leading LAYERS axis -> block index follows the grid (pipelined weight DMA)
    n = len(shape)
    return pl.BlockSpec((1,) + tuple(shape[1:]), lambda l, _n=n: (l,) + (0,) * (_n - 1))


# ----------------------------- forward wrapper -----------------------------
def metaclip_forward(images, params):
    # patch-embedding conv (stride == kernel == PATCH, bias=False) as unfold + in-kernel matmul
    x = images.reshape(B, C_IN, GRID_HW, PATCH, GRID_HW, PATCH)
    patches = x.transpose(0, 2, 4, 1, 3, 5).reshape(B * N_PATCH, C_IN * PATCH * PATCH)

    # pad positional embedding to the sublane-aligned token count (zeros on pad rows)
    pos_pad = jnp.pad(params["pos_emb"], ((0, SEQ_PAD - SEQ), (0, 0)))
    # additive attention bias over key positions: 0 for valid, -1e30 for padded
    kmask = jnp.where(jnp.arange(SEQ_PAD) < SEQ, 0.0, NEG_INF).reshape(1, SEQ_PAD)
    kmask = kmask.astype(jnp.float32)

    const_in = [patches, params["w_patch"], params["class_emb"], pos_pad, kmask,
                params["pre_ln_g"], params["pre_ln_b"]]
    layer_in = [params["ln1_g"], params["ln1_b"], params["wqkv"], params["bqkv"],
                params["wo"], params["bo"], params["ln2_g"], params["ln2_b"],
                params["w1"], params["b1"], params["w2"], params["b2"]]
    tail_in = [params["post_ln_g"], params["post_ln_b"], params["w_visual_proj"],
               params["clip_ln_g"], params["clip_ln_b"], params["clip_w1"],
               params["clip_b1"], params["clip_w2"], params["clip_b2"],
               params["t5_ln_g"], params["t5_ln_b"], params["t5_w1"],
               params["t5_b1"], params["t5_w2"], params["t5_b2"]]

    in_specs = ([_const_spec(a.shape) for a in const_in]
                + [_stacked_spec(a.shape) for a in layer_in]
                + [_const_spec(a.shape) for a in tail_in])

    out_shape = (jax.ShapeDtypeStruct((B, PROJ), jnp.float32),
                 jax.ShapeDtypeStruct((B, CLIP_DIM), jnp.float32),
                 jax.ShapeDtypeStruct((B, T5_DIM), jnp.float32))
    out_specs = (_const_spec((B, PROJ)),
                 _const_spec((B, CLIP_DIM)),
                 _const_spec((B, T5_DIM)))

    class_token, projection_clip, proj_t5 = pl.pallas_call(
        _metaclip_kernel,
        out_shape=out_shape,
        grid=(LAYERS,),
        in_specs=in_specs,
        out_specs=out_specs,
        scratch_shapes=[pltpu.VMEM((TOK, D), jnp.float32)],
        compiler_params=pltpu.CompilerParams(dimension_semantics=("arbitrary",)),
    )(*const_in, *layer_in, *tail_in)

    # repeat 'b d -> b l d' with l = 1 (pure metadata reshape outside the kernel)
    projection_t5 = proj_t5.reshape(B, 1, T5_DIM)
    return class_token, projection_clip, projection_t5


# ----------------------------- synthetic parameters -----------------------------
def init_params():
    keys = iter(jax.random.split(jax.random.PRNGKey(0), 64))

    def nrm(shape, scale=0.02):
        return scale * jax.random.normal(next(keys), shape, dtype=jnp.float32)

    return {
        # embeddings
        "w_patch": nrm((C_IN * PATCH * PATCH, D)),       # conv weight (bias=False) as matmul
        "class_emb": nrm((1, D)),
        "pos_emb": nrm((SEQ, D)),
        "pre_ln_g": jnp.ones((1, D), jnp.float32),
        "pre_ln_b": jnp.zeros((1, D), jnp.float32),
        # encoder layers, stacked on a leading LAYERS axis
        "ln1_g": jnp.ones((LAYERS, 1, D), jnp.float32),
        "ln1_b": jnp.zeros((LAYERS, 1, D), jnp.float32),
        "wqkv": nrm((LAYERS, D, 3 * D)),                 # fused Wq|Wk|Wv
        "bqkv": nrm((LAYERS, 1, 3 * D)),
        "wo": nrm((LAYERS, D, D)),
        "bo": nrm((LAYERS, 1, D)),
        "ln2_g": jnp.ones((LAYERS, 1, D), jnp.float32),
        "ln2_b": jnp.zeros((LAYERS, 1, D), jnp.float32),
        "w1": nrm((LAYERS, D, MLP)),
        "b1": nrm((LAYERS, 1, MLP)),
        "w2": nrm((LAYERS, MLP, D)),
        "b2": nrm((LAYERS, 1, D)),
        # pooler post-LN and visual projection (bias=False)
        "post_ln_g": jnp.ones((1, D), jnp.float32),
        "post_ln_b": jnp.zeros((1, D), jnp.float32),
        "w_visual_proj": nrm((D, PROJ)),
        # project_clip head
        "clip_ln_g": jnp.ones((1, PROJ), jnp.float32),
        "clip_ln_b": jnp.zeros((1, PROJ), jnp.float32),
        "clip_w1": nrm((PROJ, CLIP_DIM)),
        "clip_b1": nrm((1, CLIP_DIM)),
        "clip_w2": nrm((CLIP_DIM, CLIP_DIM)),
        "clip_b2": nrm((1, CLIP_DIM)),
        # project_t5 head
        "t5_ln_g": jnp.ones((1, PROJ), jnp.float32),
        "t5_ln_b": jnp.zeros((1, PROJ), jnp.float32),
        "t5_w1": nrm((PROJ, T5_DIM)),
        "t5_b1": nrm((1, T5_DIM)),
        "t5_w2": nrm((T5_DIM, T5_DIM)),
        "t5_b2": nrm((1, T5_DIM)),
    }


# ----------------------------- main -----------------------------
if __name__ == "__main__":
    params = init_params()
    images = jax.random.normal(jax.random.PRNGKey(0), (B, C_IN, IMG, IMG),
                               dtype=jnp.float32)   # NCHW, like the PyTorch module

    fwd = jax.jit(metaclip_forward)
    class_token, projection_clip, projection_t5 = fwd(images, params)
    jax.block_until_ready((class_token, projection_clip, projection_t5))

    assert class_token.shape == (B, PROJ)
    assert projection_clip.shape == (B, CLIP_DIM)
    assert projection_t5.shape == (B, 1, T5_DIM)
    assert bool(jnp.all(jnp.isfinite(class_token)))
    assert bool(jnp.all(jnp.isfinite(projection_clip)))
    assert bool(jnp.all(jnp.isfinite(projection_t5)))
    print("KERNEL_OK")
</pallas_src>

<mosaic_0001>
module attributes {stable_mosaic.version = 11 : i64} {
  func.func @_metaclip_kernel(%arg0: i32, %arg1: memref<8x192xf32, #tpu.memory_space<vmem>>, %arg2: memref<192x128xf32, #tpu.memory_space<vmem>>, %arg3: memref<1x128xf32, #tpu.memory_space<vmem>>, %arg4: memref<8x128xf32, #tpu.memory_space<vmem>>, %arg5: memref<1x8xf32, #tpu.memory_space<vmem>>, %arg6: memref<1x128xf32, #tpu.memory_space<vmem>>, %arg7: memref<1x128xf32, #tpu.memory_space<vmem>>, %arg8: memref<1x1x128xf32, #tpu.memory_space<vmem>>, %arg9: memref<1x1x128xf32, #tpu.memory_space<vmem>>, %arg10: memref<1x128x384xf32, #tpu.memory_space<vmem>>, %arg11: memref<1x1x384xf32, #tpu.memory_space<vmem>>, %arg12: memref<1x128x128xf32, #tpu.memory_space<vmem>>, %arg13: memref<1x1x128xf32, #tpu.memory_space<vmem>>, %arg14: memref<1x1x128xf32, #tpu.memory_space<vmem>>, %arg15: memref<1x1x128xf32, #tpu.memory_space<vmem>>, %arg16: memref<1x128x512xf32, #tpu.memory_space<vmem>>, %arg17: memref<1x1x512xf32, #tpu.memory_space<vmem>>, %arg18: memref<1x512x128xf32, #tpu.memory_space<vmem>>, %arg19: memref<1x1x128xf32, #tpu.memory_space<vmem>>, %arg20: memref<1x128xf32, #tpu.memory_space<vmem>>, %arg21: memref<1x128xf32, #tpu.memory_space<vmem>>, %arg22: memref<128x128xf32, #tpu.memory_space<vmem>>, %arg23: memref<1x128xf32, #tpu.memory_space<vmem>>, %arg24: memref<1x128xf32, #tpu.memory_space<vmem>>, %arg25: memref<128x128xf32, #tpu.memory_space<vmem>>, %arg26: memref<1x128xf32, #tpu.memory_space<vmem>>, %arg27: memref<128x128xf32, #tpu.memory_space<vmem>>, %arg28: memref<1x128xf32, #tpu.memory_space<vmem>>, %arg29: memref<1x128xf32, #tpu.memory_space<vmem>>, %arg30: memref<1x128xf32, #tpu.memory_space<vmem>>, %arg31: memref<128x128xf32, #tpu.memory_space<vmem>>, %arg32: memref<1x128xf32, #tpu.memory_space<vmem>>, %arg33: memref<128x128xf32, #tpu.memory_space<vmem>>, %arg34: memref<1x128xf32, #tpu.memory_space<vmem>>, %arg35: memref<2x128xf32, #tpu.memory_space<vmem>>, %arg36: memref<2x128xf32, #tpu.memory_space<vmem>>, %arg37: memref<2x128xf32, #tpu.memory_space<vmem>>, %arg38: memref<16x128xf32, #tpu.memory_space<vmem>>) attributes {dimension_semantics = [#tpu.dimension_semantics<arbitrary>], iteration_bounds = array<i64: 2>, scalar_prefetch = 0 : i64, scratch_operands = 1 : i64, tpu.core_type = #tpu.core_type<tc>, window_params = [{pipeline_mode = #tpu.pipeline_mode<synchronous>, transform_indices = @transform_0, window_bounds = array<i64: 8, 192>}, {pipeline_mode = #tpu.pipeline_mode<synchronous>, transform_indices = @transform_1, window_bounds = array<i64: 192, 128>}, {pipeline_mode = #tpu.pipeline_mode<synchronous>, transform_indices = @transform_2, window_bounds = array<i64: 1, 128>}, {pipeline_mode = #tpu.pipeline_mode<synchronous>, transform_indices = @transform_3, window_bounds = array<i64: 8, 128>}, {pipeline_mode = #tpu.pipeline_mode<synchronous>, transform_indices = @transform_4, window_bounds = array<i64: 1, 8>}, {pipeline_mode = #tpu.pipeline_mode<synchronous>, transform_indices = @transform_5, window_bounds = array<i64: 1, 128>}, {pipeline_mode = #tpu.pipeline_mode<synchronous>, transform_indices = @transform_6, window_bounds = array<i64: 1, 128>}, {transform_indices = @transform_7, window_bounds = array<i64: 1, 1, 128>}, {transform_indices = @transform_8, window_bounds = array<i64: 1, 1, 128>}, {transform_indices = @transform_9, window_bounds = array<i64: 1, 128, 384>}, {transform_indices = @transform_10, window_bounds = array<i64: 1, 1, 384>}, {transform_indices = @transform_11, window_bounds = array<i64: 1, 128, 128>}, {transform_indices = @transform_12, window_bounds = array<i64: 1, 1, 128>}, {transform_indices = @transform_13, window_bounds = array<i64: 1, 1, 128>}, {transform_indices = @transform_14, window_bounds = array<i64: 1, 1, 128>}, {transform_indices = @transform_15, window_bounds = array<i64: 1, 128, 512>}, {transform_indices = @transform_16, window_bounds = array<i64: 1, 1, 512>}, {transform_indices = @transform_17, window_bounds = array<i64: 1, 512, 128>}, {transform_indices = @transform_18, window_bounds = array<i64: 1, 1, 128>}, {pipeline_mode = #tpu.pipeline_mode<synchronous>, transform_indices = @transform_19, window_bounds = array<i64: 1, 128>}, {pipeline_mode = #tpu.pipeline_mode<synchronous>, transform_indices = @transform_20, window_bounds = array<i64: 1, 128>}, {pipeline_mode = #tpu.pipeline_mode<synchronous>, transform_indices = @transform_21, window_bounds = array<i64: 128, 128>}, {pipeline_mode = #tpu.pipeline_mode<synchronous>, transform_indices = @transform_22, window_bounds = array<i64: 1, 128>}, {pipeline_mode = #tpu.pipeline_mode<synchronous>, transform_indices = @transform_23, window_bounds = array<i64: 1, 128>}, {pipeline_mode = #tpu.pipeline_mode<synchronous>, transform_indices = @transform_24, window_bounds = array<i64: 128, 128>}, {pipeline_mode = #tpu.pipeline_mode<synchronous>, transform_indices = @transform_25, window_bounds = array<i64: 1, 128>}, {pipeline_mode = #tpu.pipeline_mode<synchronous>, transform_indices = @transform_26, window_bounds = array<i64: 128, 128>}, {pipeline_mode = #tpu.pipeline_mode<synchronous>, transform_indices = @transform_27, window_bounds = array<i64: 1, 128>}, {pipeline_mode = #tpu.pipeline_mode<synchronous>, transform_indices = @transform_28, window_bounds = array<i64: 1, 128>}, {pipeline_mode = #tpu.pipeline_mode<synchronous>, transform_indices = @transform_29, window_bounds = array<i64: 1, 128>}, {pipeline_mode = #tpu.pipeline_mode<synchronous>, transform_indices = @transform_30, window_bounds = array<i64: 128, 128>}, {pipeline_mode = #tpu.pipeline_mode<synchronous>, transform_indices = @transform_31, window_bounds = array<i64: 1, 128>}, {pipeline_mode = #tpu.pipeline_mode<synchronous>, transform_indices = @transform_32, window_bounds = array<i64: 128, 128>}, {pipeline_mode = #tpu.pipeline_mode<synchronous>, transform_indices = @transform_33, window_bounds = array<i64: 1, 128>}, {pipeline_mode = #tpu.pipeline_mode<synchronous>, transform_indices = @transform_34, window_bounds = array<i64: 2, 128>}, {pipeline_mode = #tpu.pipeline_mode<synchronous>, transform_indices = @transform_35, window_bounds = array<i64: 2, 128>}, {pipeline_mode = #tpu.pipeline_mode<synchronous>, transform_indices = @transform_36, window_bounds = array<i64: 2, 128>}]} {
    %c0_i32 = arith.constant 0 : i32
    %0 = arith.cmpi eq, %arg0, %c0_i32 : i32
    %1 = arith.extui %0 : i1 to i32
    %c0_i32_0 = arith.constant 0 : i32
    %2 = arith.cmpi ne, %1, %c0_i32_0 : i32
    scf.if %2 {
      %c0_91 = arith.constant 0 : index
      %c0_92 = arith.constant 0 : index
      %249 = vector.load %arg1[%c0_91, %c0_92] : memref<8x192xf32, #tpu.memory_space<vmem>>, vector<8x192xf32>
      %c0_93 = arith.constant 0 : index
      %c0_94 = arith.constant 0 : index
      %250 = vector.load %arg2[%c0_93, %c0_94] : memref<192x128xf32, #tpu.memory_space<vmem>>, vector<192x128xf32>
      %cst_95 = arith.constant dense<0.000000e+00> : vector<8x128xf32>
      %251 = tpu.matmul %249, %250, %cst_95 {dimension_numbers = #tpu.dot_dimension_numbers<[1], [0], [0], [1], [0, 0, 1, 1], [], []>} : vector<8x192xf32>, vector<192x128xf32>, vector<8x128xf32> -> vector<8x128xf32>
      %cst_96 = arith.constant 0.000000e+00 : f32
      %252 = vector.broadcast %cst_96 : f32 to vector<3x128xf32>
      %c0_97 = arith.constant 0 : index
      %c0_98 = arith.constant 0 : index
      %253 = vector.load %arg3[%c0_97, %c0_98] : memref<1x128xf32, #tpu.memory_space<vmem>>, vector<1x128xf32>
      %254 = vector.extract_strided_slice %251 {offsets = [0, 0], sizes = [4, 128], strides = [1, 1]} : vector<8x128xf32> to vector<4x128xf32>
      %c0_99 = arith.constant 0 : index
      %c0_100 = arith.constant 0 : index
      %255 = vector.load %arg3[%c0_99, %c0_100] : memref<1x128xf32, #tpu.memory_space<vmem>>, vector<1x128xf32>
      %256 = vector.extract_strided_slice %251 {offsets = [4, 0], sizes = [4, 128], strides = [1, 1]} : vector<8x128xf32> to vector<4x128xf32>
      %257 = tpu.concatenate %253, %254, %252, %255, %256, %252 in 0 : vector<1x128xf32>, vector<4x128xf32>, vector<3x128xf32>, vector<1x128xf32>, vector<4x128xf32>, vector<3x128xf32> -> vector<16x128xf32>
      %c0_101 = arith.constant 0 : index
      %c0_102 = arith.constant 0 : index
      %258 = vector.load %arg4[%c0_101, %c0_102] : memref<8x128xf32, #tpu.memory_space<vmem>>, vector<8x128xf32>
      %259 = tpu.concatenate %258, %258 in 0 : vector<8x128xf32>, vector<8x128xf32> -> vector<16x128xf32>
      %260 = arith.addf %257, %259 : vector<16x128xf32>
      %c0_103 = arith.constant 0 : index
      %c0_104 = arith.constant 0 : index
      %261 = vector.load %arg6[%c0_103, %c0_104] : memref<1x128xf32, #tpu.memory_space<vmem>>, vector<1x128xf32>
      %c0_105 = arith.constant 0 : index
      %c0_106 = arith.constant 0 : index
      %262 = vector.load %arg7[%c0_105, %c0_106] : memref<1x128xf32, #tpu.memory_space<vmem>>, vector<1x128xf32>
      %cst_107 = arith.constant dense<0.000000e+00> : vector<16xf32>
      %263 = vector.multi_reduction <add>, %260, %cst_107 [1] : vector<16x128xf32> to vector<16xf32>
      %264 = vector.shape_cast %263 : vector<16xf32> to vector<16x1xf32>
      %cst_108 = arith.constant 1.280000e+02 : f32
      %265 = vector.broadcast %cst_108 : f32 to vector<16x1xf32>
      %266 = arith.divf %264, %265 : vector<16x1xf32>
      %267 = vector.broadcast %266 : vector<16x1xf32> to vector<16x128xf32>
      %268 = arith.subf %260, %267 : vector<16x128xf32>
      %269 = arith.mulf %268, %268 : vector<16x128xf32>
      %cst_109 = arith.constant dense<0.000000e+00> : vector<16xf32>
      %270 = vector.multi_reduction <add>, %269, %cst_109 [1] : vector<16x128xf32> to vector<16xf32>
      %271 = vector.shape_cast %270 : vector<16xf32> to vector<16x1xf32>
      %cst_110 = arith.constant 1.280000e+02 : f32
      %272 = vector.broadcast %cst_110 : f32 to vector<16x1xf32>
      %273 = arith.divf %271, %272 : vector<16x1xf32>
      %274 = vector.broadcast %266 : vector<16x1xf32> to vector<16x128xf32>
      %275 = arith.subf %260, %274 : vector<16x128xf32>
      %cst_111 = arith.constant 9.99999974E-6 : f32
      %276 = vector.broadcast %cst_111 : f32 to vector<16x1xf32>
      %277 = arith.addf %273, %276 : vector<16x1xf32>
      %278 = math.rsqrt %277 : vector<16x1xf32>
      %279 = vector.broadcast %278 : vector<16x1xf32> to vector<16x128xf32>
      %280 = arith.mulf %275, %279 : vector<16x128xf32>
      %281 = vector.broadcast %261 : vector<1x128xf32> to vector<16x128xf32>
      %282 = arith.mulf %280, %281 : vector<16x128xf32>
      %283 = vector.broadcast %262 : vector<1x128xf32> to vector<16x128xf32>
      %284 = arith.addf %282, %283 : vector<16x128xf32>
      %c0_112 = arith.constant 0 : index
      %c0_113 = arith.constant 0 : index
      %285 = vector.load %arg38[%c0_112, %c0_113] : memref<16x128xf32, #tpu.memory_space<vmem>>, vector<16x128xf32>
      tpu.vector_store %arg38[%c0_112, %c0_113], %284 {strides = array<i32>} : memref<16x128xf32, #tpu.memory_space<vmem>>, vector<16x128xf32>,
    } else {
    }
    %c0 = arith.constant 0 : index
    %c0_1 = arith.constant 0 : index
    %3 = vector.load %arg38[%c0, %c0_1] : memref<16x128xf32, #tpu.memory_space<vmem>>, vector<16x128xf32>
    %c0_2 = arith.constant 0 : index
    %c0_3 = arith.constant 0 : index
    %c0_4 = arith.constant 0 : index
    %4 = vector.load %arg8[%c0_2, %c0_3, %c0_4] : memref<1x1x128xf32, #tpu.memory_space<vmem>>, vector<1x1x128xf32>
    %5 = vector.shape_cast %4 : vector<1x1x128xf32> to vector<1x128xf32>
    %c0_5 = arith.constant 0 : index
    %c0_6 = arith.constant 0 : index
    %c0_7 = arith.constant 0 : index
    %6 = vector.load %arg9[%c0_5, %c0_6, %c0_7] : memref<1x1x128xf32, #tpu.memory_space<vmem>>, vector<1x1x128xf32>
    %7 = vector.shape_cast %6 : vector<1x1x128xf32> to vector<1x128xf32>
    %cst = arith.constant dense<0.000000e+00> : vector<16xf32>
    %8 = vector.multi_reduction <add>, %3, %cst [1] : vector<16x128xf32> to vector<16xf32>
    %9 = vector.shape_cast %8 : vector<16xf32> to vector<16x1xf32>
    %cst_8 = arith.constant 1.280000e+02 : f32
    %10 = vector.broadcast %cst_8 : f32 to vector<16x1xf32>
    %11 = arith.divf %9, %10 : vector<16x1xf32>
    %12 = vector.broadcast %11 : vector<16x1xf32> to vector<16x128xf32>
    %13 = arith.subf %3, %12 : vector<16x128xf32>
    %14 = arith.mulf %13, %13 : vector<16x128xf32>
    %cst_9 = arith.constant dense<0.000000e+00> : vector<16xf32>
    %15 = vector.multi_reduction <add>, %14, %cst_9 [1] : vector<16x128xf32> to vector<16xf32>
    %16 = vector.shape_cast %15 : vector<16xf32> to vector<16x1xf32>
    %cst_10 = arith.constant 1.280000e+02 : f32
    %17 = vector.broadcast %cst_10 : f32 to vector<16x1xf32>
    %18 = arith.divf %16, %17 : vector<16x1xf32>
    %19 = vector.broadcast %11 : vector<16x1xf32> to vector<16x128xf32>
    %20 = arith.subf %3, %19 : vector<16x128xf32>
    %cst_11 = arith.constant 9.99999974E-6 : f32
    %21 = vector.broadcast %cst_11 : f32 to vector<16x1xf32>
    %22 = arith.addf %18, %21 : vector<16x1xf32>
    %23 = math.rsqrt %22 : vector<16x1xf32>
    %24 = vector.broadcast %23 : vector<16x1xf32> to vector<16x128xf32>
    %25 = arith.mulf %20, %24 : vector<16x128xf32>
    %26 = vector.broadcast %5 : vector<1x128xf32> to vector<16x128xf32>
    %27 = arith.mulf %25, %26 : vector<16x128xf32>
    %28 = vector.broadcast %7 : vector<1x128xf32> to vector<16x128xf32>
    %29 = arith.addf %27, %28 : vector<16x128xf32>
    %c0_12 = arith.constant 0 : index
    %c0_13 = arith.constant 0 : index
    %c0_14 = arith.constant 0 : index
    %30 = vector.load %arg10[%c0_12, %c0_13, %c0_14] : memref<1x128x384xf32, #tpu.memory_space<vmem>>, vector<1x128x384xf32>
    %31 = vector.shape_cast %30 : vector<1x128x384xf32> to vector<128x384xf32>
    %cst_15 = arith.constant dense<0.000000e+00> : vector<16x384xf32>
    %32 = tpu.matmul %29, %31, %cst_15 {dimension_numbers = #tpu.dot_dimension_numbers<[1], [0], [0], [1], [0, 0, 1, 1], [], []>} : vector<16x128xf32>, vector<128x384xf32>, vector<16x384xf32> -> vector<16x384xf32>
    %c0_16 = arith.constant 0 : index
    %c0_17 = arith.constant 0 : index
    %c0_18 = arith.constant 0 : index
    %33 = vector.load %arg11[%c0_16, %c0_17, %c0_18] : memref<1x1x384xf32, #tpu.memory_space<vmem>>, vector<1x1x384xf32>
    %34 = vector.shape_cast %33 : vector<1x1x384xf32> to vector<1x384xf32>
    %35 = vector.broadcast %34 : vector<1x384xf32> to vector<16x384xf32>
    %36 = arith.addf %32, %35 : vector<16x384xf32>
    %37 = vector.extract_strided_slice %36 {offsets = [0, 0], sizes = [16, 128], strides = [1, 1]} : vector<16x384xf32> to vector<16x128xf32>
    %cst_19 = arith.constant 0.176776692 : f32
    %38 = vector.broadcast %cst_19 : f32 to vector<16x128xf32>
    %39 = arith.mulf %37, %38 : vector<16x128xf32>
    %40 = vector.extract_strided_slice %36 {offsets = [0, 128], sizes = [16, 128], strides = [1, 1]} : vector<16x384xf32> to vector<16x128xf32>
    %41 = vector.extract_strided_slice %36 {offsets = [0, 256], sizes = [16, 128], strides = [1, 1]} : vector<16x384xf32> to vector<16x128xf32>
    %c0_20 = arith.constant 0 : index
    %c0_21 = arith.constant 0 : index
    %42 = vector.load %arg5[%c0_20, %c0_21] : memref<1x8xf32, #tpu.memory_space<vmem>>, vector<1x8xf32>
    %43 = vector.extract_strided_slice %39 {offsets = [0, 0], sizes = [8, 128], strides = [1, 1]} : vector<16x128xf32> to vector<8x128xf32>
    %44 = vector.extract_strided_slice %40 {offsets = [0, 0], sizes = [8, 128], strides = [1, 1]} : vector<16x128xf32> to vector<8x128xf32>
    %45 = vector.extract_strided_slice %41 {offsets = [0, 0], sizes = [8, 128], strides = [1, 1]} : vector<16x128xf32> to vector<8x128xf32>
    %46 = vector.extract_strided_slice %43 {offsets = [0, 0], sizes = [8, 32], strides = [1, 1]} : vector<8x128xf32> to vector<8x32xf32>
    %47 = vector.extract_strided_slice %44 {offsets = [0, 0], sizes = [8, 32], strides = [1, 1]} : vector<8x128xf32> to vector<8x32xf32>
    %cst_22 = arith.constant dense<0.000000e+00> : vector<8x8xf32>
    %48 = tpu.matmul %46, %47, %cst_22 {dimension_numbers = #tpu.dot_dimension_numbers<[1], [1], [0], [0], [0, 0, 1, 0], [], []>} : vector<8x32xf32>, vector<8x32xf32>, vector<8x8xf32> -> vector<8x8xf32>
    %49 = vector.broadcast %42 : vector<1x8xf32> to vector<8x8xf32>
    %50 = arith.addf %48, %49 : vector<8x8xf32>
    %cst_23 = arith.constant dense<0xFF800000> : vector<8xf32>
    %51 = vector.multi_reduction <maximumf>, %50, %cst_23 [1] : vector<8x8xf32> to vector<8xf32>
    %52 = vector.shape_cast %51 : vector<8xf32> to vector<8x1xf32>
    %53 = vector.broadcast %52 : vector<8x1xf32> to vector<8x8xf32>
    %54 = arith.subf %50, %53 : vector<8x8xf32>
    %55 = math.exp %54 : vector<8x8xf32>
    %cst_24 = arith.constant dense<0.000000e+00> : vector<8xf32>
    %56 = vector.multi_reduction <add>, %55, %cst_24 [1] : vector<8x8xf32> to vector<8xf32>
    %57 = vector.shape_cast %56 : vector<8xf32> to vector<8x1xf32>
    %58 = tpu.reciprocal %57 {approx = true} : vector<8x1xf32> -> vector<8x1xf32>
    %59 = vector.broadcast %58 : vector<8x1xf32> to vector<8x8xf32>
    %60 = arith.mulf %55, %59 : vector<8x8xf32>
    %61 = vector.extract_strided_slice %45 {offsets = [0, 0], sizes = [8, 32], strides = [1, 1]} : vector<8x128xf32> to vector<8x32xf32>
    %cst_25 = arith.constant dense<0.000000e+00> : vector<8x32xf32>
    %62 = tpu.matmul %60, %61, %cst_25 {dimension_numbers = #tpu.dot_dimension_numbers<[1], [0], [0], [1], [0, 0, 1, 1], [], []>} : vector<8x8xf32>, vector<8x32xf32>, vector<8x32xf32> -> vector<8x32xf32>
    %63 = vector.extract_strided_slice %43 {offsets = [0, 32], sizes = [8, 32], strides = [1, 1]} : vector<8x128xf32> to vector<8x32xf32>
    %64 = vector.extract_strided_slice %44 {offsets = [0, 32], sizes = [8, 32], strides = [1, 1]} : vector<8x128xf32> to vector<8x32xf32>
    %cst_26 = arith.constant dense<0.000000e+00> : vector<8x8xf32>
    %65 = tpu.matmul %63, %64, %cst_26 {dimension_numbers = #tpu.dot_dimension_numbers<[1], [1], [0], [0], [0, 0, 1, 0], [], []>} : vector<8x32xf32>, vector<8x32xf32>, vector<8x8xf32> -> vector<8x8xf32>
    %66 = vector.broadcast %42 : vector<1x8xf32> to vector<8x8xf32>
    %67 = arith.addf %65, %66 : vector<8x8xf32>
    %cst_27 = arith.constant dense<0xFF800000> : vector<8xf32>
    %68 = vector.multi_reduction <maximumf>, %67, %cst_27 [1] : vector<8x8xf32> to vector<8xf32>
    %69 = vector.shape_cast %68 : vector<8xf32> to vector<8x1xf32>
    %70 = vector.broadcast %69 : vector<8x1xf32> to vector<8x8xf32>
    %71 = arith.subf %67, %70 : vector<8x8xf32>
    %72 = math.exp %71 : vector<8x8xf32>
    %cst_28 = arith.constant dense<0.000000e+00> : vector<8xf32>
    %73 = vector.multi_reduction <add>, %72, %cst_28 [1] : vector<8x8xf32> to vector<8xf32>
    %74 = vector.shape_cast %73 : vector<8xf32> to vector<8x1xf32>
    %75 = tpu.reciprocal %74 {approx = true} : vector<8x1xf32> -> vector<8x1xf32>
    %76 = vector.broadcast %75 : vector<8x1xf32> to vector<8x8xf32>
    %77 = arith.mulf %72, %76 : vector<8x8xf32>
    %78 = vector.extract_strided_slice %45 {offsets = [0, 32], sizes = [8, 32], strides = [1, 1]} : vector<8x128xf32> to vector<8x32xf32>
    %cst_29 = arith.constant dense<0.000000e+00> : vector<8x32xf32>
    %79 = tpu.matmul %77, %78, %cst_29 {dimension_numbers = #tpu.dot_dimension_numbers<[1], [0], [0], [1], [0, 0, 1, 1], [], []>} : vector<8x8xf32>, vector<8x32xf32>, vector<8x32xf32> -> vector<8x32xf32>
    %80 = vector.extract_strided_slice %43 {offsets = [0, 64], sizes = [8, 32], strides = [1, 1]} : vector<8x128xf32> to vector<8x32xf32>
    %81 = vector.extract_strided_slice %44 {offsets = [0, 64], sizes = [8, 32], strides = [1, 1]} : vector<8x128xf32> to vector<8x32xf32>
    %cst_30 = arith.constant dense<0.000000e+00> : vector<8x8xf32>
    %82 = tpu.matmul %80, %81, %cst_30 {dimension_numbers = #tpu.dot_dimension_numbers<[1], [1], [0], [0], [0, 0, 1, 0], [], []>} : vector<8x32xf32>, vector<8x32xf32>, vector<8x8xf32> -> vector<8x8xf32>
    %83 = vector.broadcast %42 : vector<1x8xf32> to vector<8x8xf32>
    %84 = arith.addf %82, %83 : vector<8x8xf32>
    %cst_31 = arith.constant dense<0xFF800000> : vector<8xf32>
    %85 = vector.multi_reduction <maximumf>, %84, %cst_31 [1] : vector<8x8xf32> to vector<8xf32>
    %86 = vector.shape_cast %85 : vector<8xf32> to vector<8x1xf32>
    %87 = vector.broadcast %86 : vector<8x1xf32> to vector<8x8xf32>
    %88 = arith.subf %84, %87 : vector<8x8xf32>
    %89 = math.exp %88 : vector<8x8xf32>
    %cst_32 = arith.constant dense<0.000000e+00> : vector<8xf32>
    %90 = vector.multi_reduction <add>, %89, %cst_32 [1] : vector<8x8xf32> to vector<8xf32>
    %91 = vector.shape_cast %90 : vector<8xf32> to vector<8x1xf32>
    %92 = tpu.reciprocal %91 {approx = true} : vector<8x1xf32> -> vector<8x1xf32>
    %93 = vector.broadcast %92 : vector<8x1xf32> to vector<8x8xf32>
    %94 = arith.mulf %89, %93 : vector<8x8xf32>
    %95 = vector.extract_strided_slice %45 {offsets = [0, 64], sizes = [8, 32], strides = [1, 1]} : vector<8x128xf32> to vector<8x32xf32>
    %cst_33 = arith.constant dense<0.000000e+00> : vector<8x32xf32>
    %96 = tpu.matmul %94, %95, %cst_33 {dimension_numbers = #tpu.dot_dimension_numbers<[1], [0], [0], [1], [0, 0, 1, 1], [], []>} : vector<8x8xf32>, vector<8x32xf32>, vector<8x32xf32> -> vector<8x32xf32>
    %97 = vector.extract_strided_slice %43 {offsets = [0, 96], sizes = [8, 32], strides = [1, 1]} : vector<8x128xf32> to vector<8x32xf32>
    %98 = vector.extract_strided_slice %44 {offsets = [0, 96], sizes = [8, 32], strides = [1, 1]} : vector<8x128xf32> to vector<8x32xf32>
    %cst_34 = arith.constant dense<0.000000e+00> : vector<8x8xf32>
    %99 = tpu.matmul %97, %98, %cst_34 {dimension_numbers = #tpu.dot_dimension_numbers<[1], [1], [0], [0], [0, 0, 1, 0], [], []>} : vector<8x32xf32>, vector<8x32xf32>, vector<8x8xf32> -> vector<8x8xf32>
    %100 = vector.broadcast %42 : vector<1x8xf32> to vector<8x8xf32>
    %101 = arith.addf %99, %100 : vector<8x8xf32>
    %cst_35 = arith.constant dense<0xFF800000> : vector<8xf32>
    %102 = vector.multi_reduction <maximumf>, %101, %cst_35 [1] : vector<8x8xf32> to vector<8xf32>
    %103 = vector.shape_cast %102 : vector<8xf32> to vector<8x1xf32>
    %104 = vector.broadcast %103 : vector<8x1xf32> to vector<8x8xf32>
    %105 = arith.subf %101, %104 : vector<8x8xf32>
    %106 = math.exp %105 : vector<8x8xf32>
    %cst_36 = arith.constant dense<0.000000e+00> : vector<8xf32>
    %107 = vector.multi_reduction <add>, %106, %cst_36 [1] : vector<8x8xf32> to vector<8xf32>
    %108 = vector.shape_cast %107 : vector<8xf32> to vector<8x1xf32>
    %109 = tpu.reciprocal %108 {approx = true} : vector<8x1xf32> -> vector<8x1xf32>
    %110 = vector.broadcast %109 : vector<8x1xf32> to vector<8x8xf32>
    %111 = arith.mulf %106, %110 : vector<8x8xf32>
    %112 = vector.extract_strided_slice %45 {offsets = [0, 96], sizes = [8, 32], strides = [1, 1]} : vector<8x128xf32> to vector<8x32xf32>
    %cst_37 = arith.constant dense<0.000000e+00> : vector<8x32xf32>
    %113 = tpu.matmul %111, %112, %cst_37 {dimension_numbers = #tpu.dot_dimension_numbers<[1], [0], [0], [1], [0, 0, 1, 1], [], []>} : vector<8x8xf32>, vector<8x32xf32>, vector<8x32xf32> -> vector<8x32xf32>
    %114 = tpu.concatenate %62, %79, %96, %113 in 1 : vector<8x32xf32>, vector<8x32xf32>, vector<8x32xf32>, vector<8x32xf32> -> vector<8x128xf32>
    %115 = vector.extract_strided_slice %39 {offsets = [8, 0], sizes = [8, 128], strides = [1, 1]} : vector<16x128xf32> to vector<8x128xf32>
    %116 = vector.extract_strided_slice %40 {offsets = [8, 0], sizes = [8, 128], strides = [1, 1]} : vector<16x128xf32> to vector<8x128xf32>
    %117 = vector.extract_strided_slice %41 {offsets = [8, 0], sizes = [8, 128], strides = [1, 1]} : vector<16x128xf32> to vector<8x128xf32>
    %118 = vector.extract_strided_slice %115 {offsets = [0, 0], sizes = [8, 32], strides = [1, 1]} : vector<8x128xf32> to vector<8x32xf32>
    %119 = vector.extract_strided_slice %116 {offsets = [0, 0], sizes = [8, 32], strides = [1, 1]} : vector<8x128xf32> to vector<8x32xf32>
    %cst_38 = arith.constant dense<0.000000e+00> : vector<8x8xf32>
    %120 = tpu.matmul %118, %119, %cst_38 {dimension_numbers = #tpu.dot_dimension_numbers<[1], [1], [0], [0], [0, 0, 1, 0], [], []>} : vector<8x32xf32>, vector<8x32xf32>, vector<8x8xf32> -> vector<8x8xf32>
    %121 = vector.broadcast %42 : vector<1x8xf32> to vector<8x8xf32>
    %122 = arith.addf %120, %121 : vector<8x8xf32>
    %cst_39 = arith.constant dense<0xFF800000> : vector<8xf32>
    %123 = vector.multi_reduction <maximumf>, %122, %cst_39 [1] : vector<8x8xf32> to vector<8xf32>
    %124 = vector.shape_cast %123 : vector<8xf32> to vector<8x1xf32>
    %125 = vector.broadcast %124 : vector<8x1xf32> to vector<8x8xf32>
    %126 = arith.subf %122, %125 : vector<8x8xf32>
    %127 = math.exp %126 : vector<8x8xf32>
    %cst_40 = arith.constant dense<0.000000e+00> : vector<8xf32>
    %128 = vector.multi_reduction <add>, %127, %cst_40 [1] : vector<8x8xf32> to vector<8xf32>
    %129 = vector.shape_cast %128 : vector<8xf32> to vector<8x1xf32>
    %130 = tpu.reciprocal %129 {approx = true} : vector<8x1xf32> -> vector<8x1xf32>
    %131 = vector.broadcast %130 : vector<8x1xf32> to vector<8x8xf32>
    %132 = arith.mulf %127, %131 : vector<8x8xf32>
    %133 = vector.extract_strided_slice %117 {offsets = [0, 0], sizes = [8, 32], strides = [1, 1]} : vector<8x128xf32> to vector<8x32xf32>
    %cst_41 = arith.constant dense<0.000000e+00> : vector<8x32xf32>
    %134 = tpu.matmul %132, %133, %cst_41 {dimension_numbers = #tpu.dot_dimension_numbers<[1], [0], [0], [1], [0, 0, 1, 1], [], []>} : vector<8x8xf32>, vector<8x32xf32>, vector<8x32xf32> -> vector<8x32xf32>
    %135 = vector.extract_strided_slice %115 {offsets = [0, 32], sizes = [8, 32], strides = [1, 1]} : vector<8x128xf32> to vector<8x32xf32>
    %136 = vector.extract_strided_slice %116 {offsets = [0, 32], sizes = [8, 32], strides = [1, 1]} : vector<8x128xf32> to vector<8x32xf32>
    %cst_42 = arith.constant dense<0.000000e+00> : vector<8x8xf32>
    %137 = tpu.matmul %135, %136, %cst_42 {dimension_numbers = #tpu.dot_dimension_numbers<[1], [1], [0], [0], [0, 0, 1, 0], [], []>} : vector<8x32xf32>, vector<8x32xf32>, vector<8x8xf32> -> vector<8x8xf32>
    %138 = vector.broadcast %42 : vector<1x8xf32> to vector<8x8xf32>
    %139 = arith.addf %137, %138 : vector<8x8xf32>
    %cst_43 = arith.constant dense<0xFF800000> : vector<8xf32>
    %140 = vector.multi_reduction <maximumf>, %139, %cst_43 [1] : vector<8x8xf32> to vector<8xf32>
    %141 = vector.shape_cast %140 : vector<8xf32> to vector<8x1xf32>
    %142 = vector.broadcast %141 : vector<8x1xf32> to vector<8x8xf32>
    %143 = arith.subf %139, %142 : vector<8x8xf32>
    %144 = math.exp %143 : vector<8x8xf32>
    %cst_44 = arith.constant dense<0.000000e+00> : vector<8xf32>
    %145 = vector.multi_reduction <add>, %144, %cst_44 [1] : vector<8x8xf32> to vector<8xf32>
    %146 = vector.shape_cast %145 : vector<8xf32> to vector<8x1xf32>
    %147 = tpu.reciprocal %146 {approx = true} : vector<8x1xf32> -> vector<8x1xf32>
    %148 = vector.broadcast %147 : vector<8x1xf32> to vector<8x8xf32>
    %149 = arith.mulf %144, %148 : vector<8x8xf32>
    %150 = vector.extract_strided_slice %117 {offsets = [0, 32], sizes = [8, 32], strides = [1, 1]} : vector<8x128xf32> to vector<8x32xf32>
    %cst_45 = arith.constant dense<0.000000e+00> : vector<8x32xf32>
    %151 = tpu.matmul %149, %150, %cst_45 {dimension_numbers = #tpu.dot_dimension_numbers<[1], [0], [0], [1], [0, 0, 1, 1], [], []>} : vector<8x8xf32>, vector<8x32xf32>, vector<8x32xf32> -> vector<8x32xf32>
    %152 = vector.extract_strided_slice %115 {offsets = [0, 64], sizes = [8, 32], strides = [1, 1]} : vector<8x128xf32> to vector<8x32xf32>
    %153 = vector.extract_strided_slice %116 {offsets = [0, 64], sizes = [8, 32], strides = [1, 1]} : vector<8x128xf32> to vector<8x32xf32>
    %cst_46 = arith.constant dense<0.000000e+00> : vector<8x8xf32>
    %154 = tpu.matmul %152, %153, %cst_46 {dimension_numbers = #tpu.dot_dimension_numbers<[1], [1], [0], [0], [0, 0, 1, 0], [], []>} : vector<8x32xf32>, vector<8x32xf32>, vector<8x8xf32> -> vector<8x8xf32>
    %155 = vector.broadcast %42 : vector<1x8xf32> to vector<8x8xf32>
    %156 = arith.addf %154, %155 : vector<8x8xf32>
    %cst_47 = arith.constant dense<0xFF800000> : vector<8xf32>
    %157 = vector.multi_reduction <maximumf>, %156, %cst_47 [1] : vector<8x8xf32> to vector<8xf32>
    %158 = vector.shape_cast %157 : vector<8xf32> to vector<8x1xf32>
    %159 = vector.broadcast %158 : vector<8x1xf32> to vector<8x8xf32>
    %160 = arith.subf %156, %159 : vector<8x8xf32>
    %161 = math.exp %160 : vector<8x8xf32>
    %cst_48 = arith.constant dense<0.000000e+00> : vector<8xf32>
    %162 = vector.multi_reduction <add>, %161, %cst_48 [1] : vector<8x8xf32> to vector<8xf32>
    %163 = vector.shape_cast %162 : vector<8xf32> to vector<8x1xf32>
    %164 = tpu.reciprocal %163 {approx = true} : vector<8x1xf32> -> vector<8x1xf32>
    %165 = vector.broadcast %164 : vector<8x1xf32> to vector<8x8xf32>
    %166 = arith.mulf %161, %165 : vector<8x8xf32>
    %167 = vector.extract_strided_slice %117 {offsets = [0, 64], sizes = [8, 32], strides = [1, 1]} : vector<8x128xf32> to vector<8x32xf32>
    %cst_49 = arith.constant dense<0.000000e+00> : vector<8x32xf32>
    %168 = tpu.matmul %166, %167, %cst_49 {dimension_numbers = #tpu.dot_dimension_numbers<[1], [0], [0], [1], [0, 0, 1, 1], [], []>} : vector<8x8xf32>, vector<8x32xf32>, vector<8x32xf32> -> vector<8x32xf32>
    %169 = vector.extract_strided_slice %115 {offsets = [0, 96], sizes = [8, 32], strides = [1, 1]} : vector<8x128xf32> to vector<8x32xf32>
    %170 = vector.extract_strided_slice %116 {offsets = [0, 96], sizes = [8, 32], strides = [1, 1]} : vector<8x128xf32> to vector<8x32xf32>
    %cst_50 = arith.constant dense<0.000000e+00> : vector<8x8xf32>
    %171 = tpu.matmul %169, %170, %cst_50 {dimension_numbers = #tpu.dot_dimension_numbers<[1], [1], [0], [0], [0, 0, 1, 0], [], []>} : vector<8x32xf32>, vector<8x32xf32>, vector<8x8xf32> -> vector<8x8xf32>
    %172 = vector.broadcast %42 : vector<1x8xf32> to vector<8x8xf32>
    %173 = arith.addf %171, %172 : vector<8x8xf32>
    %cst_51 = arith.constant dense<0xFF800000> : vector<8xf32>
    %174 = vector.multi_reduction <maximumf>, %173, %cst_51 [1] : vector<8x8xf32> to vector<8xf32>
    %175 = vector.shape_cast %174 : vector<8xf32> to vector<8x1xf32>
    %176 = vector.broadcast %175 : vector<8x1xf32> to vector<8x8xf32>
    %177 = arith.subf %173, %176 : vector<8x8xf32>
    %178 = math.exp %177 : vector<8x8xf32>
    %cst_52 = arith.constant dense<0.000000e+00> : vector<8xf32>
    %179 = vector.multi_reduction <add>, %178, %cst_52 [1] : vector<8x8xf32> to vector<8xf32>
    %180 = vector.shape_cast %179 : vector<8xf32> to vector<8x1xf32>
    %181 = tpu.reciprocal %180 {approx = true} : vector<8x1xf32> -> vector<8x1xf32>
    %182 = vector.broadcast %181 : vector<8x1xf32> to vector<8x8xf32>
    %183 = arith.mulf %178, %182 : vector<8x8xf32>
    %184 = vector.extract_strided_slice %117 {offsets = [0, 96], sizes = [8, 32], strides = [1, 1]} : vector<8x128xf32> to vector<8x32xf32>
    %cst_53 = arith.constant dense<0.000000e+00> : vector<8x32xf32>
    %185 = tpu.matmul %183, %184, %cst_53 {dimension_numbers = #tpu.dot_dimension_numbers<[1], [0], [0], [1], [0, 0, 1, 1], [], []>} : vector<8x8xf32>, vector<8x32xf32>, vector<8x32xf32> -> vector<8x32xf32>
    %186 = tpu.concatenate %134, %151, %168, %185 in 1 : vector<8x32xf32>, vector<8x32xf32>, vector<8x32xf32>, vector<8x32xf32> -> vector<8x128xf32>
    %187 = tpu.concatenate %114, %186 in 0 : vector<8x128xf32>, vector<8x128xf32> -> vector<16x128xf32>
    %c0_54 = arith.constant 0 : index
    %c0_55 = arith.constant 0 : index
    %c0_56 = arith.constant 0 : index
    %188 = vector.load %arg12[%c0_54, %c0_55, %c0_56] : memref<1x128x128xf32, #tpu.memory_space<vmem>>, vector<1x128x128xf32>
    %189 = vector.shape_cast %188 : vector<1x128x128xf32> to vector<128x128xf32>
    %cst_57 = arith.constant dense<0.000000e+00> : vector<16x128xf32>
    %190 = tpu.matmul %187, %189, %cst_57 {dimension_numbers = #tpu.dot_dimension_numbers<[1], [0], [0], [1], [0, 0, 1, 1], [], []>} : vector<16x128xf32>, vector<128x128xf32>, vector<16x128xf32> -> vector<16x128xf32>
    %191 = arith.addf %3, %190 : vector<16x128xf32>
    %c0_58 = arith.constant 0 : index
    %c0_59 = arith.constant 0 : index
    %c0_60 = arith.constant 0 : index
    %192 = vector.load %arg13[%c0_58, %c0_59, %c0_60] : memref<1x1x128xf32, #tpu.memory_space<vmem>>, vector<1x1x128xf32>
    %193 = vector.shape_cast %192 : vector<1x1x128xf32> to vector<1x128xf32>
    %194 = vector.broadcast %193 : vector<1x128xf32> to vector<16x128xf32>
    %195 = arith.addf %191, %194 : vector<16x128xf32>
    %c0_61 = arith.constant 0 : index
    %c0_62 = arith.constant 0 : index
    %c0_63 = arith.constant 0 : index
    %196 = vector.load %arg14[%c0_61, %c0_62, %c0_63] : memref<1x1x128xf32, #tpu.memory_space<vmem>>, vector<1x1x128xf32>
    %197 = vector.shape_cast %196 : vector<1x1x128xf32> to vector<1x128xf32>
    %c0_64 = arith.constant 0 : index
    %c0_65 = arith.constant 0 : index
    %c0_66 = arith.constant 0 : index
    %198 = vector.load %arg15[%c0_64, %c0_65, %c0_66] : memref<1x1x128xf32, #tpu.memory_space<vmem>>, vector<1x1x128xf32>
    %199 = vector.shape_cast %198 : vector<1x1x128xf32> to vector<1x128xf32>
    %cst_67 = arith.constant dense<0.000000e+00> : vector<16xf32>
    %200 = vector.multi_reduction <add>, %195, %cst_67 [1] : vector<16x128xf32> to vector<16xf32>
    %201 = vector.shape_cast %200 : vector<16xf32> to vector<16x1xf32>
    %cst_68 = arith.constant 1.280000e+02 : f32
    %202 = vector.broadcast %cst_68 : f32 to vector<16x1xf32>
    %203 = arith.divf %201, %202 : vector<16x1xf32>
    %204 = vector.broadcast %203 : vector<16x1xf32> to vector<16x128xf32>
    %205 = arith.subf %195, %204 : vector<16x128xf32>
    %206 = arith.mulf %205, %205 : vector<16x128xf32>
    %cst_69 = arith.constant dense<0.000000e+00> : vector<16xf32>
    %207 = vector.multi_reduction <add>, %206, %cst_69 [1] : vector<16x128xf32> to vector<16xf32>
    %208 = vector.shape_cast %207 : vector<16xf32> to vector<16x1xf32>
    %cst_70 = arith.constant 1.280000e+02 : f32
    %209 = vector.broadcast %cst_70 : f32 to vector<16x1xf32>
    %210 = arith.divf %208, %209 : vector<16x1xf32>
    %211 = vector.broadcast %203 : vector<16x1xf32> to vector<16x128xf32>
    %212 = arith.subf %195, %211 : vector<16x128xf32>
    %cst_71 = arith.constant 9.99999974E-6 : f32
    %213 = vector.broadcast %cst_71 : f32 to vector<16x1xf32>
    %214 = arith.addf %210, %213 : vector<16x1xf32>
    %215 = math.rsqrt %214 : vector<16x1xf32>
    %216 = vector.broadcast %215 : vector<16x1xf32> to vector<16x128xf32>
    %217 = arith.mulf %212, %216 : vector<16x128xf32>
    %218 = vector.broadcast %197 : vector<1x128xf32> to vector<16x128xf32>
    %219 = arith.mulf %217, %218 : vector<16x128xf32>
    %220 = vector.broadcast %199 : vector<1x128xf32> to vector<16x128xf32>
    %221 = arith.addf %219, %220 : vector<16x128xf32>
    %c0_72 = arith.constant 0 : index
    %c0_73 = arith.constant 0 : index
    %c0_74 = arith.constant 0 : index
    %222 = vector.load %arg16[%c0_72, %c0_73, %c0_74] : memref<1x128x512xf32, #tpu.memory_space<vmem>>, vector<1x128x512xf32>
    %223 = vector.shape_cast %222 : vector<1x128x512xf32> to vector<128x512xf32>
    %cst_75 = arith.constant dense<0.000000e+00> : vector<16x512xf32>
    %224 = tpu.matmul %221, %223, %cst_75 {dimension_numbers = #tpu.dot_dimension_numbers<[1], [0], [0], [1], [0, 0, 1, 1], [], []>} : vector<16x128xf32>, vector<128x512xf32>, vector<16x512xf32> -> vector<16x512xf32>
    %c0_76 = arith.constant 0 : index
    %c0_77 = arith.constant 0 : index
    %c0_78 = arith.constant 0 : index
    %225 = vector.load %arg17[%c0_76, %c0_77, %c0_78] : memref<1x1x512xf32, #tpu.memory_space<vmem>>, vector<1x1x512xf32>
    %226 = vector.shape_cast %225 : vector<1x1x512xf32> to vector<1x512xf32>
    %227 = vector.broadcast %226 : vector<1x512xf32> to vector<16x512xf32>
    %228 = arith.addf %224, %227 : vector<16x512xf32>
    %cst_79 = arith.constant 1.702000e+00 : f32
    %229 = vector.broadcast %cst_79 : f32 to vector<16x512xf32>
    %230 = arith.mulf %229, %228 : vector<16x512xf32>
    %231 = arith.negf %230 : vector<16x512xf32>
    %232 = math.exp %231 : vector<16x512xf32>
    %cst_80 = arith.constant 1.000000e+00 : f32
    %233 = vector.broadcast %cst_80 : f32 to vector<16x512xf32>
    %234 = arith.addf %233, %232 : vector<16x512xf32>
    %235 = arith.divf %233, %234 : vector<16x512xf32>
    %236 = arith.mulf %228, %235 : vector<16x512xf32>
    %c0_81 = arith.constant 0 : index
    %c0_82 = arith.constant 0 : index
    %c0_83 = arith.constant 0 : index
    %237 = vector.load %arg18[%c0_81, %c0_82, %c0_83] : memref<1x512x128xf32, #tpu.memory_space<vmem>>, vector<1x512x128xf32>
    %238 = vector.shape_cast %237 : vector<1x512x128xf32> to vector<512x128xf32>
    %cst_84 = arith.constant dense<0.000000e+00> : vector<16x128xf32>
    %239 = tpu.matmul %236, %238, %cst_84 {dimension_numbers = #tpu.dot_dimension_numbers<[1], [0], [0], [1], [0, 0, 1, 1], [], []>} : vector<16x512xf32>, vector<512x128xf32>, vector<16x128xf32> -> vector<16x128xf32>
    %240 = arith.addf %195, %239 : vector<16x128xf32>
    %c0_85 = arith.constant 0 : index
    %c0_86 = arith.constant 0 : index
    %c0_87 = arith.constant 0 : index
    %241 = vector.load %arg19[%c0_85, %c0_86, %c0_87] : memref<1x1x128xf32, #tpu.memory_space<vmem>>, vector<1x1x128xf32>
    %242 = vector.shape_cast %241 : vector<1x1x128xf32> to vector<1x128xf32>
    %243 = vector.broadcast %242 : vector<1x128xf32> to vector<16x128xf32>
    %244 = arith.addf %240, %243 : vector<16x128xf32>
    %c0_88 = arith.constant 0 : index
    %c0_89 = arith.constant 0 : index
    %245 = vector.load %arg38[%c0_88, %c0_89] : memref<16x128xf32, #tpu.memory_space<vmem>>, vector<16x128xf32>
    tpu.vector_store %arg38[%c0_88, %c0_89], %244 {strides = array<i32>} : memref<16x128xf32, #tpu.memory_space<vmem>>, vector<16x128xf32>,
    %c1_i32 = arith.constant 1 : i32
    %246 = arith.cmpi eq, %arg0, %c1_i32 : i32
    %247 = arith.extui %246 : i1 to i32
    %c0_i32_90 = arith.constant 0 : i32
    %248 = arith.cmpi ne, %247, %c0_i32_90 : i32
    scf.if %248 {
      %249 = vector.extract_strided_slice %244 {offsets = [0, 0], sizes = [1, 128], strides = [1, 1]} : vector<16x128xf32> to vector<1x128xf32>
      %250 = vector.extract_strided_slice %244 {offsets = [8, 0], sizes = [1, 128], strides = [1, 1]} : vector<16x128xf32> to vector<1x128xf32>
      %251 = tpu.concatenate %249, %250 in 0 : vector<1x128xf32>, vector<1x128xf32> -> vector<2x128xf32>
      %c0_91 = arith.constant 0 : index
      %c0_92 = arith.constant 0 : index
      %252 = vector.load %arg20[%c0_91, %c0_92] : memref<1x128xf32, #tpu.memory_space<vmem>>, vector<1x128xf32>
      %c0_93 = arith.constant 0 : index
      %c0_94 = arith.constant 0 : index
      %253 = vector.load %arg21[%c0_93, %c0_94] : memref<1x128xf32, #tpu.memory_space<vmem>>, vector<1x128xf32>
      %cst_95 = arith.constant dense<0.000000e+00> : vector<2xf32>
      %254 = vector.multi_reduction <add>, %251, %cst_95 [1] : vector<2x128xf32> to vector<2xf32>
      %255 = vector.shape_cast %254 : vector<2xf32> to vector<2x1xf32>
      %cst_96 = arith.constant 1.280000e+02 : f32
      %256 = vector.broadcast %cst_96 : f32 to vector<2x1xf32>
      %257 = arith.divf %255, %256 : vector<2x1xf32>
      %258 = vector.broadcast %257 : vector<2x1xf32> to vector<2x128xf32>
      %259 = arith.subf %251, %258 : vector<2x128xf32>
      %260 = arith.mulf %259, %259 : vector<2x128xf32>
      %cst_97 = arith.constant dense<0.000000e+00> : vector<2xf32>
      %261 = vector.multi_reduction <add>, %260, %cst_97 [1] : vector<2x128xf32> to vector<2xf32>
      %262 = vector.shape_cast %261 : vector<2xf32> to vector<2x1xf32>
      %cst_98 = arith.constant 1.280000e+02 : f32
      %263 = vector.broadcast %cst_98 : f32 to vector<2x1xf32>
      %264 = arith.divf %262, %263 : vector<2x1xf32>
      %265 = vector.broadcast %257 : vector<2x1xf32> to vector<2x128xf32>
      %266 = arith.subf %251, %265 : vector<2x128xf32>
      %cst_99 = arith.constant 9.99999974E-6 : f32
      %267 = vector.broadcast %cst_99 : f32 to vector<2x1xf32>
      %268 = arith.addf %264, %267 : vector<2x1xf32>
      %269 = math.rsqrt %268 : vector<2x1xf32>
      %270 = vector.broadcast %269 : vector<2x1xf32> to vector<2x128xf32>
      %271 = arith.mulf %266, %270 : vector<2x128xf32>
      %272 = vector.broadcast %252 : vector<1x128xf32> to vector<2x128xf32>
      %273 = arith.mulf %271, %272 : vector<2x128xf32>
      %274 = vector.broadcast %253 : vector<1x128xf32> to vector<2x128xf32>
      %275 = arith.addf %273, %274 : vector<2x128xf32>
      %c0_100 = arith.constant 0 : index
      %c0_101 = arith.constant 0 : index
      %276 = vector.load %arg22[%c0_100, %c0_101] : memref<128x128xf32, #tpu.memory_space<vmem>>, vector<128x128xf32>
      %cst_102 = arith.constant dense<0.000000e+00> : vector<2x128xf32>
      %277 = tpu.matmul %275, %276, %cst_102 {dimension_numbers = #tpu.dot_dimension_numbers<[1], [0], [0], [1], [0, 0, 1, 1], [], []>} : vector<2x128xf32>, vector<128x128xf32>, vector<2x128xf32> -> vector<2x128xf32>
      %c0_103 = arith.constant 0 : index
      %c0_104 = arith.constant 0 : index
      %278 = vector.load %arg35[%c0_103, %c0_104] : memref<2x128xf32, #tpu.memory_space<vmem>>, vector<2x128xf32>
      tpu.vector_store %arg35[%c0_103, %c0_104], %277 {strides = array<i32>} : memref<2x128xf32, #tpu.memory_space<vmem>>, vector<2x128xf32>,
      %c0_105 = arith.constant 0 : index
      %c0_106 = arith.constant 0 : index
      %279 = vector.load %arg23[%c0_105, %c0_106] : memref<1x128xf32, #tpu.memory_space<vmem>>, vector<1x128xf32>
      %c0_107 = arith.constant 0 : index
      %c0_108 = arith.constant 0 : index
      %280 = vector.load %arg24[%c0_107, %c0_108] : memref<1x128xf32, #tpu.memory_space<vmem>>, vector<1x128xf32>
      %c0_109 = arith.constant 0 : index
      %c0_110 = arith.constant 0 : index
      %281 = vector.load %arg25[%c0_109, %c0_110] : memref<128x128xf32, #tpu.memory_space<vmem>>, vector<128x128xf32>
      %c0_111 = arith.constant 0 : index
      %c0_112 = arith.constant 0 : index
      %282 = vector.load %arg26[%c0_111, %c0_112] : memref<1x128xf32, #tpu.memory_space<vmem>>, vector<1x128xf32>
      %c0_113 = arith.constant 0 : index
      %c0_114 = arith.constant 0 : index
      %283 = vector.load %arg27[%c0_113, %c0_114] : memref<128x128xf32, #tpu.memory_space<vmem>>, vector<128x128xf32>
      %c0_115 = arith.constant 0 : index
      %c0_116 = arith.constant 0 : index
      %284 = vector.load %arg28[%c0_115, %c0_116] : memref<1x128xf32, #tpu.memory_space<vmem>>, vector<1x128xf32>
      %cst_117 = arith.constant dense<0.000000e+00> : vector<2xf32>
      %285 = vector.multi_reduction <add>, %277, %cst_117 [1] : vector<2x128xf32> to vector<2xf32>
      %286 = vector.shape_cast %285 : vector<2xf32> to vector<2x1xf32>
      %cst_118 = arith.constant 1.280000e+02 : f32
      %287 = vector.broadcast %cst_118 : f32 to vector<2x1xf32>
      %288 = arith.divf %286, %287 : vector<2x1xf32>
      %289 = vector.broadcast %288 : vector<2x1xf32> to vector<2x128xf32>
      %290 = arith.subf %277, %289 : vector<2x128xf32>
      %291 = arith.mulf %290, %290 : vector<2x128xf32>
      %cst_119 = arith.constant dense<0.000000e+00> : vector<2xf32>
      %292 = vector.multi_reduction <add>, %291, %cst_119 [1] : vector<2x128xf32> to vector<2xf32>
      %293 = vector.shape_cast %292 : vector<2xf32> to vector<2x1xf32>
      %cst_120 = arith.constant 1.280000e+02 : f32
      %294 = vector.broadcast %cst_120 : f32 to vector<2x1xf32>
      %295 = arith.divf %293, %294 : vector<2x1xf32>
      %296 = vector.broadcast %288 : vector<2x1xf32> to vector<2x128xf32>
      %297 = arith.subf %277, %296 : vector<2x128xf32>
      %cst_121 = arith.constant 9.99999974E-6 : f32
      %298 = vector.broadcast %cst_121 : f32 to vector<2x1xf32>
      %299 = arith.addf %295, %298 : vector<2x1xf32>
      %300 = math.rsqrt %299 : vector<2x1xf32>
      %301 = vector.broadcast %300 : vector<2x1xf32> to vector<2x128xf32>
      %302 = arith.mulf %297, %301 : vector<2x128xf32>
      %303 = vector.broadcast %279 : vector<1x128xf32> to vector<2x128xf32>
      %304 = arith.mulf %302, %303 : vector<2x128xf32>
      %305 = vector.broadcast %280 : vector<1x128xf32> to vector<2x128xf32>
      %306 = arith.addf %304, %305 : vector<2x128xf32>
      %cst_122 = arith.constant dense<0.000000e+00> : vector<2x128xf32>
      %307 = tpu.matmul %306, %281, %cst_122 {dimension_numbers = #tpu.dot_dimension_numbers<[1], [0], [0], [1], [0, 0, 1, 1], [], []>} : vector<2x128xf32>, vector<128x128xf32>, vector<2x128xf32> -> vector<2x128xf32>
      %308 = vector.broadcast %282 : vector<1x128xf32> to vector<2x128xf32>
      %309 = arith.addf %307, %308 : vector<2x128xf32>
      %cst_123 = arith.constant 5.000000e-01 : f32
      %310 = vector.broadcast %cst_123 : f32 to vector<2x128xf32>
      %311 = arith.mulf %310, %309 : vector<2x128xf32>
      %cst_124 = arith.constant 4.471500e-02 : f32
      %312 = vector.broadcast %cst_124 : f32 to vector<2x128xf32>
      %313 = arith.mulf %312, %309 : vector<2x128xf32>
      %314 = arith.mulf %313, %309 : vector<2x128xf32>
      %315 = arith.mulf %314, %309 : vector<2x128xf32>
      %316 = arith.addf %309, %315 : vector<2x128xf32>
      %cst_125 = arith.constant 0.797884583 : f32
      %317 = vector.broadcast %cst_125 : f32 to vector<2x128xf32>
      %318 = arith.mulf %317, %316 : vector<2x128xf32>
      %319 = math.tanh %318 : vector<2x128xf32>
      %cst_126 = arith.constant 1.000000e+00 : f32
      %320 = vector.broadcast %cst_126 : f32 to vector<2x128xf32>
      %321 = arith.addf %320, %319 : vector<2x128xf32>
      %322 = arith.mulf %311, %321 : vector<2x128xf32>
      %cst_127 = arith.constant dense<0.000000e+00> : vector<2x128xf32>
      %323 = tpu.matmul %322, %283, %cst_127 {dimension_numbers = #tpu.dot_dimension_numbers<[1], [0], [0], [1], [0, 0, 1, 1], [], []>} : vector<2x128xf32>, vector<128x128xf32>, vector<2x128xf32> -> vector<2x128xf32>
      %324 = vector.broadcast %284 : vector<1x128xf32> to vector<2x128xf32>
      %325 = arith.addf %323, %324 : vector<2x128xf32>
      %c0_128 = arith.constant 0 : index
      %c0_129 = arith.constant 0 : index
      %326 = vector.load %arg36[%c0_128, %c0_129] : memref<2x128xf32, #tpu.memory_space<vmem>>, vector<2x128xf32>
      tpu.vector_store %arg36[%c0_128, %c0_129], %325 {strides = array<i32>} : memref<2x128xf32, #tpu.memory_space<vmem>>, vector<2x128xf32>,
      %c0_130 = arith.constant 0 : index
      %c0_131 = arith.constant 0 : index
      %327 = vector.load %arg29[%c0_130, %c0_131] : memref<1x128xf32, #tpu.memory_space<vmem>>, vector<1x128xf32>
      %c0_132 = arith.constant 0 : index
      %c0_133 = arith.constant 0 : index
      %328 = vector.load %arg30[%c0_132, %c0_133] : memref<1x128xf32, #tpu.memory_space<vmem>>, vector<1x128xf32>
      %c0_134 = arith.constant 0 : index
      %c0_135 = arith.constant 0 : index
      %329 = vector.load %arg31[%c0_134, %c0_135] : memref<128x128xf32, #tpu.memory_space<vmem>>, vector<128x128xf32>
      %c0_136 = arith.constant 0 : index
      %c0_137 = arith.constant 0 : index
      %330 = vector.load %arg32[%c0_136, %c0_137] : memref<1x128xf32, #tpu.memory_space<vmem>>, vector<1x128xf32>
      %c0_138 = arith.constant 0 : index
      %c0_139 = arith.constant 0 : index
      %331 = vector.load %arg33[%c0_138, %c0_139] : memref<128x128xf32, #tpu.memory_space<vmem>>, vector<128x128xf32>
      %c0_140 = arith.constant 0 : index
      %c0_141 = arith.constant 0 : index
      %332 = vector.load %arg34[%c0_140, %c0_141] : memref<1x128xf32, #tpu.memory_space<vmem>>, vector<1x128xf32>
      %cst_142 = arith.constant dense<0.000000e+00> : vector<2xf32>
      %333 = vector.multi_reduction <add>, %277, %cst_142 [1] : vector<2x128xf32> to vector<2xf32>
      %334 = vector.shape_cast %333 : vector<2xf32> to vector<2x1xf32>
      %cst_143 = arith.constant 1.280000e+02 : f32
      %335 = vector.broadcast %cst_143 : f32 to vector<2x1xf32>
      %336 = arith.divf %334, %335 : vector<2x1xf32>
      %337 = vector.broadcast %336 : vector<2x1xf32> to vector<2x128xf32>
      %338 = arith.subf %277, %337 : vector<2x128xf32>
      %339 = arith.mulf %338, %338 : vector<2x128xf32>
      %cst_144 = arith.constant dense<0.000000e+00> : vector<2xf32>
      %340 = vector.multi_reduction <add>, %339, %cst_144 [1] : vector<2x128xf32> to vector<2xf32>
      %341 = vector.shape_cast %340 : vector<2xf32> to vector<2x1xf32>
      %cst_145 = arith.constant 1.280000e+02 : f32
      %342 = vector.broadcast %cst_145 : f32 to vector<2x1xf32>
      %343 = arith.divf %341, %342 : vector<2x1xf32>
      %344 = vector.broadcast %336 : vector<2x1xf32> to vector<2x128xf32>
      %345 = arith.subf %277, %344 : vector<2x128xf32>
      %cst_146 = arith.constant 9.99999974E-6 : f32
      %346 = vector.broadcast %cst_146 : f32 to vector<2x1xf32>
      %347 = arith.addf %343, %346 : vector<2x1xf32>
      %348 = math.rsqrt %347 : vector<2x1xf32>
      %349 = vector.broadcast %348 : vector<2x1xf32> to vector<2x128xf32>
      %350 = arith.mulf %345, %349 : vector<2x128xf32>
      %351 = vector.broadcast %327 : vector<1x128xf32> to vector<2x128xf32>
      %352 = arith.mulf %350, %351 : vector<2x128xf32>
      %353 = vector.broadcast %328 : vector<1x128xf32> to vector<2x128xf32>
      %354 = arith.addf %352, %353 : vector<2x128xf32>
      %cst_147 = arith.constant dense<0.000000e+00> : vector<2x128xf32>
      %355 = tpu.matmul %354, %329, %cst_147 {dimension_numbers = #tpu.dot_dimension_numbers<[1], [0], [0], [1], [0, 0, 1, 1], [], []>} : vector<2x128xf32>, vector<128x128xf32>, vector<2x128xf32> -> vector<2x128xf32>
      %356 = vector.broadcast %330 : vector<1x128xf32> to vector<2x128xf32>
      %357 = arith.addf %355, %356 : vector<2x128xf32>
      %cst_148 = arith.constant 5.000000e-01 : f32
      %358 = vector.broadcast %cst_148 : f32 to vector<2x128xf32>
      %359 = arith.mulf %358, %357 : vector<2x128xf32>
      %cst_149 = arith.constant 4.471500e-02 : f32
      %360 = vector.broadcast %cst_149 : f32 to vector<2x128xf32>
      %361 = arith.mulf %360, %357 : vector<2x128xf32>
      %362 = arith.mulf %361, %357 : vector<2x128xf32>
      %363 = arith.mulf %362, %357 : vector<2x128xf32>
      %364 = arith.addf %357, %363 : vector<2x128xf32>
      %cst_150 = arith.constant 0.797884583 : f32
      %365 = vector.broadcast %cst_150 : f32 to vector<2x128xf32>
      %366 = arith.mulf %365, %364 : vector<2x128xf32>
      %367 = math.tanh %366 : vector<2x128xf32>
      %cst_151 = arith.constant 1.000000e+00 : f32
      %368 = vector.broadcast %cst_151 : f32 to vector<2x128xf32>
      %369 = arith.addf %368, %367 : vector<2x128xf32>
      %370 = arith.mulf %359, %369 : vector<2x128xf32>
      %cst_152 = arith.constant dense<0.000000e+00> : vector<2x128xf32>
      %371 = tpu.matmul %370, %331, %cst_152 {dimension_numbers = #tpu.dot_dimension_numbers<[1], [0], [0], [1], [0, 0, 1, 1], [], []>} : vector<2x128xf32>, vector<128x128xf32>, vector<2x128xf32> -> vector<2x128xf32>
      %372 = vector.broadcast %332 : vector<1x128xf32> to vector<2x128xf32>
      %373 = arith.addf %371, %372 : vector<2x128xf32>
      %c0_153 = arith.constant 0 : index
      %c0_154 = arith.constant 0 : index
      %374 = vector.load %arg37[%c0_153, %c0_154] : memref<2x128xf32, #tpu.memory_space<vmem>>, vector<2x128xf32>
      tpu.vector_store %arg37[%c0_153, %c0_154], %373 {strides = array<i32>} : memref<2x128xf32, #tpu.memory_space<vmem>>, vector<2x128xf32>,
    } else {
    }
    return
  }
  func.func @transform_0(%arg0: i32) -> (i32, i32) {
    %c0_i32 = arith.constant 0 : i32
    %c0_i32_0 = arith.constant 0 : i32
    %c0_i32_1 = arith.constant 0 : i32
    return %c0_i32, %c0_i32_0 : i32, i32
  }
  func.func @transform_1(%arg0: i32) -> (i32, i32) {
    %c0_i32 = arith.constant 0 : i32
    %c0_i32_0 = arith.constant 0 : i32
    %c0_i32_1 = arith.constant 0 : i32
    return %c0_i32, %c0_i32_0 : i32, i32
  }
  func.func @transform_2(%arg0: i32) -> (i32, i32) {
    %c0_i32 = arith.constant 0 : i32
    %c0_i32_0 = arith.constant 0 : i32
    %c0_i32_1 = arith.constant 0 : i32
    return %c0_i32, %c0_i32_0 : i32, i32
  }
  func.func @transform_3(%arg0: i32) -> (i32, i32) {
    %c0_i32 = arith.constant 0 : i32
    %c0_i32_0 = arith.constant 0 : i32
    %c0_i32_1 = arith.constant 0 : i32
    return %c0_i32, %c0_i32_0 : i32, i32
  }
  func.func @transform_4(%arg0: i32) -> (i32, i32) {
    %c0_i32 = arith.constant 0 : i32
    %c0_i32_0 = arith.constant 0 : i32
    %c0_i32_1 = arith.constant 0 : i32
    return %c0_i32, %c0_i32_0 : i32, i32
  }
  func.func @transform_5(%arg0: i32) -> (i32, i32) {
    %c0_i32 = arith.constant 0 : i32
    %c0_i32_0 = arith.constant 0 : i32
    %c0_i32_1 = arith.constant 0 : i32
    return %c0_i32, %c0_i32_0 : i32, i32
  }
  func.func @transform_6(%arg0: i32) -> (i32, i32) {
    %c0_i32 = arith.constant 0 : i32
    %c0_i32_0 = arith.constant 0 : i32
    %c0_i32_1 = arith.constant 0 : i32
    return %c0_i32, %c0_i32_0 : i32, i32
  }
  func.func @transform_7(%arg0: i32) -> (i32, i32, i32) {
    %c0_i32 = arith.constant 0 : i32
    %c0_i32_0 = arith.constant 0 : i32
    %c0_i32_1 = arith.constant 0 : i32
    return %arg0, %c0_i32, %c0_i32_0 : i32, i32, i32
  }
  func.func @transform_8(%arg0: i32) -> (i32, i32, i32) {
    %c0_i32 = arith.constant 0 : i32
    %c0_i32_0 = arith.constant 0 : i32
    %c0_i32_1 = arith.constant 0 : i32
    return %arg0, %c0_i32, %c0_i32_0 : i32, i32, i32
  }
  func.func @transform_9(%arg0: i32) -> (i32, i32, i32) {
    %c0_i32 = arith.constant 0 : i32
    %c0_i32_0 = arith.constant 0 : i32
    %c0_i32_1 = arith.constant 0 : i32
    return %arg0, %c0_i32, %c0_i32_0 : i32, i32, i32
  }
  func.func @transform_10(%arg0: i32) -> (i32, i32, i32) {
    %c0_i32 = arith.constant 0 : i32
    %c0_i32_0 = arith.constant 0 : i32
    %c0_i32_1 = arith.constant 0 : i32
    return %arg0, %c0_i32, %c0_i32_0 : i32, i32, i32
  }
  func.func @transform_11(%arg0: i32) -> (i32, i32, i32) {
    %c0_i32 = arith.constant 0 : i32
    %c0_i32_0 = arith.constant 0 : i32
    %c0_i32_1 = arith.constant 0 : i32
    return %arg0, %c0_i32, %c0_i32_0 : i32, i32, i32
  }
  func.func @transform_12(%arg0: i32) -> (i32, i32, i32) {
    %c0_i32 = arith.constant 0 : i32
    %c0_i32_0 = arith.constant 0 : i32
    %c0_i32_1 = arith.constant 0 : i32
    return %arg0, %c0_i32, %c0_i32_0 : i32, i32, i32
  }
  func.func @transform_13(%arg0: i32) -> (i32, i32, i32) {
    %c0_i32 = arith.constant 0 : i32
    %c0_i32_0 = arith.constant 0 : i32
    %c0_i32_1 = arith.constant 0 : i32
    return %arg0, %c0_i32, %c0_i32_0 : i32, i32, i32
  }
  func.func @transform_14(%arg0: i32) -> (i32, i32, i32) {
    %c0_i32 = arith.constant 0 : i32
    %c0_i32_0 = arith.constant 0 : i32
    %c0_i32_1 = arith.constant 0 : i32
    return %arg0, %c0_i32, %c0_i32_0 : i32, i32, i32
  }
  func.func @transform_15(%arg0: i32) -> (i32, i32, i32) {
    %c0_i32 = arith.constant 0 : i32
    %c0_i32_0 = arith.constant 0 : i32
    %c0_i32_1 = arith.constant 0 : i32
    return %arg0, %c0_i32, %c0_i32_0 : i32, i32, i32
  }
  func.func @transform_16(%arg0: i32) -> (i32, i32, i32) {
    %c0_i32 = arith.constant 0 : i32
    %c0_i32_0 = arith.constant 0 : i32
    %c0_i32_1 = arith.constant 0 : i32
    return %arg0, %c0_i32, %c0_i32_0 : i32, i32, i32
  }
  func.func @transform_17(%arg0: i32) -> (i32, i32, i32) {
    %c0_i32 = arith.constant 0 : i32
    %c0_i32_0 = arith.constant 0 : i32
    %c0_i32_1 = arith.constant 0 : i32
    return %arg0, %c0_i32, %c0_i32_0 : i32, i32, i32
  }
  func.func @transform_18(%arg0: i32) -> (i32, i32, i32) {
    %c0_i32 = arith.constant 0 : i32
    %c0_i32_0 = arith.constant 0 : i32
    %c0_i32_1 = arith.constant 0 : i32
    return %arg0, %c0_i32, %c0_i32_0 : i32, i32, i32
  }
  func.func @transform_19(%arg0: i32) -> (i32, i32) {
    %c0_i32 = arith.constant 0 : i32
    %c0_i32_0 = arith.constant 0 : i32
    %c0_i32_1 = arith.constant 0 : i32
    return %c0_i32, %c0_i32_0 : i32, i32
  }
  func.func @transform_20(%arg0: i32) -> (i32, i32) {
    %c0_i32 = arith.constant 0 : i32
    %c0_i32_0 = arith.constant 0 : i32
    %c0_i32_1 = arith.constant 0 : i32
    return %c0_i32, %c0_i32_0 : i32, i32
  }
  func.func @transform_21(%arg0: i32) -> (i32, i32) {
    %c0_i32 = arith.constant 0 : i32
    %c0_i32_0 = arith.constant 0 : i32
    %c0_i32_1 = arith.constant 0 : i32
    return %c0_i32, %c0_i32_0 : i32, i32
  }
  func.func @transform_22(%arg0: i32) -> (i32, i32) {
    %c0_i32 = arith.constant 0 : i32
    %c0_i32_0 = arith.constant 0 : i32
    %c0_i32_1 = arith.constant 0 : i32
    return %c0_i32, %c0_i32_0 : i32, i32
  }
  func.func @transform_23(%arg0: i32) -> (i32, i32) {
    %c0_i32 = arith.constant 0 : i32
    %c0_i32_0 = arith.constant 0 : i32
    %c0_i32_1 = arith.constant 0 : i32
    return %c0_i32, %c0_i32_0 : i32, i32
  }
  func.func @transform_24(%arg0: i32) -> (i32, i32) {
    %c0_i32 = arith.constant 0 : i32
    %c0_i32_0 = arith.constant 0 : i32
    %c0_i32_1 = arith.constant 0 : i32
    return %c0_i32, %c0_i32_0 : i32, i32
  }
  func.func @transform_25(%arg0: i32) -> (i32, i32) {
    %c0_i32 = arith.constant 0 : i32
    %c0_i32_0 = arith.constant 0 : i32
    %c0_i32_1 = arith.constant 0 : i32
    return %c0_i32, %c0_i32_0 : i32, i32
  }
  func.func @transform_26(%arg0: i32) -> (i32, i32) {
    %c0_i32 = arith.constant 0 : i32
    %c0_i32_0 = arith.constant 0 : i32
    %c0_i32_1 = arith.constant 0 : i32
    return %c0_i32, %c0_i32_0 : i32, i32
  }
  func.func @transform_27(%arg0: i32) -> (i32, i32) {
    %c0_i32 = arith.constant 0 : i32
    %c0_i32_0 = arith.constant 0 : i32
    %c0_i32_1 = arith.constant 0 : i32
    return %c0_i32, %c0_i32_0 : i32, i32
  }
  func.func @transform_28(%arg0: i32) -> (i32, i32) {
    %c0_i32 = arith.constant 0 : i32
    %c0_i32_0 = arith.constant 0 : i32
    %c0_i32_1 = arith.constant 0 : i32
    return %c0_i32, %c0_i32_0 : i32, i32
  }
  func.func @transform_29(%arg0: i32) -> (i32, i32) {
    %c0_i32 = arith.constant 0 : i32
    %c0_i32_0 = arith.constant 0 : i32
    %c0_i32_1 = arith.constant 0 : i32
    return %c0_i32, %c0_i32_0 : i32, i32
  }
  func.func @transform_30(%arg0: i32) -> (i32, i32) {
    %c0_i32 = arith.constant 0 : i32
    %c0_i32_0 = arith.constant 0 : i32
    %c0_i32_1 = arith.constant 0 : i32
    return %c0_i32, %c0_i32_0 : i32, i32
  }
  func.func @transform_31(%arg0: i32) -> (i32, i32) {
    %c0_i32 = arith.constant 0 : i32
    %c0_i32_0 = arith.constant 0 : i32
    %c0_i32_1 = arith.constant 0 : i32
    return %c0_i32, %c0_i32_0 : i32, i32
  }
  func.func @transform_32(%arg0: i32) -> (i32, i32) {
    %c0_i32 = arith.constant 0 : i32
    %c0_i32_0 = arith.constant 0 : i32
    %c0_i32_1 = arith.constant 0 : i32
    return %c0_i32, %c0_i32_0 : i32, i32
  }
  func.func @transform_33(%arg0: i32) -> (i32, i32) {
    %c0_i32 = arith.constant 0 : i32
    %c0_i32_0 = arith.constant 0 : i32
    %c0_i32_1 = arith.constant 0 : i32
    return %c0_i32, %c0_i32_0 : i32, i32
  }
  func.func @transform_34(%arg0: i32) -> (i32, i32) {
    %c0_i32 = arith.constant 0 : i32
    %c0_i32_0 = arith.constant 0 : i32
    %c0_i32_1 = arith.constant 0 : i32
    return %c0_i32, %c0_i32_0 : i32, i32
  }
  func.func @transform_35(%arg0: i32) -> (i32, i32) {
    %c0_i32 = arith.constant 0 : i32
    %c0_i32_0 = arith.constant 0 : i32
    %c0_i32_1 = arith.constant 0 : i32
    return %c0_i32, %c0_i32_0 : i32, i32
  }
  func.func @transform_36(%arg0: i32) -> (i32, i32) {
    %c0_i32 = arith.constant 0 : i32
    %c0_i32_0 = arith.constant 0 : i32
    %c0_i32_1 = arith.constant 0 : i32
    return %c0_i32, %c0_i32_0 : i32, i32
  }
}

</mosaic_0001>

<bundles_post_ra>
// kernel: metaclip_forward.1
= control target key start
LH: loop header
LB: loop body
LE: loop exit
PB: predicated region body
PF: predicated region fallthrough
CT: control target
= control target key end

     0   :  { %s7348_s6 = smov 1   ;;  %s7349_s10 = smov 2   ;;  %s8721_s0 = inlined_call_operand.smem [shape: u32[37], index: -1, kind: input, shape index: {}] }
   0x1   :  { %s7431_s5 = sld [smem:[%s8721_s0]]   ;;  %s7350_s14 = smov 3  }
   0x2   :  { %s7436_s9 = sld [smem:[%s8721_s0 + %s7348_s6]]   ;;  %s7351_s18 = smov 4  }
   0x3   :  { %s7441_s13 = sld [smem:[%s8721_s0 + %s7349_s10]]   ;;  %s7352_s22 = smov 5  }
   0x4   :  { %s7446_s17 = sld [smem:[%s8721_s0 + %s7350_s14]]   ;;  %s7353_s26 = smov 6  }
   0x5   :  { %s7451_s21 = sld [smem:[%s8721_s0 + %s7351_s18]]   ;;  %s7354_s30 = smov 7  }
   0x6   :  { %s7456_s25 = sld [smem:[%s8721_s0 + %s7352_s22]]   ;;  %s7355_s4 = smov 8  }
   0x7   :  { %8771 = sst [smem:[#allocation57_spill]] %s7431_s5  ;;  %s7356_s10 = smov 9  }
   0x8   :  { %8772 = sst [smem:[#allocation58_spill]] %s7436_s9  ;;  %s7357_s15 = smov 10  }
   0x9   :  { %8773 = sst [smem:[#allocation59_spill]] %s7441_s13  ;;  %s7358_s20 = smov 11  }
   0xa   :  { %8774 = sst [smem:[#allocation60_spill]] %s7446_s17  ;;  %s7360_s1 = smov 13  }
   0xb   :  { %8775 = sst [smem:[#allocation61_spill]] %s7451_s21  ;;  %s7361_s7 = smov 14  }
   0xc   :  { %8776 = sst [smem:[#allocation62_spill]] %s7456_s25  ;;  %s7363_s22 = smov 16  }
   0xd   :  { %s7461_s29 = sld [smem:[%s8721_s0 + %s7353_s26]]   ;;  %s7359_s26 = smov 12  }
   0xe   :  { %s7466_s3 = sld [smem:[%s8721_s0 + %s7354_s30]]   ;;  %s7364_s28 = smov 17  }
   0xf   :  { %s7471_s8 = sld [smem:[%s8721_s0 + %s7355_s4]]  }
  0x10   :  { %s7476_s14 = sld [smem:[%s8721_s0 + %s7356_s10]]  }
  0x11   :  { %s7481_s19 = sld [smem:[%s8721_s0 + %s7357_s15]]   ;;  %s7362_s15 = smov 15  }
  0x12   :  { %s7486_s24 = sld [smem:[%s8721_s0 + %s7358_s20]]  }
  0x13   :  { %s7491_s30 = sld [smem:[%s8721_s0 + %s7359_s26]]  }
  0x14   :  { %8777 = sst [smem:[#allocation63_spill]] %s7466_s3 }
  0x15   :  { %8778 = sst [smem:[#allocation64_spill]] %s7471_s8 }
  0x16   :  { %8779 = sst [smem:[#allocation65_spill]] %s7476_s14 }
  0x17   :  { %8780 = sst [smem:[#allocation66_spill]] %s7481_s19 }
  0x18   :  { %8781 = sst [smem:[#allocation67_spill]] %s7486_s24 }
  0x19   :  { %8782 = sst [smem:[#allocation68_spill]] %s7491_s30 }
  0x1a   :  { %s7496_s6 = sld [smem:[%s8721_s0 + %s7360_s1]]  }
  0x1b   :  { %s7501_s12 = sld [smem:[%s8721_s0 + %s7361_s7]]   ;;  %s7365_s7 = smov 18  }
  0x1c   :  { %s7506_s20 = sld [smem:[%s8721_s0 + %s7362_s15]]   ;;  %s7366_s15 = smov 19  }
  0x1d   :  { %s7511_s27 = sld [smem:[%s8721_s0 + %s7363_s22]]   ;;  %s7367_s22 = smov 20  }
  0x1e   :  { %s7516_s4 = sld [smem:[%s8721_s0 + %s7364_s28]]   ;;  %s7368_s28 = smov 21  }
  0x1f   :  { %s7521_s21 = sld [smem:[%s8721_s0 + %s7365_s7]]   ;;  %s7369_s7 = smov 22  }
  0x20   :  { %8783 = sst [smem:[#allocation69_spill]] %s7496_s6 }
  0x21   :  { %8784 = sst [smem:[#allocation70_spill]] %s7501_s12 }
  0x22   :  { %s7526_s17 = sld [smem:[%s8721_s0 + %s7366_s15]]   ;;  %s7370_s15 = smov 23  }
  0x23   :  { %8785 = sst [smem:[#allocation71_spill]] %s7511_s27 }
  0x24   :  { %8786 = sst [smem:[#allocation72_spill]] %s7516_s4 }
  0x25   :  { %8787 = sst [smem:[#allocation73_spill]] %s7521_s21 }
  0x26   :  { %s7531_s13 = sld [smem:[%s8721_s0 + %s7367_s22]]   ;;  %s7371_s22 = smov 24  }
  0x27   :  { %s7536_s5 = sld [smem:[%s8721_s0 + %s7368_s28]]   ;;  %s7372_s28 = smov 25  }
  0x28   :  { %8788 = sst [smem:[#allocation74_spill]] %s7526_s17 }
  0x29   :  { %s7541_s19 = sld [smem:[%s8721_s0 + %s7369_s7]]   ;;  %s7373_s7 = smov 26  }
  0x2a   :  { %s7546_s27 = sld [smem:[%s8721_s0 + %s7370_s15]]   ;;  %s7374_s15 = smov 27  }
  0x2b   :  { %s7551_s14 = sld [smem:[%s8721_s0 + %s7371_s22]]   ;;  %s7375_s22 = smov 28  }
  0x2c   :  { %8789 = sst [smem:[#allocation75_spill]] %s7531_s13 }
  0x2d   :  { %8790 = sst [smem:[#allocation76_spill]] %s7536_s5 }
  0x2e   :  { %s7556_s5 = sld [smem:[%s8721_s0 + %s7372_s28]]   ;;  %s7376_s28 = smov 29  }
  0x2f   :  { %8791 = sst [smem:[#allocation77_spill]] %s7541_s19 }
  0x30   :  { %8792 = sst [smem:[#allocation78_spill]] %s7546_s27 }
  0x31   :  { %8793 = sst [smem:[#allocation79_spill]] %s7551_s14 }
  0x32   :  { %s7561_s30 = sld [smem:[%s8721_s0 + %s7373_s7]]   ;;  %s7377_s7 = smov 30  }
  0x33   :  { %s7566_s8 = sld [smem:[%s8721_s0 + %s7374_s15]]   ;;  %s7378_s15 = smov 31  }
  0x34   :  { %8794 = sst [smem:[#allocation80_spill]] %s7556_s5 }
  0x35   :  { %s7571_s3 = sld [smem:[%s8721_s0 + %s7375_s22]]   ;;  %s7379_s22 = smov 32  }
  0x36   :  { %s7576_s21 = sld [smem:[%s8721_s0 + %s7376_s28]]   ;;  %s7380_s28 = smov 33  }
  0x37   :  { %s7581_s6 = sld [smem:[%s8721_s0 + %s7377_s7]]   ;;  %s7381_s7 = smov 34  }
  0x38   :  { %8795 = sst [smem:[#allocation81_spill]] %s7561_s30 }
  0x39   :  { %8796 = sst [smem:[#allocation82_spill]] %s7566_s8 }
  0x3a   :  { %s7586_s8 = sld [smem:[%s8721_s0 + %s7378_s15]]   ;;  %s7382_s15 = smov 35  }
  0x3b   :  { %8797 = sst [smem:[#allocation83_spill]] %s7571_s3 }
  0x3c   :  { %8798 = sst [smem:[#allocation84_spill]] %s7576_s21 }
  0x3d   :  { %8799 = sst [smem:[#allocation85_spill]] %s7581_s6 }
  0x3e   :  { %s7591_s5 = sld [smem:[%s8721_s0 + %s7379_s22]]   ;;  %s7383_s22 = smov 36  }
  0x3f   :  { %s7596_s21 = sld [smem:[%s8721_s0 + %s7380_s28]]  }
  0x40   :  { %8800 = sst [smem:[#allocation86_spill]] %s7586_s8 }
  0x41   :  { %s7601_s27 = sld [smem:[%s8721_s0 + %s7381_s7]]  }
  0x42   :  { %s7606_s8 = sld [smem:[%s8721_s0 + %s7382_s15]]  }
  0x43   :  { %s7611_s13 = sld [smem:[%s8721_s0 + %s7383_s22]]  }
  0x44   :  { %8801 = sst [smem:[#allocation87_spill]] %s7591_s5 }
  0x47   :  { %8802 = sst [smem:[#allocation88_spill]] %s7601_s27 }
  0x49   :  { %8803 = sst [smem:[#allocation89_spill]] %s7611_s13 }
  0x4a   :  { %79 = vsyncpa [#allocation4], 0 }
  0x4b   :  { %80 = vsyncpa [#allocation7], 0 }
  0x4c   :  { %81 = vsyncpa [#allocation10], 0 }
  0x4d   :  { %83 = vsyncpa [#allocation10 + $0x1], 0 }
  0x4e   :  { %84 = vsyncpa [#allocation13], 0 }
  0x4f   :  { %86 = vsyncpa [#allocation13 + $0x1], 0 }
  0x50   :  { %87 = vsyncpa [#allocation16], 0 }
  0x51   :  { %89 = vsyncpa [#allocation16 + $0x1], 0 }
  0x52   :  { %90 = vsyncpa [#allocation19], 0 }
  0x53   :  { %91 = vsyncpa [#allocation22], 0 }
  0x54   :  { %92 = vsyncpa [#allocation25], 0 }
  0x55   :  { %93 = vsyncpa [#allocation28], 0 }
  0x56   :  { %94 = vsyncpa [#allocation31], 0 }
  0x57   :  { %95 = vsyncpa [#allocation34], 0 }
  0x58   :  { %96 = vsyncpa [#allocation37], 0 }
  0x59   :  { %97 = vsyncpa [#allocation5], 0 }
  0x5a   :  { %98 = vsyncpa [#allocation41], 0  ;;  %s7613_s28 = smov 0   ;;  %s7615_s0 = smov 0  }
  0x5b   :  { %s7617_s1 = smov 0   ;;  %s7619_s2 = smov 0  }
  0x5c LB: > { %s8804_s9 = sld [smem:[#allocation58_spill]]  ;;  %s8805_s4 = sld [smem:[#allocation72_spill]]  ;;  %s7346_s2 = sphi %s7619_s2, %s8889_s2   ;;  %s7342_s1 = sphi %s7617_s1, %s8891_s1   ;;  %s7338_s0 = sphi %s7615_s0, %s8893_s0   ;;  %s7334_s28 = sphi %s7613_s28, %s8892_s28  }
  0x5d   : > { %s8806_s12 = sld [smem:[#allocation70_spill]]  ;;  %s8807_s24 = sld [smem:[#allocation67_spill]] }
  0x5e   : > { %s8808_s30 = sld [smem:[#allocation81_spill]]  ;;  %s8809_s19 = sld [smem:[#allocation77_spill]] }
  0x5f   : > { %s8810_s6 = sld [smem:[#allocation85_spill]]  ;;  %s8811_s5 = sld [smem:[#allocation87_spill]] }
  0x60   : > { %s8812_s3 = sld [smem:[#allocation83_spill]]  ;;  %s8813_s14 = sld [smem:[#allocation79_spill]] }
  0x61   : > { %s8814_s25 = sld [smem:[#allocation62_spill]]  ;;  %s8815_s17 = sld [smem:[#allocation74_spill]] }
  0x62   : > { %8816 = sst [smem:[#allocation90_spill]] %s7342_s1  ;;  %s7384_s7 = smov [#allocation6]  }
  0x63   : > { %s984_s10 = sshll.u32 %s7384_s7, 4  ;;  %s7634_s11 = sadd.s32 4294967295, %s7346_s2   ;;  %s985_s10 = int_to_ptr.vmem [resolvable:$true] %s984_s10 }
  0x64   : > { %p5067_p0 = scmp.ge.s32.totalorder %s7346_s2, 1  ;;  %p8733_p1 = scmp.eq.s32.totalorder %s7634_s11, 0 }
  0x65   : > { %p946_p2 = scmp.lt.s32.totalorder %s7346_s2, 3  ;;  %s7385_s16 = smov [#allocation18]  }
  0x66   : > { %s1006_s18 = sshll.u32 %s7385_s16, 4  ;;  %s7386_s22 = smov [#allocation21]   ;;  %s7646_s18 = int_to_ptr.vmem [resolvable:$true] %s1006_s18 }
  0x67   : > { %p7640_p4 = pnand %p5067_p0, %p946_p2  ;;  %s1031_s23 = sshll.u32 %s7386_s22, 4  ;;  %s7654_s23 = int_to_ptr.vmem [resolvable:$true] %s1031_s23 }
  0x68   : > { %s6526_s7 = scalar_lea.hbm %s8814_s25, 16 }
  0x69   : > { %s8817_s15 = scalar_select %p7640_p4, 1, 0 }
  0x6a   : > { %p6214_p5 = pneg %p7640_p4  ;;  %p6527_p7 = scmp.ne.s32.totalorder %s8814_s25, %s6526_s7 }
  0x6b   : > { %p6533_p11 = scmp.lt.u32.totalorder %s6526_s7, %s8814_s25 }
  0x6c   : > { %p7650_p6 = pnand %p6214_p5, %p8733_p1 }
  0x6e   : > { %s8818_s26 = scalar_select %p7650_p6, 1, 0 }
  0x6f   : > { %p7660_p8 = pneg %p7650_p6 }
  0x71   : > { %s8819_s13 = scalar_select %p7660_p8, 1, 0 }
  0x72   : > { %p6529_p9 = pnand %p7660_p8, %p6527_p7 }
  0x74   : > { %p6530_p10 = pneg %p6529_p9 }
  0x76   : > { %p6535_p12 = pnand %p6533_p11, %p6530_p10 }
  0x78   : > { %6538 = shalt.err (!%p6535_p12)
}
  0x79   : > { %s6539_s16 = scalar_lea.vmem %s985_s10, 16  ;;  %s6546_s22 = scalar_lea.vmem %s985_s10, 32 }
  0x7a   : > { %p6540_p13 = scmp.ne.s32.totalorder %s985_s10, %s6539_s16  ;;  %p6547_p5 = scmp.lt.s32.totalorder %s985_s10, %s985_s10 }
  0x7b   : > { %p6548_p3 = scmp.lt.s32.totalorder %s6546_s22, %s6539_s16 }
  0x7c   : > { %p6542_p0 = pnand %p6540_p13, %p7660_p8 }
  0x7d   : > { %p6549_p1 = por %p6548_p3, %p6547_p5 }
  0x7e   : > { %p6543_p2 = pneg %p6542_p0 }
  0x80   : > { %p6550_p4 = pnand %p6549_p1, %p6543_p2 }
  0x82   : > { %6553 = shalt.err (!%p6550_p4)
}
  0x83   : > { %6220 = dma.hbm_to_vmem [thread:$0]  (!%p7650_p6), %s8814_s25, 16, %s985_s10, [#allocation7]  }
  0x84   : > { %s6554_s7 = scalar_lea.hbm %s8815_s17, 16 }
  0x85   : > { %p6555_p7 = scmp.ne.s32.totalorder %s8815_s17, %s6554_s7  ;;  %p6561_p11 = scmp.lt.u32.totalorder %s6554_s7, %s8815_s17 }
  0x87   : > { %p6557_p9 = pnand %p6555_p7, %p7660_p8 }
  0x89   : > { %p6558_p10 = pneg %p6557_p9 }
  0x8b   : > { %p6563_p12 = pnand %p6561_p11, %p6558_p10 }
  0x8d   : > { %6566 = shalt.err (!%p6563_p12)
}
  0x8e   : > { %s6567_s16 = scalar_lea.vmem %s7646_s18, 16  ;;  %s6574_s22 = scalar_lea.vmem %s7646_s18, 32 }
  0x8f   : > { %p6568_p1 = scmp.ne.s32.totalorder %s7646_s18, %s6567_s16  ;;  %p6575_p13 = scmp.lt.s32.totalorder %s7646_s18, %s7646_s18 }
  0x90   : > { %p6576_p0 = scmp.lt.s32.totalorder %s6574_s22, %s6567_s16 }
  0x91   : > { %p6570_p3 = pnand %p6568_p1, %p7660_p8 }
  0x92   : > { %p6577_p2 = por %p6576_p0, %p6575_p13 }
  0x93   : > { %p6571_p4 = pneg %p6570_p3 }
  0x95   : > { %p6578_p5 = pnand %p6577_p2, %p6571_p4 }
  0x97   : > { %6581 = shalt.err (!%p6578_p5)
}
  0x98   : > { %6226 = dma.hbm_to_vmem [thread:$0]  (!%p7650_p6), %s8815_s17, 16, %s7646_s18, [#allocation19]  }
  0x99   : > { %s6582_s10 = scalar_lea.hbm %s8809_s19, 16 }
  0x9a   : > { %p6583_p7 = scmp.ne.s32.totalorder %s8809_s19, %s6582_s10  ;;  %p6589_p11 = scmp.lt.u32.totalorder %s6582_s10, %s8809_s19 }
  0x9c   : > { %p6585_p9 = pnand %p6583_p7, %p7660_p8 }
  0x9e   : > { %p6586_p10 = pneg %p6585_p9 }
  0xa0   : > { %p6591_p12 = pnand %p6589_p11, %p6586_p10 }
  0xa2   : > { %6594 = shalt.err (!%p6591_p12)
}
  0xa3   : > { %s6595_s7 = scalar_lea.vmem %s7654_s23, 16  ;;  %s6602_s16 = scalar_lea.vmem %s7654_s23, 32 }
  0xa4   : > { %p6596_p1 = scmp.ne.s32.totalorder %s7654_s23, %s6595_s7  ;;  %p6603_p13 = scmp.lt.s32.totalorder %s7654_s23, %s7654_s23 }
  0xa5   : > { %p6604_p0 = scmp.lt.s32.totalorder %s6602_s16, %s6595_s7 }
  0xa6   : > { %p6598_p3 = pnand %p6596_p1, %p7660_p8 }
  0xa7   : > { %p6605_p2 = por %p6604_p0, %p6603_p13 }
  0xa8   : > { %p6599_p4 = pneg %p6598_p3 }
  0xaa   : > { %p6606_p5 = pnand %p6605_p2, %p6599_p4 }
  0xac   : > { %6609 = shalt.err (!%p6606_p5)
}
  0xad   : > { %6232 = dma.hbm_to_vmem [thread:$0]  (!%p7650_p6), %s8809_s19, 16, %s7654_s23, [#allocation22]  }
  0xae   : > { %s7387_s18 = smov [#allocation24]   ;;  %s7388_s10 = smov [#allocation27]  }
  0xaf   : > { %s1052_s22 = sshll.u32 %s7387_s18, 4  ;;  %s1076_s17 = sshll.u32 %s7388_s10, 4  ;;  %s1053_s22 = int_to_ptr.vmem [resolvable:$true] %s1052_s22  ;;  %s1077_s17 = int_to_ptr.vmem [resolvable:$true] %s1076_s17 }
  0xb0   : > { %s6610_s25 = scalar_lea.hbm %s8813_s14, 2048 }
  0xb1   : > { %p6611_p7 = scmp.ne.s32.totalorder %s8813_s14, %s6610_s25  ;;  %p6617_p11 = scmp.lt.u32.totalorder %s6610_s25, %s8813_s14 }
  0xb3   : > { %p6613_p9 = pnand %p6611_p7, %p7660_p8 }
  0xb5   : > { %p6614_p10 = pneg %p6613_p9 }
  0xb7   : > { %p6619_p12 = pnand %p6617_p11, %p6614_p10 }
  0xb9   : > { %6622 = shalt.err (!%p6619_p12)
}
  0xba   : > { %s6623_s7 = scalar_lea.vmem %s1053_s22, 2048  ;;  %p6631_p13 = scmp.lt.s32.totalorder %s1053_s22, %s1053_s22 }
  0xbb   : > { %p6624_p1 = scmp.ne.s32.totalorder %s1053_s22, %s6623_s7  ;;  %p6632_p0 = scmp.lt.s32.totalorder %s6623_s7, %s6623_s7 }
  0xbd   : > { %p6626_p3 = pnand %p6624_p1, %p7660_p8  ;;  %p6633_p2 = por %p6632_p0, %p6631_p13 }
  0xbf   : > { %p6627_p4 = pneg %p6626_p3 }
  0xc1   : > { %p6634_p5 = pnand %p6633_p2, %p6627_p4 }
  0xc3   : > { %6637 = shalt.err (!%p6634_p5)
}
  0xc4   : > { %s8738_s23 = smov 128   ;;  %s8740_s25 = smov 8  }
  0xc5   : > { %6238 = dma.hbm_to_vmem [thread:$0]  (!%p7650_p6), %s8813_s14, 2048, %s1053_s22, [#allocation25], %s8738_s23, %s8738_s23, %s8740_s25  }
  0xc6   : > { %s6638_s16 = scalar_lea.hbm %s8808_s30, 2048 }
  0xc7   : > { %p6639_p7 = scmp.ne.s32.totalorder %s8808_s30, %s6638_s16  ;;  %p6645_p11 = scmp.lt.u32.totalorder %s6638_s16, %s8808_s30 }
  0xc9   : > { %p6641_p9 = pnand %p6639_p7, %p7660_p8 }
  0xcb   : > { %p6642_p10 = pneg %p6641_p9 }
  0xcd   : > { %p6647_p12 = pnand %p6645_p11, %p6642_p10 }
  0xcf   : > { %6650 = shalt.err (!%p6647_p12)
}
  0xd0   : > { %s6651_s18 = scalar_lea.vmem %s1077_s17, 2048  ;;  %p6659_p13 = scmp.lt.s32.totalorder %s1077_s17, %s1077_s17 }
  0xd1   : > { %p6652_p1 = scmp.ne.s32.totalorder %s1077_s17, %s6651_s18  ;;  %p6660_p0 = scmp.lt.s32.totalorder %s6651_s18, %s6651_s18 }
  0xd3   : > { %p6654_p3 = pnand %p6652_p1, %p7660_p8  ;;  %p6661_p2 = por %p6660_p0, %p6659_p13 }
  0xd5   : > { %p6655_p4 = pneg %p6654_p3 }
  0xd7   : > { %p6662_p5 = pnand %p6661_p2, %p6655_p4 }
  0xd9   : > { %6665 = shalt.err (!%p6662_p5)
}
  0xda   : > { %6244 = dma.hbm_to_vmem [thread:$0]  (!%p7650_p6), %s8808_s30, 2048, %s1077_s17, [#allocation28], %s8738_s23, %s8738_s23, %s8740_s25  }
  0xdb   : > { %s7391_s22 = smov [#allocation30]   ;;  %s7392_s7 = smov [#allocation33]  }
  0xdc   : > { %s1101_s10 = sshll.u32 %s7391_s22, 4  ;;  %s1122_s16 = sshll.u32 %s7392_s7, 4  ;;  %s1102_s10 = int_to_ptr.vmem [resolvable:$true] %s1101_s10  ;;  %s1123_s16 = int_to_ptr.vmem [resolvable:$true] %s1122_s16 }
  0xdd   : > { %s6666_s18 = scalar_lea.hbm %s8812_s3, 16 }
  0xde   : > { %p6667_p7 = scmp.ne.s32.totalorder %s8812_s3, %s6666_s18  ;;  %p6673_p11 = scmp.lt.u32.totalorder %s6666_s18, %s8812_s3 }
  0xe0   : > { %p6669_p9 = pnand %p6667_p7, %p7660_p8 }
  0xe2   : > { %p6670_p10 = pneg %p6669_p9 }
  0xe4   : > { %p6675_p12 = pnand %p6673_p11, %p6670_p10 }
  0xe6   : > { %6678 = shalt.err (!%p6675_p12)
}
  0xe7   : > { %s6679_s14 = scalar_lea.vmem %s1102_s10, 16  ;;  %s6686_s17 = scalar_lea.vmem %s1102_s10, 32 }
  0xe8   : > { %p6680_p1 = scmp.ne.s32.totalorder %s1102_s10, %s6679_s14  ;;  %p6687_p13 = scmp.lt.s32.totalorder %s1102_s10, %s1102_s10 }
  0xe9   : > { %p6688_p0 = scmp.lt.s32.totalorder %s6686_s17, %s6679_s14 }
  0xea   : > { %p6682_p3 = pnand %p6680_p1, %p7660_p8 }
  0xeb   : > { %p6689_p2 = por %p6688_p0, %p6687_p13 }
  0xec   : > { %p6683_p4 = pneg %p6682_p3 }
  0xee   : > { %p6690_p5 = pnand %p6689_p2, %p6683_p4 }
  0xf0   : > { %6693 = shalt.err (!%p6690_p5)
}
  0xf1   : > { %6250 = dma.hbm_to_vmem [thread:$0]  (!%p7650_p6), %s8812_s3, 16, %s1102_s10, [#allocation31]  }
  0xf2   : > { %s6694_s22 = scalar_lea.hbm %s8810_s6, 2048 }
  0xf3   : > { %p6695_p7 = scmp.ne.s32.totalorder %s8810_s6, %s6694_s22  ;;  %p6701_p11 = scmp.lt.u32.totalorder %s6694_s22, %s8810_s6 }
  0xf5   : > { %p6697_p9 = pnand %p6695_p7, %p7660_p8 }
  0xf7   : > { %p6698_p10 = pneg %p6697_p9 }
  0xf9   : > { %p6703_p12 = pnand %p6701_p11, %p6698_p10 }
  0xfb   : > { %6706 = shalt.err (!%p6703_p12)
}
  0xfc   : > { %s6707_s14 = scalar_lea.vmem %s1123_s16, 2048  ;;  %p6715_p13 = scmp.lt.s32.totalorder %s1123_s16, %s1123_s16 }
  0xfd   : > { %p6708_p1 = scmp.ne.s32.totalorder %s1123_s16, %s6707_s14  ;;  %p6716_p0 = scmp.lt.s32.totalorder %s6707_s14, %s6707_s14 }
  0xff   : > { %p6710_p3 = pnand %p6708_p1, %p7660_p8  ;;  %p6717_p2 = por %p6716_p0, %p6715_p13 }
 0x101   : > { %p6711_p4 = pneg %p6710_p3 }
 0x103   : > { %p6718_p5 = pnand %p6717_p2, %p6711_p4 }
 0x105   : > { %6721 = shalt.err (!%p6718_p5)
}
 0x106   : > { %6256 = dma.hbm_to_vmem [thread:$0]  (!%p7650_p6), %s8810_s6, 2048, %s1123_s16, [#allocation34], %s8738_s23, %s8738_s23, %s8740_s25  }
 0x107   : > { %s7393_s10 = smov [#allocation36]   ;;  %s6722_s18 = scalar_lea.hbm %s8811_s5, 2048 }
 0x108   : > { %s1146_s7 = sshll.u32 %s7393_s10, 4  ;;  %p6723_p7 = scmp.ne.s32.totalorder %s8811_s5, %s6722_s18  ;;  %s1147_s7 = int_to_ptr.vmem [resolvable:$true] %s1146_s7 }
 0x109   : > { %p6729_p11 = scmp.lt.u32.totalorder %s6722_s18, %s8811_s5 }
 0x10a   : > { %p6725_p9 = pnand %p6723_p7, %p7660_p8 }
 0x10c   : > { %p6726_p10 = pneg %p6725_p9 }
 0x10e   : > { %p6731_p12 = pnand %p6729_p11, %p6726_p10 }
 0x110   : > { %6734 = shalt.err (!%p6731_p12)
}
 0x111   : > { %s6735_s17 = scalar_lea.vmem %s1147_s7, 2048  ;;  %p6743_p13 = scmp.lt.s32.totalorder %s1147_s7, %s1147_s7 }
 0x112   : > { %p6736_p1 = scmp.ne.s32.totalorder %s1147_s7, %s6735_s17  ;;  %p6744_p0 = scmp.lt.s32.totalorder %s6735_s17, %s6735_s17 }
 0x114   : > { %p6738_p3 = pnand %p6736_p1, %p7660_p8  ;;  %p6745_p2 = por %p6744_p0, %p6743_p13 }
 0x116   : > { %p6739_p4 = pneg %p6738_p3 }
 0x118   : > { %p6746_p5 = pnand %p6745_p2, %p6739_p4 }
 0x11a   : > { %6749 = shalt.err (!%p6746_p5)
}
 0x11b   : > { %6262 = dma.hbm_to_vmem [thread:$0]  (!%p7650_p6), %s8811_s5, 2048, %s1147_s7, [#allocation37], %s8738_s23, %s8738_s23, %s8740_s25  }
 0x11c   : > { %s7767_s16 = sadd.s32 1, %s7346_s2   ;;  %s362_s22 = sadd.s32 1, %s7342_s1 }
 0x11d   : > { %8820 = sst [smem:[#allocation91_spill]] %s7767_s16  ;;  %s359_s14 = ssub.s32 %s7346_s2, %s7767_s16 }
 0x11e   : > { %p369_p7 = scmp.ne.s32.totalorder %s7342_s1, %s7338_s0  ;;  %p360_p9 = scmp.eq.s32.totalorder %s359_s14, 0 }
 0x11f   : > { %p370_p10 = scmp.eq.s32.totalorder %s7346_s2, 0  ;;  %p375_p11 = scmp.ne.s32.totalorder %s7338_s0, %s7334_s28 }
 0x120   : > { %p6302_p12 = scmp.lt.s32.totalorder %s7346_s2, 2  ;;  %p8822_p3 = scmp.eq.s32.totalorder %s7634_s11, 0 }
 0x121   : > { %s7779_s10 = scalar_select %p360_p9, %s7342_s1, %s362_s22  }
 0x122   : > { %p371_p1 = por %p370_p10, %p369_p7  ;;  %p7783_p4 = por %p8822_p3, %p375_p11 }
 0x123   : > { %8821 = sst [smem:[#allocation92_spill]] %s7779_s10  ;;  %s7788_s7 = sand.u32 1, %s7346_s2  }
 0x124   : > { %s8823_s18 = scalar_select %p7783_p4, 1, 0 }
 0x125   : > { %s7791_s17 = sand.u32 1, %s7342_s1   ;;  %s5183_s23 = sshll.u32 %s7346_s2, 11 }
 0x126   : > { %s5086_s14 = sshll.u32 %s7791_s17, 7  ;;  %s7796_s28 = scalar_lea.hbm %s8807_s24, %s5183_s23 }
 0x127   : > { %s1202_s22 = scalar_lea.vmem [#allocation9], %s5086_s14  ;;  %p7800_p13 = pnand %p6302_p12, %p371_p1 }
 0x128   : > { %s1209_s25 = sshll.u32 %s1202_s22, 4  ;;  %s7805_s5 = sshll.u32 %s7346_s2, 4  ;;  %s7798_s25 = int_to_ptr.vmem [resolvable:$true] %s1209_s25 }
 0x129   : > { %s8824_s3 = scalar_select %p7800_p13, 1, 0 }
 0x12a   : > { %s6750_s19 = scalar_lea.hbm %s7796_s28, 2048  ;;  %p7812_p2 = pneg %p7800_p13 }
 0x12b   : > { %p6751_p0 = scmp.ne.s32.totalorder %s7796_s28, %s6750_s19  ;;  %s6755_s14 = scalar_lea.hbm %s8807_s24, 4096 }
 0x12c   : > { %s8825_s23 = scalar_select %p7812_p2, 1, 0 }
 0x12d   : > { %p6753_p5 = pnand %p7812_p2, %p6751_p0  ;;  %p6756_p9 = scmp.lt.u32.totalorder %s7796_s28, %s8807_s24 }
 0x12e   : > { %p6757_p10 = scmp.lt.u32.totalorder %s6755_s14, %s6750_s19  ;;  %p6759_p12 = scmp.lt.u32.totalorder %s6750_s19, %s7796_s28 }
 0x12f   : > { %p6754_p7 = pneg %p6753_p5 }
 0x130   : > { %p6758_p11 = por %p6757_p10, %p6756_p9 }
 0x132   : > { %p6760_p1 = por %p6759_p12, %p6758_p11 }
 0x134   : > { %p6761_p3 = pnand %p6760_p1, %p6754_p7 }
 0x136   : > { %6764 = shalt.err (!%p6761_p3)
}
 0x137   : > { %s6765_s22 = scalar_lea.vmem %s7798_s25, 2048  ;;  %s7394_s6 = smov [#allocation9]  }
 0x138   : > { %p6766_p4 = scmp.ne.s32.totalorder %s7798_s25, %s6765_s22  ;;  %s6770_s30 = sshll.u32 %s7394_s6, 4  ;;  %s6771_s30 = int_to_ptr.vmem [resolvable:$false] %s6770_s30 }
 0x139   : > { %s6772_s10 = scalar_lea.vmem %s6771_s30, 4096  ;;  %p6773_p0 = scmp.lt.s32.totalorder %s7798_s25, %s6771_s30 }
 0x13a   : > { %p6768_p6 = pnand %p6766_p4, %p7812_p2  ;;  %p6774_p5 = scmp.lt.s32.totalorder %s6772_s10, %s6765_s22 }
 0x13c   : > { %p6769_p8 = pneg %p6768_p6  ;;  %p6775_p9 = por %p6774_p5, %p6773_p0 }
 0x13e   : > { %p6776_p10 = pnand %p6775_p9, %p6769_p8 }
 0x140   : > { %6779 = shalt.err (!%p6776_p10)
}
 0x141   : > { %s8826_s19 = smov 8   ;;  %s8827_s14 = smov 128  }
 0x142   : > { %s8828_s24 = scalar_lea.sflag [#allocation10], %s7788_s7  ;;  %s7838_s30 = scalar_lea.hbm %s8806_s12, %s7805_s5 }
 0x143   : > { %6269 = dma.hbm_to_vmem [thread:$0]  (!%p7800_p13), %s7796_s28, 2048, %s7798_s25, %s8828_s24, %s8827_s14, %s8827_s14, %s8826_s19  }
 0x144   : > { %s1245_s6 = scalar_lea.vmem [#allocation12], %s7791_s17  ;;  %s5091_s22 = sshll.u32 %s7791_s17, 9 }
 0x145   : > { %s1252_s10 = sshll.u32 %s1245_s6, 4  ;;  %s8758_s1 = scalar_lea.sflag [#allocation13], %s7788_s7  ;;  %s7841_s10 = int_to_ptr.vmem [resolvable:$true] %s1252_s10 }
 0x146   : > { %s6780_s16 = scalar_lea.hbm %s7838_s30, 16  ;;  %s6785_s27 = scalar_lea.hbm %s8806_s12, 32 }
 0x147   : > { %p6781_p6 = scmp.ne.s32.totalorder %s7838_s30, %s6780_s16  ;;  %p6786_p7 = scmp.lt.u32.totalorder %s7838_s30, %s8806_s12 }
 0x148   : > { %p6787_p11 = scmp.lt.u32.totalorder %s6785_s27, %s6780_s16  ;;  %p6789_p1 = scmp.lt.u32.totalorder %s6780_s16, %s7838_s30 }
 0x149   : > { %p6783_p8 = pnand %p6781_p6, %p7812_p2 }
 0x14a   : > { %p6788_p12 = por %p6787_p11, %p6786_p7 }
 0x14b   : > { %p6784_p4 = pneg %p6783_p8 }
 0x14c   : > { %p6790_p3 = por %p6789_p1, %p6788_p12 }
 0x14e   : > { %p6791_p0 = pnand %p6790_p3, %p6784_p4 }
 0x150   : > { %6794 = shalt.err (!%p6791_p0)
}
 0x151   : > { %s6795_s24 = scalar_lea.vmem %s7841_s10, 16  ;;  %s7395_s25 = smov [#allocation12]  }
 0x152   : > { %p6796_p5 = scmp.ne.s32.totalorder %s7841_s10, %s6795_s24  ;;  %s6800_s28 = sshll.u32 %s7395_s25, 4  ;;  %s6801_s28 = int_to_ptr.vmem [resolvable:$false] %s6800_s28 }
 0x153   : > { %s6802_s6 = scalar_lea.vmem %s6801_s28, 32  ;;  %p6803_p6 = scmp.lt.s32.totalorder %s7841_s10, %s6801_s28 }
 0x154   : > { %p6798_p9 = pnand %p6796_p5, %p7812_p2  ;;  %p6804_p8 = scmp.lt.s32.totalorder %s6802_s6, %s6795_s24 }
 0x156   : > { %p6799_p10 = pneg %p6798_p9  ;;  %p6805_p7 = por %p6804_p8, %p6803_p6 }
 0x158   : > { %p6806_p11 = pnand %p6805_p7, %p6799_p10 }
 0x15a   : > { %6809 = shalt.err (!%p6806_p11)
}
 0x15b   : > { %6275 = dma.hbm_to_vmem [thread:$0]  (!%p7800_p13), %s7838_s30, 16, %s7841_s10, %s8758_s1  }
 0x15c   : > { %s5184_s27 = sshll.u32 %s7346_s2, 13  ;;  %s1263_s24 = scalar_lea.vmem [#allocation14], %s5091_s22 }
 0x15d   : > { %s7866_s16 = scalar_lea.hbm %s7506_s20, %s5184_s27  ;;  %s1270_s25 = sshll.u32 %s1263_s24, 4  ;;  %s7870_s25 = int_to_ptr.vmem [resolvable:$true] %s1270_s25 }
 0x15e   : > { %s7873_s28 = scalar_lea.hbm %s8805_s4, %s5184_s27  ;;  %s1291_s6 = scalar_lea.vmem [#allocation15], %s5091_s22 }
 0x15f   : > { %s1298_s12 = sshll.u32 %s1291_s6, 4  ;;  %s7396_s2 = smov [#allocation3]   ;;  %s7877_s12 = int_to_ptr.vmem [resolvable:$true] %s1298_s12 }
 0x160   : > { %s7879_s30 = sshll.u32 %s7396_s2, 4  ;;  %s8763_s10 = scalar_lea.sflag [#allocation16], %s7788_s7  ;;  %s962_s30 = int_to_ptr.vmem [resolvable:$true] %s7879_s30 }
 0x161   : > { %s6810_s1 = scalar_lea.hbm %s7873_s28, 8192  ;;  %s6815_s27 = scalar_lea.hbm %s8805_s4, 16384 }
 0x162   : > { %p6811_p4 = scmp.ne.s32.totalorder %s7873_s28, %s6810_s1  ;;  %p6816_p3 = scmp.lt.u32.totalorder %s7873_s28, %s8805_s4 }
 0x163   : > { %p6817_p0 = scmp.lt.u32.totalorder %s6815_s27, %s6810_s1  ;;  %p6819_p9 = scmp.lt.u32.totalorder %s6810_s1, %s7873_s28 }
 0x164   : > { %p6813_p12 = pnand %p6811_p4, %p7812_p2 }
 0x165   : > { %p6818_p5 = por %p6817_p0, %p6816_p3 }
 0x166   : > { %p6814_p1 = pneg %p6813_p12 }
 0x167   : > { %p6820_p10 = por %p6819_p9, %p6818_p5 }
 0x169   : > { %p6821_p6 = pnand %p6820_p10, %p6814_p1 }
 0x16b   : > { %6824 = shalt.err (!%p6821_p6)
}
 0x16c   : > { %s6825_s22 = scalar_lea.vmem %s7877_s12, 8192  ;;  %s7397_s24 = smov [#allocation15]  }
 0x16d   : > { %p6826_p8 = scmp.ne.s32.totalorder %s7877_s12, %s6825_s22  ;;  %s6830_s6 = sshll.u32 %s7397_s24, 4  ;;  %s6831_s6 = int_to_ptr.vmem [resolvable:$false] %s6830_s6 }
 0x16e   : > { %s6832_s2 = scalar_lea.vmem %s6831_s6, 16384  ;;  %p6833_p4 = scmp.lt.s32.totalorder %s7877_s12, %s6831_s6 }
 0x16f   : > { %p6828_p7 = pnand %p6826_p8, %p7812_p2  ;;  %p6834_p12 = scmp.lt.s32.totalorder %s6832_s2, %s6825_s22 }
 0x171   : > { %p6829_p11 = pneg %p6828_p7  ;;  %p6835_p3 = por %p6834_p12, %p6833_p4 }
 0x173   : > { %p6836_p0 = pnand %p6835_p3, %p6829_p11 }
 0x175   : > { %6839 = shalt.err (!%p6836_p0)
}
 0x176   : > { %6281 = dma.hbm_to_vmem [thread:$0]  (!%p7800_p13), %s7873_s28, 8192, %s7877_s12, %s8763_s10, %s8827_s14, %s8827_s14, %s8826_s19  }
 0x177   : > { %s6840_s1 = scalar_lea.hbm %s8804_s9, 3072  ;;  %p8829_p5 = scmp.ne.s32.totalorder %s8819_s13, 0 }
 0x178   : > { %p6841_p1 = scmp.ne.s32.totalorder %s8804_s9, %s6840_s1  ;;  %p6847_p6 = scmp.lt.u32.totalorder %s6840_s1, %s8804_s9 }
 0x17a   : > { %p6843_p9 = pnand %p6841_p1, %p8829_p5 }
 0x17c   : > { %p6844_p10 = pneg %p6843_p9 }
 0x17e   : > { %p6849_p8 = pnand %p6847_p6, %p6844_p10 }
 0x180   : > { %6852 = shalt.err (!%p6849_p8)
}
 0x181   : > { %s6853_s27 = scalar_lea.vmem %s962_s30, 3072  ;;  %p6861_p12 = scmp.lt.s32.totalorder %s962_s30, %s962_s30 }
 0x182   : > { %p6854_p7 = scmp.ne.s32.totalorder %s962_s30, %s6853_s27  ;;  %p6862_p3 = scmp.lt.s32.totalorder %s6853_s27, %s6853_s27 }
 0x184   : > { %p6856_p11 = pnand %p6854_p7, %p8829_p5  ;;  %p6863_p0 = por %p6862_p3, %p6861_p12 }
 0x186   : > { %p6857_p4 = pneg %p6856_p11 }
 0x188   : > { %p6864_p2 = pnand %p6863_p0, %p6857_p4 }
 0x18a   : > { %6867 = shalt.err (!%p6864_p2)
}
 0x18b   : > { %p8830_p13 = scmp.ne.s32.totalorder %s8818_s26, 0  ;;  %s7398_s12 = smov [#allocation8]  }
 0x18c   : > { %s995_s28 = sshll.u32 %s7398_s12, 4  ;;  %s7399_s22 = smov [#allocation20]   ;;  %s996_s28 = int_to_ptr.vmem [resolvable:$true] %s995_s28 }
 0x18d   : > { %6217 = dma.hbm_to_vmem [thread:$0]  (!%p8830_p13), %s8804_s9, 3072, %s962_s30, [#allocation4], %s8827_s14, %s8827_s14, %s8826_s19  }
 0x18e   : > { %s1017_s24 = sshll.u32 %s7399_s22, 4  ;;  %s6868_s6 = scalar_lea.hbm %s7461_s29, 16  ;;  %s1018_s24 = int_to_ptr.vmem [resolvable:$true] %s1017_s24 }
 0x18f   : > { %p6869_p1 = scmp.ne.s32.totalorder %s7461_s29, %s6868_s6  ;;  %p6875_p10 = scmp.lt.u32.totalorder %s6868_s6, %s7461_s29 }
 0x191   : > { %p6871_p2 = pnand %p6869_p1, %p8829_p5 }
 0x193   : > { %p6872_p9 = pneg %p6871_p2 }
 0x195   : > { %p6877_p6 = pnand %p6875_p10, %p6872_p9 }
 0x197   : > { %6880 = shalt.err (!%p6877_p6)
}
 0x198   : > { %s6881_s2 = scalar_lea.vmem %s996_s28, 16  ;;  %s6888_s19 = scalar_lea.vmem %s996_s28, 32 }
 0x199   : > { %p6882_p8 = scmp.ne.s32.totalorder %s996_s28, %s6881_s2  ;;  %p6889_p4 = scmp.lt.s32.totalorder %s996_s28, %s996_s28 }
 0x19a   : > { %p6890_p12 = scmp.lt.s32.totalorder %s6888_s19, %s6881_s2 }
 0x19b   : > { %p6884_p7 = pnand %p6882_p8, %p8829_p5 }
 0x19c   : > { %p6891_p3 = por %p6890_p12, %p6889_p4 }
 0x19d   : > { %p6885_p11 = pneg %p6884_p7 }
 0x19f   : > { %p6892_p0 = pnand %p6891_p3, %p6885_p11 }
 0x1a1   : > { %6895 = shalt.err (!%p6892_p0)
}
 0x1a2   : > { %s8831_s14 = sld [smem:[#allocation75_spill]] }
 0x1a3   : > { %6223 = dma.hbm_to_vmem [thread:$0]  (!%p8830_p13), %s7461_s29, 16, %s996_s28, [#allocation7]  }
 0x1a8   : > { %s6896_s30 = scalar_lea.hbm %s8831_s14, 16 }
 0x1a9   : > { %p6897_p1 = scmp.ne.s32.totalorder %s8831_s14, %s6896_s30  ;;  %p6903_p10 = scmp.lt.u32.totalorder %s6896_s30, %s8831_s14 }
 0x1ab   : > { %p6899_p2 = pnand %p6897_p1, %p8829_p5 }
 0x1ad   : > { %p6900_p9 = pneg %p6899_p2 }
 0x1af   : > { %p6905_p6 = pnand %p6903_p10, %p6900_p9 }
 0x1b1   : > { %6908 = shalt.err (!%p6905_p6)
}
 0x1b2   : > { %s6909_s1 = scalar_lea.vmem %s1018_s24, 16  ;;  %s6916_s27 = scalar_lea.vmem %s1018_s24, 32 }
 0x1b3   : > { %p6910_p8 = scmp.ne.s32.totalorder %s1018_s24, %s6909_s1  ;;  %p6917_p4 = scmp.lt.s32.totalorder %s1018_s24, %s1018_s24 }
 0x1b4   : > { %p6918_p12 = scmp.lt.s32.totalorder %s6916_s27, %s6909_s1 }
 0x1b5   : > { %p6912_p7 = pnand %p6910_p8, %p8829_p5 }
 0x1b6   : > { %p6919_p3 = por %p6918_p12, %p6917_p4 }
 0x1b7   : > { %p6913_p11 = pneg %p6912_p7 }
 0x1b9   : > { %p6920_p0 = pnand %p6919_p3, %p6913_p11 }
 0x1bb   : > { %6923 = shalt.err (!%p6920_p0)
}
 0x1bc   : > { %s8832_s12 = sld [smem:[#allocation78_spill]]  ;;  %s7400_s28 = smov [#allocation23]  }
 0x1bd   : > { %6229 = dma.hbm_to_vmem [thread:$0]  (!%p8830_p13), %s8831_s14, 16, %s1018_s24, [#allocation19]  }
 0x1be   : > { %s1042_s22 = sshll.u32 %s7400_s28, 4  ;;  %s7401_s6 = smov [#allocation26]   ;;  %s1043_s22 = int_to_ptr.vmem [resolvable:$true] %s1042_s22 }
 0x1bf   : > { %s1066_s2 = sshll.u32 %s7401_s6, 4  ;;  %s1067_s2 = int_to_ptr.vmem [resolvable:$true] %s1066_s2 }
 0x1c2   : > { %s6924_s19 = scalar_lea.hbm %s8832_s12, 16 }
 0x1c3   : > { %p6925_p1 = scmp.ne.s32.totalorder %s8832_s12, %s6924_s19  ;;  %p6931_p10 = scmp.lt.u32.totalorder %s6924_s19, %s8832_s12 }
 0x1c5   : > { %p6927_p2 = pnand %p6925_p1, %p8829_p5 }
 0x1c7   : > { %p6928_p9 = pneg %p6927_p2 }
 0x1c9   : > { %p6933_p6 = pnand %p6931_p10, %p6928_p9 }
 0x1cb   : > { %6936 = shalt.err (!%p6933_p6)
}
 0x1cc   : > { %s6937_s30 = scalar_lea.vmem %s1043_s22, 16  ;;  %s6944_s24 = scalar_lea.vmem %s1043_s22, 32 }
 0x1cd   : > { %p6938_p8 = scmp.ne.s32.totalorder %s1043_s22, %s6937_s30  ;;  %p6945_p4 = scmp.lt.s32.totalorder %s1043_s22, %s1043_s22 }
 0x1ce   : > { %p6946_p12 = scmp.lt.s32.totalorder %s6944_s24, %s6937_s30 }
 0x1cf   : > { %p6940_p7 = pnand %p6938_p8, %p8829_p5 }
 0x1d0   : > { %p6947_p3 = por %p6946_p12, %p6945_p4 }
 0x1d1   : > { %p6941_p11 = pneg %p6940_p7 }
 0x1d3   : > { %p6948_p0 = pnand %p6947_p3, %p6941_p11 }
 0x1d5   : > { %6951 = shalt.err (!%p6948_p0)
}
 0x1d6   : > { %s8833_s1 = sld [smem:[#allocation80_spill]] }
 0x1d7   : > { %6235 = dma.hbm_to_vmem [thread:$0]  (!%p8830_p13), %s8832_s12, 16, %s1043_s22, [#allocation22]  }
 0x1dc   : > { %s8834_s27 = smov %s8833_s1  ;;  %s6952_s28 = scalar_lea.hbm %s8833_s1, 16 }
 0x1dd   : > { %p6953_p1 = scmp.ne.s32.totalorder %s8834_s27, %s6952_s28  ;;  %p6959_p10 = scmp.lt.u32.totalorder %s6952_s28, %s8834_s27 }
 0x1df   : > { %p6955_p2 = pnand %p6953_p1, %p8829_p5 }
 0x1e1   : > { %p6956_p9 = pneg %p6955_p2 }
 0x1e3   : > { %p6961_p6 = pnand %p6959_p10, %p6956_p9 }
 0x1e5   : > { %6964 = shalt.err (!%p6961_p6)
}
 0x1e6   : > { %s6965_s6 = scalar_lea.vmem %s1067_s2, 16  ;;  %s6972_s19 = scalar_lea.vmem %s1067_s2, 32 }
 0x1e7   : > { %p6966_p8 = scmp.ne.s32.totalorder %s1067_s2, %s6965_s6  ;;  %p6973_p4 = scmp.lt.s32.totalorder %s1067_s2, %s1067_s2 }
 0x1e8   : > { %p6974_p12 = scmp.lt.s32.totalorder %s6972_s19, %s6965_s6 }
 0x1e9   : > { %p6968_p7 = pnand %p6966_p8, %p8829_p5 }
 0x1ea   : > { %p6975_p3 = por %p6974_p12, %p6973_p4 }
 0x1eb   : > { %p6969_p11 = pneg %p6968_p7 }
 0x1ed   : > { %p6976_p0 = pnand %p6975_p3, %p6969_p11 }
 0x1ef   : > { %6979 = shalt.err (!%p6976_p0)
}
 0x1f0   : > { %s8835_s22 = sld [smem:[#allocation82_spill]]  ;;  %s7402_s30 = smov [#allocation29]  }
 0x1f1   : > { %6241 = dma.hbm_to_vmem [thread:$0]  (!%p8830_p13), %s8834_s27, 16, %s1067_s2, [#allocation25]  }
 0x1f2   : > { %s1090_s24 = sshll.u32 %s7402_s30, 4  ;;  %s7403_s1 = smov [#allocation32]   ;;  %s1091_s24 = int_to_ptr.vmem [resolvable:$true] %s1090_s24 }
 0x1f3   : > { %s1112_s28 = sshll.u32 %s7403_s1, 4  ;;  %s1113_s28 = int_to_ptr.vmem [resolvable:$true] %s1112_s28 }
 0x1f6   : > { %s6980_s10 = scalar_lea.hbm %s8835_s22, 16 }
 0x1f7   : > { %p6981_p1 = scmp.ne.s32.totalorder %s8835_s22, %s6980_s10  ;;  %p6987_p10 = scmp.lt.u32.totalorder %s6980_s10, %s8835_s22 }
 0x1f9   : > { %p6983_p2 = pnand %p6981_p1, %p8829_p5 }
 0x1fb   : > { %p6984_p9 = pneg %p6983_p2 }
 0x1fd   : > { %p6989_p6 = pnand %p6987_p10, %p6984_p9 }
 0x1ff   : > { %6992 = shalt.err (!%p6989_p6)
}
 0x200   : > { %s6993_s6 = scalar_lea.vmem %s1091_s24, 16  ;;  %s7000_s2 = scalar_lea.vmem %s1091_s24, 32 }
 0x201   : > { %p6994_p8 = scmp.ne.s32.totalorder %s1091_s24, %s6993_s6  ;;  %p7001_p4 = scmp.lt.s32.totalorder %s1091_s24, %s1091_s24 }
 0x202   : > { %p7002_p12 = scmp.lt.s32.totalorder %s7000_s2, %s6993_s6 }
 0x203   : > { %p6996_p7 = pnand %p6994_p8, %p8829_p5 }
 0x204   : > { %p7003_p3 = por %p7002_p12, %p7001_p4 }
 0x205   : > { %p6997_p11 = pneg %p6996_p7 }
 0x207   : > { %p7004_p0 = pnand %p7003_p3, %p6997_p11 }
 0x209   : > { %7007 = shalt.err (!%p7004_p0)
}
 0x20a   : > { %s8836_s19 = sld [smem:[#allocation84_spill]] }
 0x20b   : > { %6247 = dma.hbm_to_vmem [thread:$0]  (!%p8830_p13), %s8835_s22, 16, %s1091_s24, [#allocation28]  }
 0x210   : > { %s7008_s10 = scalar_lea.hbm %s8836_s19, 16 }
 0x211   : > { %p7009_p1 = scmp.ne.s32.totalorder %s8836_s19, %s7008_s10  ;;  %p7015_p10 = scmp.lt.u32.totalorder %s7008_s10, %s8836_s19 }
 0x213   : > { %p7011_p2 = pnand %p7009_p1, %p8829_p5 }
 0x215   : > { %p7012_p9 = pneg %p7011_p2 }
 0x217   : > { %p7017_p6 = pnand %p7015_p10, %p7012_p9 }
 0x219   : > { %7020 = shalt.err (!%p7017_p6)
}
 0x21a   : > { %s7021_s30 = scalar_lea.vmem %s1113_s28, 16  ;;  %s7028_s1 = scalar_lea.vmem %s1113_s28, 32 }
 0x21b   : > { %p7022_p8 = scmp.ne.s32.totalorder %s1113_s28, %s7021_s30  ;;  %p7029_p4 = scmp.lt.s32.totalorder %s1113_s28, %s1113_s28 }
 0x21c   : > { %p7030_p12 = scmp.lt.s32.totalorder %s7028_s1, %s7021_s30 }
 0x21d   : > { %p7024_p7 = pnand %p7022_p8, %p8829_p5 }
 0x21e   : > { %p7031_p3 = por %p7030_p12, %p7029_p4 }
 0x21f   : > { %p7025_p11 = pneg %p7024_p7 }
 0x221   : > { %p7032_p0 = pnand %p7031_p3, %p7025_p11 }
 0x223   : > { %7035 = shalt.err (!%p7032_p0)
}
 0x224   : > { %s8837_s24 = sld [smem:[#allocation86_spill]]  ;;  %s7404_s6 = smov [#allocation35]  }
 0x225   : > { %6253 = dma.hbm_to_vmem [thread:$0]  (!%p8830_p13), %s8836_s19, 16, %s1113_s28, [#allocation31]  }
 0x226   : > { %s1136_s2 = sshll.u32 %s7404_s6, 4  ;;  %s7405_s10 = smov [#allocation38]   ;;  %s1137_s2 = int_to_ptr.vmem [resolvable:$true] %s1136_s2 }
 0x227   : > { %s1160_s4 = sshll.u32 %s7405_s10, 4  ;;  %s1161_s4 = int_to_ptr.vmem [resolvable:$true] %s1160_s4 }
 0x22a   : > { %s7036_s9 = scalar_lea.hbm %s8837_s24, 16 }
 0x22b   : > { %p7037_p1 = scmp.ne.s32.totalorder %s8837_s24, %s7036_s9  ;;  %p7043_p10 = scmp.lt.u32.totalorder %s7036_s9, %s8837_s24 }
 0x22d   : > { %p7039_p2 = pnand %p7037_p1, %p8829_p5 }
 0x22f   : > { %p7040_p9 = pneg %p7039_p2 }
 0x231   : > { %p7045_p6 = pnand %p7043_p10, %p7040_p9 }
 0x233   : > { %7048 = shalt.err (!%p7045_p6)
}
 0x234   : > { %s7049_s30 = scalar_lea.vmem %s1137_s2, 16  ;;  %s7056_s28 = scalar_lea.vmem %s1137_s2, 32 }
 0x235   : > { %p7050_p8 = scmp.ne.s32.totalorder %s1137_s2, %s7049_s30  ;;  %p7057_p4 = scmp.lt.s32.totalorder %s1137_s2, %s1137_s2 }
 0x236   : > { %p7058_p12 = scmp.lt.s32.totalorder %s7056_s28, %s7049_s30 }
 0x237   : > { %p7052_p7 = pnand %p7050_p8, %p8829_p5 }
 0x238   : > { %p7059_p3 = por %p7058_p12, %p7057_p4 }
 0x239   : > { %p7053_p11 = pneg %p7052_p7 }
 0x23b   : > { %p7060_p0 = pnand %p7059_p3, %p7053_p11 }
 0x23d   : > { %7063 = shalt.err (!%p7060_p0)
}
 0x23e   : > { %6259 = dma.hbm_to_vmem [thread:$0]  (!%p8830_p13), %s8837_s24, 16, %s1137_s2, [#allocation34]  }
 0x23f   : > { %s7064_s9 = scalar_lea.hbm %s7596_s21, 16 }
 0x240   : > { %p7065_p1 = scmp.ne.s32.totalorder %s7596_s21, %s7064_s9  ;;  %p7071_p10 = scmp.lt.u32.totalorder %s7064_s9, %s7596_s21 }
 0x242   : > { %p7067_p2 = pnand %p7065_p1, %p8829_p5 }
 0x244   : > { %p7068_p9 = pneg %p7067_p2 }
 0x246   : > { %p7073_p6 = pnand %p7071_p10, %p7068_p9 }
 0x248   : > { %7076 = shalt.err (!%p7073_p6)
}
 0x249   : > { %s7077_s1 = scalar_lea.vmem %s1161_s4, 16  ;;  %s7084_s6 = scalar_lea.vmem %s1161_s4, 32 }
 0x24a   : > { %p7078_p8 = scmp.ne.s32.totalorder %s1161_s4, %s7077_s1  ;;  %p7085_p4 = scmp.lt.s32.totalorder %s1161_s4, %s1161_s4 }
 0x24b   : > { %p7086_p12 = scmp.lt.s32.totalorder %s7084_s6, %s7077_s1 }
 0x24c   : > { %p7080_p7 = pnand %p7078_p8, %p8829_p5 }
 0x24d   : > { %p7087_p3 = por %p7086_p12, %p7085_p4 }
 0x24e   : > { %p7081_p11 = pneg %p7080_p7 }
 0x250   : > { %p7088_p0 = pnand %p7087_p3, %p7081_p11 }
 0x252   : > { %7091 = shalt.err (!%p7088_p0)
}
 0x253   : > { %s8838_s2 = sld [smem:[#allocation69_spill]]  ;;  %s1228_s13 = scalar_lea.vmem [#allocation11], %s7791_s17 }
 0x254   : > { %6265 = dma.hbm_to_vmem [thread:$0]  (!%p8830_p13), %s7596_s21, 16, %s1161_s4, [#allocation37]  }
 0x255   : > { %s1235_s28 = sshll.u32 %s1228_s13, 4  ;;  %p8840_p1 = scmp.ne.s32.totalorder %s8825_s23, 0  ;;  %s1236_s28 = int_to_ptr.vmem [resolvable:$true] %s1235_s28 }
 0x259   : > { %s8839_s10 = smov %s8838_s2  ;;  %s8000_s30 = scalar_lea.hbm %s8838_s2, %s7805_s5 }
 0x25a   : > { %s7092_s9 = scalar_lea.hbm %s8000_s30, 16  ;;  %s7097_s26 = scalar_lea.hbm %s8839_s10, 32 }
 0x25b   : > { %p7093_p5 = scmp.ne.s32.totalorder %s8000_s30, %s7092_s9  ;;  %p7098_p10 = scmp.lt.u32.totalorder %s8000_s30, %s8839_s10 }
 0x25c   : > { %p7099_p6 = scmp.lt.u32.totalorder %s7097_s26, %s7092_s9  ;;  %p7101_p7 = scmp.lt.u32.totalorder %s7092_s9, %s8000_s30 }
 0x25d   : > { %p7095_p2 = pnand %p7093_p5, %p8840_p1 }
 0x25e   : > { %p7100_p8 = por %p7099_p6, %p7098_p10 }
 0x25f   : > { %p7096_p9 = pneg %p7095_p2 }
 0x260   : > { %p7102_p13 = por %p7101_p7, %p7100_p8 }
 0x262   : > { %p7103_p11 = pnand %p7102_p13, %p7096_p9 }
 0x264   : > { %7106 = shalt.err (!%p7103_p11)
}
 0x265   : > { %s7107_s4 = scalar_lea.vmem %s1236_s28, 16  ;;  %s7406_s1 = smov [#allocation11]  }
 0x266   : > { %p7108_p4 = scmp.ne.s32.totalorder %s1236_s28, %s7107_s4  ;;  %s7112_s6 = sshll.u32 %s7406_s1, 4  ;;  %s7113_s6 = int_to_ptr.vmem [resolvable:$false] %s7112_s6 }
 0x267   : > { %s7114_s2 = scalar_lea.vmem %s7113_s6, 32  ;;  %p7115_p0 = scmp.lt.s32.totalorder %s1236_s28, %s7113_s6 }
 0x268   : > { %p7110_p12 = pnand %p7108_p4, %p8840_p1  ;;  %p7116_p5 = scmp.lt.s32.totalorder %s7114_s2, %s7107_s4 }
 0x26a   : > { %p7111_p3 = pneg %p7110_p12  ;;  %p7117_p2 = por %p7116_p5, %p7115_p0 }
 0x26c   : > { %p7118_p6 = pnand %p7117_p2, %p7111_p3 }
 0x26e   : > { %7121 = shalt.err (!%p7118_p6)
}
 0x26f   : > { %p8841_p10 = scmp.ne.s32.totalorder %s8824_s3, 0  ;;  %s8842_s13 = scalar_lea.sflag [#allocation10], %s7788_s7 }
 0x270   : > { %s7122_s9 = scalar_lea.hbm %s7866_s16, 8192  ;;  %s7127_s26 = scalar_lea.hbm %s7506_s20, 16384 }
 0x271   : > { %6272 = dma.hbm_to_vmem [thread:$0]  (!%p8841_p10), %s8000_s30, 16, %s1236_s28, %s8842_s13  }
 0x272   : > { %p7123_p9 = scmp.ne.s32.totalorder %s7866_s16, %s7122_s9  ;;  %p7128_p13 = scmp.lt.u32.totalorder %s7866_s16, %s7506_s20 }
 0x273   : > { %p7129_p11 = scmp.lt.u32.totalorder %s7127_s26, %s7122_s9  ;;  %p7131_p12 = scmp.lt.u32.totalorder %s7122_s9, %s7866_s16 }
 0x274   : > { %p7125_p8 = pnand %p7123_p9, %p8840_p1 }
 0x275   : > { %p7130_p4 = por %p7129_p11, %p7128_p13 }
 0x276   : > { %p7126_p7 = pneg %p7125_p8 }
 0x277   : > { %p7132_p3 = por %p7131_p12, %p7130_p4 }
 0x279   : > { %p7133_p0 = pnand %p7132_p3, %p7126_p7 }
 0x27b   : > { %7136 = shalt.err (!%p7133_p0)
}
 0x27c   : > { %s7137_s4 = scalar_lea.vmem %s7870_s25, 8192  ;;  %s7407_s30 = smov [#allocation14]  }
 0x27d   : > { %p7138_p5 = scmp.ne.s32.totalorder %s7870_s25, %s7137_s4  ;;  %s7142_s28 = sshll.u32 %s7407_s30, 4  ;;  %s7143_s28 = int_to_ptr.vmem [resolvable:$false] %s7142_s28 }
 0x27e   : > { %s7144_s1 = scalar_lea.vmem %s7143_s28, 16384  ;;  %p7145_p9 = scmp.lt.s32.totalorder %s7870_s25, %s7143_s28 }
 0x27f   : > { %p7140_p2 = pnand %p7138_p5, %p8840_p1  ;;  %p7146_p8 = scmp.lt.s32.totalorder %s7144_s1, %s7137_s4 }
 0x281   : > { %p7141_p6 = pneg %p7140_p2  ;;  %p7147_p13 = por %p7146_p8, %p7145_p9 }
 0x283   : > { %p7148_p11 = pnand %p7147_p13, %p7141_p6 }
 0x285   : > { %7151 = shalt.err (!%p7148_p11)
}
 0x286   : > { %s7408_s6 = smov 512   ;;  %s8843_s2 = sld [smem:[#allocation73_spill]] }
 0x287   : > { %s7409_s9 = smov 32   ;;  %s8845_s26 = scalar_lea.sflag [#allocation13], %s7788_s7 }
 0x288   : > { %6278 = dma.hbm_to_vmem [thread:$0]  (!%p8841_p10), %s7866_s16, 8192, %s7870_s25, %s8845_s26, %s7408_s6, %s7408_s6, %s7409_s9  }
 0x289   : > { %s1311_s4 = scalar_lea.vmem [#allocation17], %s7791_s17 }
 0x28a   : > { %s1318_s28 = sshll.u32 %s1311_s4, 4  ;;  %s1319_s28 = int_to_ptr.vmem [resolvable:$true] %s1318_s28 }
 0x28c   : > { %s8844_s13 = smov %s8843_s2  ;;  %s8039_s30 = scalar_lea.hbm %s8843_s2, %s7805_s5 }
 0x28d   : > { %s7152_s1 = scalar_lea.hbm %s8039_s30, 16  ;;  %s7157_s10 = scalar_lea.hbm %s8844_s13, 32 }
 0x28e   : > { %p7153_p7 = scmp.ne.s32.totalorder %s8039_s30, %s7152_s1  ;;  %p7158_p3 = scmp.lt.u32.totalorder %s8039_s30, %s8844_s13 }
 0x28f   : > { %p7159_p0 = scmp.lt.u32.totalorder %s7157_s10, %s7152_s1  ;;  %p7161_p2 = scmp.lt.u32.totalorder %s7152_s1, %s8039_s30 }
 0x290   : > { %p7155_p4 = pnand %p7153_p7, %p8840_p1 }
 0x291   : > { %p7160_p5 = por %p7159_p0, %p7158_p3 }
 0x292   : > { %p7156_p12 = pneg %p7155_p4 }
 0x293   : > { %p7162_p6 = por %p7161_p2, %p7160_p5 }
 0x295   : > { %p7163_p9 = pnand %p7162_p6, %p7156_p12 }
 0x297   : > { %7166 = shalt.err (!%p7163_p9)
}
 0x298   : > { %s7167_s5 = scalar_lea.vmem %s1319_s28, 16  ;;  %s7410_s17 = smov [#allocation17]  }
 0x299   : > { %p7168_p8 = scmp.ne.s32.totalorder %s1319_s28, %s7167_s5  ;;  %s7172_s16 = sshll.u32 %s7410_s17, 4  ;;  %s7173_s16 = int_to_ptr.vmem [resolvable:$false] %s7172_s16 }
 0x29a   : > { %s7174_s25 = scalar_lea.vmem %s7173_s16, 32  ;;  %p7175_p7 = scmp.lt.s32.totalorder %s1319_s28, %s7173_s16 }
 0x29b   : > { %p7170_p13 = pnand %p7168_p8, %p8840_p1  ;;  %p7176_p4 = scmp.lt.s32.totalorder %s7174_s25, %s7167_s5 }
 0x29d   : > { %p7171_p11 = pneg %p7170_p13  ;;  %p7177_p10 = por %p7176_p4, %p7175_p7 }
 0x29f   : > { %p7178_p0 = pnand %p7177_p10, %p7171_p11 }
 0x2a1   : > { %7181 = shalt.err (!%p7178_p0)
}
 0x2a2   : > { %p8846_p3 = scmp.ne.s32.totalorder %s8824_s3, 0  ;;  %s8847_s10 = scalar_lea.sflag [#allocation16], %s7788_s7 }
 0x2a3   : > { %p8848_p12 = scmp.ne.s32.totalorder %s8817_s15, 0 }
 0x2a4   : > { %6284 = dma.hbm_to_vmem [thread:$0]  (!%p8846_p3), %s8039_s30, 16, %s1319_s28, %s8847_s10  }
 0x2a5   : > { %1327 = sbr.rel (%p8848_p12) target bundleno = 6204 (0x183c), region = 156  ;;  %p8849_p1 = scmp.eq.s32.totalorder (!%p8848_p12), %s7634_s11, 0 }
 0x2ac   : > { %7277 = dma.done.wait (%p8849_p1), [#allocation4], 3072   ;;  %p8850_p5 = pmov %p8849_p1 }
 0x2ad   : > { %p8851_p2 = pmov %p8849_p1 }
 0x2ae   : > { %7279 = vsyncadd (%p8850_p5), [#allocation4], 4294964224 }
 0x2af   : > { %7281 = dma.done.wait (%p8851_p2), [#allocation7], 32   ;;  %p8852_p10 = pmov %p8849_p1 }
 0x2b0   : > { %s1341_s3 = sand.u32 1, %s7634_s11   ;;  %s8069_s7 = sand.u32 1, %s7338_s0  }
 0x2b1   : > { %7283 = vsyncadd (%p8852_p10), [#allocation7], 4294967264  ;;  %s5102_s15 = sshll.u32 %s8069_s7, 7  ;;  %s1342_s23 = scalar_lea.sflag [#allocation10], %s1341_s3 }
 0x2b2   : > { %s8072_s6 = scalar_lea.vmem [#allocation9], %s5102_s15  ;;  %p8853_p6 = scmp.ne.s32.totalorder %s8823_s18, 0 }
 0x2b4   : > { %7285 = dma.done.wait (%p8853_p6), %s1342_s23, 2064  }
 0x2b5   : > { %7287 = vsyncadd (%p8853_p6), %s1342_s23, 4294965232  ;;  %s1359_s9 = scalar_lea.sflag [#allocation13], %s1341_s3 }
 0x2b6   : > { %7289 = dma.done.wait (%p8853_p6), %s1359_s9, 8208  }
 0x2b7   : > { %7291 = vsyncadd (%p8853_p6), %s1359_s9, 4294959088  ;;  %s5103_s30 = sshll.u32 %s8069_s7, 9  ;;  %s1376_s28 = scalar_lea.sflag [#allocation16], %s1341_s3 }
 0x2b8   : > { %s8085_s4 = scalar_lea.vmem [#allocation14], %s5103_s30  ;;  %s8087_s1 = scalar_lea.vmem [#allocation15], %s5103_s30 }
 0x2b9   : > { %7293 = dma.done.wait (%p8853_p6), %s1376_s28, 8208  }
 0x2ba   : > { %7295 = vsyncadd (%p8853_p6), %s1376_s28, 4294959088  ;;  %p8854_p9 = pmov %p8849_p1 }
 0x2bb   : > { %p8855_p8 = pmov %p8849_p1 }
 0x2bc   : > { %7297 = dma.done.wait (%p8854_p9), [#allocation19], 32  }
 0x2bd   : > { %7299 = vsyncadd (%p8855_p8), [#allocation19], 4294967264  ;;  %p8856_p13 = pmov %p8849_p1 }
 0x2be   : > { %p8857_p11 = pmov %p8849_p1 }
 0x2bf   : > { %7301 = dma.done.wait (%p8856_p13), [#allocation22], 32  }
 0x2c0   : > { %7303 = vsyncadd (%p8857_p11), [#allocation22], 4294967264  ;;  %p8858_p7 = pmov %p8849_p1 }
 0x2c1   : > { %p8859_p4 = pmov %p8849_p1 }
 0x2c2   : > { %7305 = dma.done.wait (%p8858_p7), [#allocation25], 2064  }
 0x2c3   : > { %7307 = vsyncadd (%p8859_p4), [#allocation25], 4294965232  ;;  %p8860_p0 = pmov %p8849_p1 }
 0x2c5   : > { %7309 = dma.done.wait (%p8860_p0), [#allocation28], 2064   ;;  %p8861_p3 = pmov %p8860_p0 }
 0x2c6   : > { %p8862_p12 = pmov %p8860_p0 }
 0x2c7   : > { %7311 = vsyncadd (%p8861_p3), [#allocation28], 4294965232 }
 0x2c8   : > { %7313 = dma.done.wait (%p8862_p12), [#allocation31], 32   ;;  %p8863_p1 = pmov %p8860_p0 }
 0x2c9   : > { %p8864_p5 = pmov %p8860_p0 }
 0x2ca   : > { %7315 = vsyncadd (%p8863_p1), [#allocation31], 4294967264 }
 0x2cb   : > { %7317 = dma.done.wait (%p8864_p5), [#allocation34], 2064   ;;  %p8865_p2 = pmov %p8860_p0 }
 0x2cc   : > { %p8866_p10 = pmov %p8860_p0 }
 0x2cd   : > { %7319 = vsyncadd (%p8865_p2), [#allocation34], 4294965232 }
 0x2ce   : > { %7321 = dma.done.wait (%p8866_p10), [#allocation37], 2064   ;;  %p8867_p6 = pmov %p8860_p0 }
 0x2cf   : > { %s8868_s18 = sld [smem:[#allocation63_spill]]  ;;  %s8869_s17 = sld [smem:[#allocation64_spill]] }
 0x2d0   : > { %7323 = vsyncadd (%p8867_p6), [#allocation37], 4294965232  ;;  %s8870_s16 = sld [smem:[#allocation68_spill]]  ;;  %s8871_s25 = sld [smem:[#allocation65_spill]] }
 0x2d1   : > { %s8872_s10 = sld [smem:[#allocation71_spill]]  ;;  %s8873_s3 = sld [smem:[#allocation66_spill]] }
 0x2d2   : > { %p1571_p9 = scmp.lt.s32.totalorder %s7634_s11, 1  ;;  %p8874_p8 = scmp.ne.s32.totalorder %s7634_s11, 0 }
 0x2d3   : > { %v1599_v0 = vld [vmem:[#allocation3] sm:$0xff] (!%p8874_p8)  ;;  %v1600_v1 = vld [vmem:[#allocation3 + $0x8] sm:$0xff] (!%p8874_p8)  ;;  %v1601_v2 = vld [vmem:[#allocation3 + $0x10] sm:$0xff] (!%p8874_p8)  ;;  %s8875_s14 = sld [smem:[#allocation57_spill]] (!%p8874_p8)  ;;  %v7411_v3 = vmov (!%p8874_p8), 0.0|0.0   ;;  %vm1623_vm0 = vcmask (!%p8874_p8), 523264  }
 0x2d4   : > { %s8124_s15 = scalar_select %p1571_p9, %s7634_s11, 1 }
 0x2d5   : > { %1596 = sbr.rel (%p8874_p8) target bundleno = 1308 (0x51c), region = 252  ;;  %5740 = vmatprep.subr.bf16.mxu0 (!%p8874_p8), %v7411_v3  ;;  %v5741_v4 = vpack.c.bf16 (!%p8874_p8), %v1600_v1, %v1599_v0  ;;  %v1602_v5 = vld [vmem:[#allocation3 + $0x18] sm:$0xff] (!%p8874_p8)  ;;  %v1603_v7 = vld [vmem:[#allocation3 + $0x20] sm:$0xff] (!%p8874_p8)  ;;  %v1604_v8 = vld [vmem:[#allocation3 + $0x28] sm:$0xff] (!%p8874_p8)  ;;  %vm1703_vm1 = vcmask (!%p8874_p8), 1040384   ;;  %vm1705_vm2 = vcmask (!%p8874_p8), 1044480  }
 0x2d6   : > { %s1573_s23 = scalar_lea.vmem %s8868_s18, %s8124_s15  ;;  %s1576_s9 = scalar_lea.vmem %s8869_s17, %s8124_s15  ;;  %v5744_v6 = vpack.c.bf16 (!%p8874_p8), %v1602_v5, %v1601_v2  ;;  %v5747_v9 = vpack.c.bf16 (!%p8874_p8), %v1604_v8, %v1603_v7  ;;  %v1605_v10 = vld [vmem:[#allocation3 + $0x30] sm:$0xff] (!%p8874_p8)  ;;  %v1606_v11 = vld [vmem:[#allocation3 + $0x38] sm:$0xff] (!%p8874_p8)  ;;  %v1607_v14 = vld [vmem:[#allocation3 + $0x40] sm:$0xff] (!%p8874_p8) }
 0x2d7   : > { %s6120_s30 = smul.u32 384, %s8124_s15  ;;  %s1588_s28 = scalar_lea.vmem %s8870_s16, %s8124_s15  ;;  %5742 = vmatpush1.bf16.msra.mxu0 (!%p8874_p8), %v5741_v4  ;;  %v5750_v13 = vpack.c.bf16 (!%p8874_p8), %v1606_v11, %v1605_v10  ;;  %v1608_v15 = vld [vmem:[#allocation3 + $0x48] sm:$0xff] (!%p8874_p8)  ;;  %v1609_v17 = vld [vmem:[#allocation3 + $0x50] sm:$0xff] (!%p8874_p8)  ;;  %v1610_v18 = vld [vmem:[#allocation3 + $0x58] sm:$0xff] (!%p8874_p8) }
 0x2d8   : > { %s6121_s5 = smul.u32 3, %s8124_s15  ;;  %s5120_s26 = sshll.u32 %s8124_s15, 2  ;;  %5743 = vmatprep.subr.bf16.mxu0 (!%p8874_p8), %v7411_v3  ;;  %v5753_v16 = vpack.c.bf16 (!%p8874_p8), %v1608_v15, %v1607_v14  ;;  %v5756_v19 = vpack.c.bf16 (!%p8874_p8), %v1610_v18, %v1609_v17  ;;  %v1611_v20 = vld [vmem:[#allocation3 + $0x60] sm:$0xff] (!%p8874_p8)  ;;  %v1612_v21 = vld [vmem:[#allocation3 + $0x68] sm:$0xff] (!%p8874_p8)  ;;  %v1613_v23 = vld [vmem:[#allocation3 + $0x70] sm:$0xff] (!%p8874_p8) }
 0x2d9   : > { %s8136_s2 = scalar_lea.vmem %s8871_s25, %s6120_s30  ;;  %s8139_s12 = scalar_lea.vmem %s8872_s10, %s5120_s26  ;;  %v1598_v12 = vld [vmem:[%s8875_s14 + $0x8] sm:$0xff] (!%p8874_p8)  ;;  %v5759_v22 = vpack.c.bf16 (!%p8874_p8), %v1612_v21, %v1611_v20  ;;  %v1615_v26 = vld [vmem:[#allocation3 + $0x80] sm:$0xff] (!%p8874_p8)  ;;  %v1616_v27 = vld [vmem:[#allocation3 + $0x88] sm:$0xff] (!%p8874_p8) }
 0x2da   : > { %s8142_s13 = scalar_lea.vmem %s8873_s3, %s6121_s5  ;;  %5122 = vmatprep.mubr.msk.f32.mxu0 (!%p8874_p8), %vm1623_vm0, %v1598_v12  ;;  %v1614_v24 = vld [vmem:[#allocation3 + $0x78] sm:$0xff] (!%p8874_p8)  ;;  %v5765_v28 = vpack.c.bf16 (!%p8874_p8), %v1616_v27, %v1615_v26  ;;  %v1617_v29 = vld [vmem:[#allocation3 + $0x90] sm:$0xff] (!%p8874_p8)  ;;  %s8876_s26 = sld [smem:[#allocation59_spill]] (!%p8874_p8)  ;;  %v1619_v32 = vld [vmem:[#allocation3 + $0xa0] sm:$0xff] (!%p8874_p8) }
 0x2db   : > { %5745 = vmatpush1.bf16.msra.mxu0 (!%p8874_p8), %v5744_v6  ;;  %v5762_v25 = vpack.c.bf16 (!%p8874_p8), %v1614_v24, %v1613_v23  ;;  %v1618_v30 = vld [vmem:[#allocation3 + $0x98] sm:$0xff] (!%p8874_p8)  ;;  %v1620_v33 = vld [vmem:[#allocation3 + $0xa8] sm:$0xff] (!%p8874_p8)  ;;  %s8877_s5 = sld [smem:[#allocation60_spill]] (!%p8874_p8)  ;;  %v1621_v35 = vld [vmem:[#allocation3 + $0xb0] sm:$0xff] (!%p8874_p8) }
 0x2dc   : > { %5746 = vmatprep.subr.bf16.mxu0 %v7411_v3  ;;  %v5768_v31 = vpack.c.bf16 %v1618_v30, %v1617_v29  ;;  %v5771_v34 = vpack.c.bf16 %v1620_v33, %v1619_v32  ;;  %v1622_v36 = vld [vmem:[#allocation3 + $0xb8] sm:$0xff]  ;;  %v1597_v38 = vld [vmem:[%s8875_s14] sm:$0xff]  ;;  %v5123_v2 = vld [vmem:[#allocation6] ss:$0 sm:$0xff] }
 0x2dd   : > { %v5774_v37 = vpack.c.bf16 %v1622_v36, %v1621_v35  ;;  %v5124_v4 = vld [vmem:[#allocation8] ss:$0 sm:$0xff] }
 0x2df   : > { %5748 = vmatpush1.bf16.msra.mxu0 %v5747_v9 }
 0x2e0   : > { %5749 = vmatprep.subr.bf16.mxu0 %v7411_v3  ;;  %v1697_v40 = vld [vmem:[%s8876_s26] sm:$0x1] }
 0x2e1   : > { %v1709_v44 = vld [vmem:[%s8877_s5] sm:$0xff] }
 0x2e3   : > { %5751 = vmatpush1.bf16.msra.mxu0 %v5750_v13 }
 0x2e4   : > { %5752 = vmatprep.subr.bf16.mxu0 %v7411_v3 }
 0x2e7   : > { %5754 = vmatpush1.bf16.msra.mxu0 %v5753_v16 }
 0x2e8   : > { %5755 = vmatprep.subr.bf16.mxu0 %v7411_v3 }
 0x2eb   : > { %5757 = vmatpush1.bf16.msra.mxu0 %v5756_v19 }
 0x2ec   : > { %5758 = vmatprep.subr.bf16.mxu0 %v7411_v3 }
 0x2ef   : > { %5760 = vmatpush1.bf16.msra.mxu0 %v5759_v22 }
 0x2f0   : > { %5761 = vmatprep.subr.bf16.mxu0 %v7411_v3 }
 0x2f3   : > { %5763 = vmatpush1.bf16.msra.mxu0 %v5762_v25 }
 0x2f4   : > { %5764 = vmatprep.subr.bf16.mxu0 %v7411_v3 }
 0x2f7   : > { %5766 = vmatpush1.bf16.msra.mxu0 %v5765_v28 }
 0x2f8   : > { %5767 = vmatprep.subr.bf16.mxu0 %v7411_v3 }
 0x2fb   : > { %5769 = vmatpush1.bf16.msra.mxu0 %v5768_v31 }
 0x2fc   : > { %5770 = vmatprep.subr.bf16.mxu0 %v7411_v3 }
 0x2ff   : > { %5772 = vmatpush1.bf16.msra.mxu0 %v5771_v34 }
 0x300   : > { %5773 = vmatprep.subr.bf16.mxu0 %v7411_v3 }
 0x303   : > { %5775 = vmatpush1.bf16.msra.mxu0 %v5774_v37 }
 0x306   : > { %1692 = vmatmul.mubr.f32.vlgmr.msra.gmra.mrb[0].mxu0 %v1597_v38 }
 0x3d9   : > { %v1693_v39 = vpop.f32.mrb[0].mxu0 }
 0x3da   : > { %v1699_v41 = vrot.slane %v1693_v39, 7  ;;  %v1701_v42 = vrot.slane %v1693_v39, 3  ;;  %v1695_v43 = vpop.f32.mrb[1].mxu0 }
 0x3dc   : > { %v1704_v45 = vsel %vm1703_vm1, %v1697_v40, %v1699_v41  ;;  %v1707_v46 = vsel %vm1703_vm1, %v1697_v40, %v1701_v42 }
 0x3dd   : > { %v1706_v47 = vsel %vm1705_vm2, %v1704_v45, 0.0  ;;  %v1708_v49 = vsel %vm1705_vm2, %v1707_v46, 0.0 }
 0x3de   : > { %v1710_v48 = vadd.f32 %v1709_v44, %v1706_v47  ;;  %v1711_v50 = vadd.f32 %v1709_v44, %v1708_v49 }
 0x3e0   : > { %1714 = vadd.xlane.f32.xlu0 %v1710_v48 }
 0x3e4   : > { %1716 = vadd.xlane.f32.xlu0 %v1711_v50 }
 0x46d   : > { %v1715_v51 = vpop.xlane.xlu0 %1714 }
 0x46e   : > { %v1719_v52 = vmul.f32 0.0078125, %v1715_v51 }
 0x470   : > { %v1721_v53 = vsub.f32 %v1710_v48, %v1719_v52 }
 0x471   : > { %v1717_v54 = vpop.xlane.xlu0 %1716 }
 0x472   : > { %v1720_v55 = vmul.f32 0.0078125, %v1717_v54  ;;  %v1723_v56 = vmul.f32 %v1721_v53, %v1721_v53 }
 0x474   : > { %v1722_v57 = vsub.f32 %v1711_v50, %v1720_v55  ;;  %1725 = vadd.xlane.f32.xlu1 %v1723_v56 }
 0x476   : > { %v1724_v58 = vmul.f32 %v1722_v57, %v1722_v57 }
 0x478   : > { %1727 = vadd.xlane.f32.xlu1 %v1724_v58 }
 0x501   : > { %v1726_v59 = vpop.xlane.xlu1 %1725 }
 0x502   : > { %v1729_v60 = vmul.f32 0.0078125, %v1726_v59 }
 0x504   : > { %v1731_v61 = vadd.f32 1e-05, %v1729_v60 }
 0x505   : > { %v1728_v62 = vpop.xlane.xlu1 %1727 }
 0x506   : > { %6427 = vrsqrt.f32 %v1731_v61  ;;  %v1730_v63 = vmul.f32 0.0078125, %v1728_v62 }
 0x508   : > { %v1732_v0 = vadd.f32 1e-05, %v1730_v63 }
 0x50a   : > { %6429 = vrsqrt.f32 %v1732_v0 }
 0x510   : > { %v6428_v1 = vpop.eup %6427 }
 0x511   : > { %v1735_v3 = vmul.f32 %v6428_v1, %v1721_v53 }
 0x513   : > { %v1743_v5 = vmul.f32 %v5123_v2, %v1735_v3 }
 0x514   : > { %v6430_v6 = vpop.eup %6429 }
 0x515   : > { %v1751_v7 = vadd.f32 %v5124_v4, %v1743_v5  ;;  %v1736_v8 = vmul.f32 %v6430_v6, %v1722_v57 }
 0x517   : > { %1753 = vst [vmem:[#allocation2] sm:$0xff] %v1751_v7  ;;  %v1744_v9 = vmul.f32 %v5123_v2, %v1736_v8 }
 0x519   : > { %v1752_v10 = vadd.f32 %v5124_v4, %v1744_v9 }
 0x51b   : > { %1754 = vst [vmem:[#allocation2 + $0x8] sm:$0xff] %v1752_v10 }
 0x51c PF: > { %v1799_v13 = vld [vmem:[%s8136_s2 + $0x8] sm:$0xff]  ;;  %v1802_v14 = vld [vmem:[%s8136_s2 + $0x20] sm:$0xff]  ;;  %v1801_v17 = vld [vmem:[%s8136_s2 + $0x18] sm:$0xff]  ;;  %v7412_v58 = vmov 0.0   ;;  %vm7413_vm3 = vmmov 0   ;;  %vm2024_vm4 = vcmask 261120  }
 0x51d   : > { %v1798_v15 = vld [vmem:[%s8136_s2] sm:$0xff]  ;;  %v5776_v16 = vpack.c.bf16 %v1802_v14, %v1799_v13  ;;  %v1805_v18 = vld [vmem:[%s8136_s2 + $0x38] sm:$0xff]  ;;  %v1808_v19 = vld [vmem:[%s8136_s2 + $0x50] sm:$0xff]  ;;  %1927 = vmatprep.mubr.f32.mxu0 %v7412_v58  ;;  %vm2101_vm5 = vcmask 64512   ;;  %s7415_s16 = smov 64   ;;  %s7416_s25 = smov 32  }
 0x51e   : > { %v8150_v11 = vld [vmem:[#allocation2] sm:$0xff]  ;;  %v5778_v20 = vpack.c.bf16 %v1801_v17, %v1798_v15  ;;  %v5780_v21 = vpack.c.bf16 %v1808_v19, %v1805_v18  ;;  %v1804_v22 = vld [vmem:[%s8136_s2 + $0x30] sm:$0xff]  ;;  %v1807_v23 = vld [vmem:[%s8136_s2 + $0x48] sm:$0xff]  ;;  %vm2695_vm6 = vcmask 523264   ;;  %vm2697_vm7 = vcmask 785408   ;;  %s8883_s10 = scalar_lea.vmem [#allocation12], %s8069_s7 }
 0x51f   : > { %1759 = vadd.xlane.f32.xlu0 %v8150_v11  ;;  %v1811_v24 = vld [vmem:[%s8136_s2 + $0x68] sm:$0xff]  ;;  %5777 = vmatprep.subr.bf16.mxu0 %v5776_v16  ;;  %v1814_v25 = vld [vmem:[%s8136_s2 + $0x80] sm:$0xff]  ;;  %v5782_v26 = vpack.c.bf16 %v1807_v23, %v1804_v22  ;;  %v1813_v29 = vld [vmem:[%s8136_s2 + $0x78] sm:$0xff]  ;;  %p5164_p13 = scmp.ne.s32.totalorder %s7634_s11, 1 }
 0x520   : > { %5779 = vmatpush1.bf16.msra.mxu0 %v5778_v20  ;;  %v5784_v27 = vpack.c.bf16 %v1814_v25, %v1811_v24  ;;  %v1810_v28 = vld [vmem:[%s8136_s2 + $0x60] sm:$0xff]  ;;  %v1817_v39 = vld [vmem:[%s8136_s2 + $0x98] sm:$0xff]  ;;  %v1820_v40 = vld [vmem:[%s8136_s2 + $0xb0] sm:$0xff]  ;;  %vm4050_vm8 = vcmask (!%p5164_p13), 1040384   ;;  %vm4054_vm9 = vcmask (!%p5164_p13), 1041408   ;;  %vm7418_vm10 = vmmov (!%p5164_p13), 0  }
 0x521   : > { %5781 = vmatprep.subr.bf16.mxu0 %v5780_v21  ;;  %v5786_v30 = vpack.c.bf16 %v1813_v29, %v1810_v28  ;;  %v5788_v41 = vpack.c.bf16 %v1820_v40, %v1817_v39  ;;  %v1816_v42 = vld [vmem:[%s8136_s2 + $0x90] sm:$0xff]  ;;  %v1819_v43 = vld [vmem:[%s8136_s2 + $0xa8] sm:$0xff]  ;;  %v1826_v46 = vld [vmem:[%s8136_s2 + $0xe0] sm:$0xff] }
 0x522   : > { %v8152_v12 = vld [vmem:[#allocation2 + $0x8] sm:$0xff]  ;;  %v5790_v44 = vpack.c.bf16 %v1819_v43, %v1816_v42  ;;  %v1822_v48 = vld [vmem:[%s8136_s2 + $0xc0] sm:$0xff]  ;;  %v1825_v49 = vld [vmem:[%s8136_s2 + $0xd8] sm:$0xff] }
 0x523   : > { %1761 = vadd.xlane.f32.xlu1 %v8152_v12  ;;  %v1823_v45 = vld [vmem:[%s8136_s2 + $0xc8] sm:$0xff]  ;;  %v5794_v50 = vpack.c.bf16 %v1825_v49, %v1822_v48  ;;  %v1829_v51 = vld [vmem:[%s8136_s2 + $0xf8] sm:$0xff]  ;;  %v1832_v52 = vld [vmem:[%s8136_s2 + $0x110] sm:$0xff] }
 0x524   : > { %5783 = vmatpush1.bf16.msra.mxu0 %v5782_v26  ;;  %v5792_v47 = vpack.c.bf16 %v1826_v46, %v1823_v45  ;;  %v1828_v53 = vld [vmem:[%s8136_s2 + $0xf0] sm:$0xff]  ;;  %v5796_v54 = vpack.c.bf16 %v1832_v52, %v1829_v51  ;;  %v1831_v55 = vld [vmem:[%s8136_s2 + $0x108] sm:$0xff]  ;;  %v1838_v57 = vld [vmem:[%s8136_s2 + $0x140] sm:$0xff] }
 0x525   : > { %5785 = vmatprep.subr.bf16.mxu0 %v5784_v27  ;;  %v1835_v56 = vld [vmem:[%s8136_s2 + $0x128] sm:$0xff]  ;;  %v5798_v59 = vpack.c.bf16 %v1831_v55, %v1828_v53  ;;  %v1834_v61 = vld [vmem:[%s8136_s2 + $0x120] sm:$0xff]  ;;  %v1837_v62 = vld [vmem:[%s8136_s2 + $0x138] sm:$0xff] }
 0x526   : > { %v5800_v60 = vpack.c.bf16 %v1838_v57, %v1835_v56  ;;  %v1841_v63 = vld [vmem:[%s8136_s2 + $0x158] sm:$0xff]  ;;  %v1844_v0 = vld [vmem:[%s8136_s2 + $0x170] sm:$0xff]  ;;  %v5802_v1 = vpack.c.bf16 %v1837_v62, %v1834_v61  ;;  %v1843_v4 = vld [vmem:[%s8136_s2 + $0x168] sm:$0xff] }
 0x527   : > { %v5804_v2 = vpack.c.bf16 %v1844_v0, %v1841_v63  ;;  %v1840_v3 = vld [vmem:[%s8136_s2 + $0x150] sm:$0xff]  ;;  %v1803_v7 = vld [vmem:[%s8136_s2 + $0x28] sm:$0xff]  ;;  %v1806_v8 = vld [vmem:[%s8136_s2 + $0x40] sm:$0xff] }
 0x528   : > { %5787 = vmatpush1.bf16.msra.mxu0 %v5786_v30  ;;  %v5806_v5 = vpack.c.bf16 %v1843_v4, %v1840_v3  ;;  %v1800_v6 = vld [vmem:[%s8136_s2 + $0x10] sm:$0xff]  ;;  %v1809_v10 = vld [vmem:[%s8136_s2 + $0x58] sm:$0xff]  ;;  %v1815_v15 = vld [vmem:[%s8136_s2 + $0x88] sm:$0xff] }
 0x529   : > { %5789 = vmatprep.subr.bf16.mxu0 %v5788_v41  ;;  %v5808_v9 = vpack.c.bf16 %v1803_v7, %v1800_v6  ;;  %v5812_v13 = vpack.c.bf16 %v1809_v10, %v1806_v8  ;;  %v1812_v14 = vld [vmem:[%s8136_s2 + $0x70] sm:$0xff]  ;;  %v1818_v17 = vld [vmem:[%s8136_s2 + $0xa0] sm:$0xff]  ;;  %v1821_v18 = vld [vmem:[%s8136_s2 + $0xb8] sm:$0xff] }
 0x52a   : > { %v5816_v16 = vpack.c.bf16 %v1815_v15, %v1812_v14  ;;  %v5820_v19 = vpack.c.bf16 %v1821_v18, %v1818_v17  ;;  %v1824_v20 = vld [vmem:[%s8136_s2 + $0xd0] sm:$0xff]  ;;  %v1827_v21 = vld [vmem:[%s8136_s2 + $0xe8] sm:$0xff]  ;;  %v1830_v23 = vld [vmem:[%s8136_s2 + $0x100] sm:$0xff] }
 0x52b   : > { %5809 = vmatprep.subr.bf16.mxu1 %v5808_v9  ;;  %v5824_v22 = vpack.c.bf16 %v1827_v21, %v1824_v20  ;;  %v1833_v24 = vld [vmem:[%s8136_s2 + $0x118] sm:$0xff]  ;;  %v1836_v26 = vld [vmem:[%s8136_s2 + $0x130] sm:$0xff]  ;;  %v1839_v27 = vld [vmem:[%s8136_s2 + $0x148] sm:$0xff] }
 0x52c   : > { %5791 = vmatpush1.bf16.msra.mxu0 %v5790_v44  ;;  %5811 = vmatpush3.bf16.msra.mxu1 %v5808_v9  ;;  %v5828_v25 = vpack.c.bf16 %v1833_v24, %v1830_v23  ;;  %v5832_v28 = vpack.c.bf16 %v1839_v27, %v1836_v26  ;;  %v1842_v29 = vld [vmem:[%s8136_s2 + $0x160] sm:$0xff]  ;;  %v1845_v30 = vld [vmem:[%s8136_s2 + $0x178] sm:$0xff]  ;;  %s8880_s2 = sld [smem:[#allocation61_spill]] }
 0x52d   : > { %5793 = vmatprep.subr.bf16.mxu0 %v5792_v47  ;;  %5813 = vmatprep.subr.bf16.mxu1 %v5812_v13  ;;  %v5125_v41 = vld [vmem:[%s1573_s23] ss:$0 sm:$0xff] }
 0x52e   : > { %v5126_v44 = vld [vmem:[%s1576_s9] ss:$0 sm:$0xff] }
 0x52f   : > { %v1846_v51 = vld [vmem:[%s8142_s13] sm:$0x7]  ;;  %s7414_s13 = smov 96  }
 0x530   : > { %5795 = vmatpush1.bf16.msra.mxu0 %v5794_v50  ;;  %5815 = vmatpush3.bf16.msra.mxu1 %v5812_v13 }
 0x531   : > { %5797 = vmatprep.subr.bf16.mxu0 %v5796_v54  ;;  %5817 = vmatprep.subr.bf16.mxu1 %v5816_v16 }
 0x532   : > { %v8261_v7 = vld [vmem:[%s8880_s2] ss:$0 sm:$0xff] }
 0x534   : > { %5799 = vmatpush1.bf16.msra.mxu0 %v5798_v59  ;;  %5819 = vmatpush3.bf16.msra.mxu1 %v5816_v16 }
 0x535   : > { %5801 = vmatprep.subr.bf16.mxu0 %v5800_v60  ;;  %5821 = vmatprep.subr.bf16.mxu1 %v5820_v19 }
 0x538   : > { %5803 = vmatpush1.bf16.msra.mxu0 %v5802_v1  ;;  %5823 = vmatpush3.bf16.msra.mxu1 %v5820_v19 }
 0x539   : > { %5805 = vmatprep.subr.bf16.mxu0 %v5804_v2  ;;  %5825 = vmatprep.subr.bf16.mxu1 %v5824_v22 }
 0x53c   : > { %5807 = vmatpush1.bf16.msra.mxu0 %v5806_v5  ;;  %5827 = vmatpush3.bf16.msra.mxu1 %v5824_v22 }
 0x53d   : > { %5450 = vmatprep.subr.mxu0 %v7412_v58  ;;  %5829 = vmatprep.subr.bf16.mxu1 %v5828_v25 }
 0x540   : > { %5831 = vmatpush3.bf16.msra.mxu1 %v5828_v25 }
 0x541   : > { %5833 = vmatprep.subr.bf16.mxu1 %v5832_v28 }
 0x544   : > { %5835 = vmatpush3.bf16.msra.mxu1 %v5832_v28 }
 0x5ac   : > { %v1760_v31 = vpop.xlane.xlu0 %1759 }
 0x5ad   : > { %v1764_v33 = vmul.f32 0.0078125, %v1760_v31  ;;  %v5836_v31 = vpack.c.bf16 %v1845_v30, %v1842_v29 }
 0x5af   : > { %v8169_v35 = vsub.f32 %v8150_v11, %v1764_v33  ;;  %5837 = vmatprep.subr.bf16.mxu1 %v5836_v31 }
 0x5b0   : > { %v1762_v32 = vpop.xlane.xlu1 %1761  ;;  %5839 = vmatpush3.bf16.msra.mxu1 %v5836_v31 }
 0x5b1   : > { %v1765_v34 = vmul.f32 0.0078125, %v1762_v32  ;;  %v1768_v37 = vmul.f32 %v8169_v35, %v8169_v35  ;;  %5480 = vmatprep.subr.mxu1 %v7412_v58 }
 0x5b3   : > { %v8172_v36 = vsub.f32 %v8152_v12, %v1765_v34  ;;  %1770 = vadd.xlane.f32.xlu0 %v1768_v37 }
 0x5b5   : > { %v1769_v38 = vmul.f32 %v8172_v36, %v8172_v36 }
 0x5b7   : > { %1772 = vadd.xlane.f32.xlu1 %v1769_v38 }
 0x640   : > { %v1771_v32 = vpop.xlane.xlu0 %1770 }
 0x641   : > { %v1774_v34 = vmul.f32 0.0078125, %v1771_v32 }
 0x643   : > { %v1776_v38 = vadd.f32 1e-05, %v1774_v34 }
 0x644   : > { %v1773_v33 = vpop.xlane.xlu1 %1772 }
 0x645   : > { %v1775_v37 = vmul.f32 0.0078125, %v1773_v33  ;;  %6446 = vrsqrt.f32 %v1776_v38 }
 0x647   : > { %v1777_v39 = vadd.f32 1e-05, %v1775_v37 }
 0x649   : > { %6448 = vrsqrt.f32 %v1777_v39 }
 0x64f   : > { %v6447_v40 = vpop.eup %6446 }
 0x650   : > { %v1780_v43 = vmul.f32 %v6447_v40, %v8169_v35  ;;  %v1848_v35 = vlaneseq }
 0x652   : > { %v1788_v46 = vmul.f32 %v5125_v41, %v1780_v43 }
 0x653   : > { %v6449_v42 = vpop.eup %6448 }
 0x654   : > { %v1781_v45 = vmul.f32 %v6449_v42, %v8172_v36  ;;  %v1796_v48 = vadd.f32 %v5126_v44, %v1788_v46  ;;  %v8230_v36 = vshrl.u32 %v1848_v35, 7 }
 0x656   : > { %v1789_v47 = vmul.f32 %v5125_v41, %v1781_v45  ;;  %1928 = vmatmul.mubr.f32.vlgmr.msra.gmra.mrb[0].mxu0 %v1796_v48  ;;  %5447 = vmatprep.mubr.f32.mxu1 %v1796_v48  ;;  %v1850_v50 = vsub.s32 0, %v8230_v36  ;;  %v1854_v52 = vsub.s32 1, %v8230_v36  ;;  %v1858_v53 = vsub.s32 2, %v8230_v36 }
 0x657   : > { %1933 = vmatprep.mubr.f32.mxu0 %v7412_v58 }
 0x658   : > { %v1797_v49 = vadd.f32 %v5126_v44, %v1789_v47  ;;  %v1851_v54 = vrot.slane %v1846_v51, %v1850_v50  ;;  %v1855_v55 = vrot.slane %v1846_v51, %v1854_v52  ;;  %v1859_v56 = vrot.slane %v1846_v51, %v1858_v53 }
 0x65a   : > { %5448 = vmatmul.mubr.f32.vlgmr.msra.gmra.mrb[0].mxu1 %v1797_v49  ;;  %1934 = vmatmul.mubr.f32.gmra.mrb[2].mxu0 %v1797_v49 }
 0x65b   : > { %5452 = vmatprep.mubr.msk.f32.mxu0 %vm7413_vm3, %v7412_v58  ;;  %5482 = vmatprep.mubr.msk.f32.mxu1 %vm7413_vm3, %v7412_v58 }
 0x729   : > { %v1929_v57 = vpop.f32.mrb[0].mxu0 }
 0x72a   : > { %v1930_v59 = vadd.f32 %v1929_v57, %v1851_v54  ;;  %v1931_v60 = vpop.f32.mrb[1].mxu0 }
 0x72b   : > { %v1932_v62 = vadd.f32 %v1931_v60, %v1855_v55 }
 0x72c   : > { %v8247_v3 = vmul.f32 0.17677669, %v1930_v59 }
 0x72d   : > { %v5449_v61 = vpop.f32.mrb[0].mxu1  ;;  %5451 = vmatpush3.xpose.msk.msra.mxu0 %vm2024_vm4, %v1932_v62  ;;  %v1935_v1 = vpop.f32.mrb[2].mxu0 }
 0x72e   : > { %v8242_v63 = vadd.f32 %v5449_v61, %v1859_v56  ;;  %v2006_v0 = vpop.f32.mrb[1].mxu1  ;;  %v8249_v4 = vadd.f32 %v1935_v1, %v1851_v54  ;;  %v1937_v5 = vpop.f32.mrb[3].mxu0  ;;  %5455 = vmatprep.subr.mxu0 %v7412_v58 }
 0x72f   : > { %v8245_v2 = vadd.f32 %v2006_v0, %v1859_v56  ;;  %v8252_v6 = vadd.f32 %v1937_v5, %v1855_v55 }
 0x730   : > { %5453 = vmatmul.mubr.msk.f32.vlgmr.msra.gmra.mrb[4].mxu0 %vm2024_vm4, %v8247_v3  ;;  %v2016_v40 = vmul.f32 0.17677669, %v8249_v4 }
 0x731   : > { %5456 = vmatpush3.msra.mxu0 %v8245_v2  ;;  %5457 = vmatprep.mubr.msk.f32.mxu0 %vm7413_vm3, %v7412_v58 }
 0x732   : > { %5460 = vmatprep.subr.mxu0 %v7412_v58 }
 0x803   : > { %v2097_v8 = vpop.f32.mrb[4].mxu0 }
 0x804   : > { %v2098_v9 = vadd.f32 %v8261_v7, %v2097_v8  ;;  %v5454_v10 = vpop.f32.mrb[5].mxu0 }
 0x806   : > { %v2102_v13 = vsel %vm2101_vm5, %v2098_v9, -inf }
 0x807   : > { %2103 = vmax.xlane.f32.xlu0 %v2102_v13 }
 0x81d   : > { %2188 = vrot.lane.b32.xlu0 %v1932_v62, %s7414_s13 }
 0x894   : > { %v2104_v14 = vpop.xlane.xlu0 %2103 }
 0x895   : > { %v2105_v15 = vsub.f32 %v2098_v9, %v2104_v14 }
 0x897   : > { %v2106_v16 = vmul.f32 1.442695, %v2105_v15 }
 0x898   : > { %v2189_v22 = vpop.permute.xlu0 %2188 }
 0x899   : > { %6450 = vpow2.f32 %v2106_v16 }
 0x8a3   : > { %v6451_v17 = vpop.eup %6450 }
 0x8a4   : > { %v2108_v18 = vsel %vm2101_vm5, %v6451_v17, 0.0 }
 0x8a5   : > { %2109 = vadd.xlane.f32.xlu1 %v2108_v18 }
 0x8b6   : > { %2186 = vrot.lane.b32.xlu1 %v8247_v3, %s7414_s13 }
 0x932   : > { %v2110_v19 = vpop.xlane.xlu1 %2109 }
 0x933   : > { %6452 = vrcp.f32 %v2110_v19 }
 0x936   : > { %v2187_v23 = vpop.permute.xlu1 %2186 }
 0x93d   : > { %v6453_v20 = vpop.eup %6452 }
 0x93e   : > { %v2112_v21 = vmul.f32 %v6453_v20, %v6451_v17 }
 0x940   : > { %5458 = vmatmul.mubr.msk.f32.vlgmr.msra.gmra.mrb[6].mxu0 %vm2101_vm5, %v2112_v21 }
 0x941   : > { %5461 = vmatpush3.xpose.msk.msra.mxu0 %vm2024_vm4, %v2189_v22  ;;  %5462 = vmatprep.mubr.msk.f32.mxu0 %vm7413_vm3, %v7412_v58 }
 0x942   : > { %5465 = vmatprep.subr.mxu0 %v7412_v58 }
 0x944   : > { %5463 = vmatmul.mubr.msk.f32.vlgmr.msra.gmra.mrb[8].mxu0 %vm2024_vm4, %v2187_v23 }
 0x945   : > { %5467 = vmatprep.mubr.msk.f32.mxu0 %vm7413_vm3, %v7412_v58 }
 0xa13   : > { %v8277_v24 = vpop.f32.mrb[6].mxu0 }
 0xa14   : > { %v5459_v25 = vpop.f32.mrb[7].mxu0 }
 0xa17   : > { %v2260_v26 = vpop.f32.mrb[8].mxu0 }
 0xa18   : > { %v2261_v27 = vadd.f32 %v8261_v7, %v2260_v26  ;;  %v5464_v28 = vpop.f32.mrb[9].mxu0 }
 0xa1a   : > { %v2264_v29 = vsel %vm2101_vm5, %v2261_v27, -inf }
 0xa1b   : > { %2265 = vmax.xlane.f32.xlu1 %v2264_v29 }
 0xa2c   : > { %2354 = vrot.lane.b32.xlu1 %v1932_v62, %s7415_s16 }
 0xa30   : > { %2352 = vrot.lane.b32.xlu1 %v8247_v3, %s7415_s16 }
 0xa34   : > { %2519 = vrot.lane.b32.xlu1 %v1932_v62, %s7416_s25 }
 0xa38   : > { %2861 = vrot.lane.b32.xlu1 %v8252_v6, %s7414_s13 }
 0xa3c   : > { %3027 = vrot.lane.b32.xlu1 %v8252_v6, %s7415_s16 }
 0xa40   : > { %3192 = vrot.lane.b32.xlu1 %v8252_v6, %s7416_s25 }
 0xaa8   : > { %v2266_v30 = vpop.xlane.xlu1 %2265 }
 0xaa9   : > { %v2267_v31 = vsub.f32 %v2261_v27, %v2266_v30 }
 0xaab   : > { %v2268_v32 = vmul.f32 1.442695, %v2267_v31 }
 0xaac   : > { %v2355_v33 = vpop.permute.xlu1 %2354 }
 0xaad   : > { %6454 = vpow2.f32 %v2268_v32 }
 0xab0   : > { %v2353_v34 = vpop.permute.xlu1 %2352 }
 0xab4   : > { %v2520_v37 = vpop.permute.xlu1 %2519 }
 0xab5   : > { %5481 = vmatpush3.xpose.msk.msra.mxu1 %vm2024_vm4, %v2520_v37 }
 0xab6   : > { %5490 = vmatprep.subr.mxu1 %v7412_v58 }
 0xab7   : > { %v6455_v38 = vpop.eup %6454 }
 0xab8   : > { %v2270_v39 = vsel %vm2101_vm5, %v6455_v38, 0.0  ;;  %v2862_v44 = vpop.permute.xlu1 %2861 }
 0xab9   : > { %2271 = vadd.xlane.f32.xlu0 %v2270_v39 }
 0xabc   : > { %v3028_v48 = vpop.permute.xlu1 %3027 }
 0xac0   : > { %v3193_v35 = vpop.permute.xlu1 %3192 }
 0xacf   : > { %2276 = vrot.lane.b32.xlu0 %v8245_v2, %s7414_s13 }
 0xad3   : > { %2517 = vrot.lane.b32.xlu0 %v8247_v3, %s7416_s25 }
 0xad7   : > { %2859 = vrot.lane.b32.xlu0 %v2016_v40, %s7414_s13 }
 0xadb   : > { %3025 = vrot.lane.b32.xlu0 %v2016_v40, %s7415_s16 }
 0xadf   : > { %3190 = vrot.lane.b32.xlu0 %v2016_v40, %s7416_s25 }
 0xb46   : > { %v2272_v41 = vpop.xlane.xlu0 %2271 }
 0xb47   : > { %6456 = vrcp.f32 %v2272_v41 }
 0xb4a   : > { %v2277_v42 = vpop.permute.xlu0 %2276 }
 0xb4b   : > { %5466 = vmatpush3.msra.mxu0 %v2277_v42 }
 0xb4c   : > { %5470 = vmatprep.subr.mxu0 %v7412_v58 }
 0xb4e   : > { %v2518_v43 = vpop.permute.xlu0 %2517 }
 0xb4f   : > { %5483 = vmatmul.mubr.msk.f32.vlgmr.msra.gmra.mrb[2].mxu1 %vm2024_vm4, %v2518_v43 }
 0xb50   : > { %5491 = vmatpush3.xpose.msk.msra.mxu1 %vm2024_vm4, %v8252_v6  ;;  %5492 = vmatprep.mubr.msk.f32.mxu1 %vm7413_vm3, %v7412_v58 }
 0xb51   : > { %v6457_v45 = vpop.eup %6456  ;;  %5500 = vmatprep.subr.mxu1 %v7412_v58 }
 0xb52   : > { %v2274_v46 = vmul.f32 %v6457_v45, %v6455_v38  ;;  %v2860_v47 = vpop.permute.xlu0 %2859 }
 0xb53   : > { %5493 = vmatmul.mubr.msk.f32.vlgmr.msra.gmra.mrb[4].mxu1 %vm2024_vm4, %v2016_v40 }
 0xb54   : > { %5501 = vmatpush3.xpose.msk.msra.mxu1 %vm2024_vm4, %v2862_v44  ;;  %5468 = vmatmul.mubr.msk.f32.vlgmr.msra.gmra.mrb[10].mxu0 %vm2101_vm5, %v2274_v46 }
 0xb55   : > { %5471 = vmatpush3.xpose.msk.msra.mxu0 %vm2024_vm4, %v2355_v33  ;;  %5502 = vmatprep.mubr.msk.f32.mxu1 %vm7413_vm3, %v7412_v58 }
 0xb56   : > { %5510 = vmatprep.subr.mxu1 %v7412_v58  ;;  %5472 = vmatprep.mubr.msk.f32.mxu0 %vm7413_vm3, %v7412_v58  ;;  %v3026_v49 = vpop.permute.xlu0 %3025 }
 0xb57   : > { %5503 = vmatmul.mubr.msk.f32.vlgmr.msra.gmra.mrb[6].mxu1 %vm2024_vm4, %v2860_v47  ;;  %5475 = vmatprep.subr.mxu0 %v7412_v58 }
 0xb58   : > { %5511 = vmatpush3.xpose.msk.msra.mxu1 %vm2024_vm4, %v3028_v48  ;;  %5473 = vmatmul.mubr.msk.f32.vlgmr.msra.gmra.mrb[12].mxu0 %vm2024_vm4, %v2353_v34 }
 0xb59   : > { %5512 = vmatprep.mubr.msk.f32.mxu1 %vm7413_vm3, %v7412_v58  ;;  %5520 = vmatprep.subr.mxu1 %v7412_v58 }
 0xb5a   : > { %5477 = vmatprep.mubr.msk.f32.mxu0 %vm7413_vm3, %v7412_v58  ;;  %v3191_v51 = vpop.permute.xlu0 %3190 }
 0xb5b   : > { %5513 = vmatmul.mubr.msk.f32.vlgmr.msra.gmra.mrb[8].mxu1 %vm2024_vm4, %v3026_v49 }
 0xb5c   : > { %5521 = vmatpush3.xpose.msk.msra.mxu1 %vm2024_vm4, %v3193_v35  ;;  %5522 = vmatprep.mubr.msk.f32.mxu1 %vm7413_vm3, %v7412_v58 }
 0xb5f   : > { %5523 = vmatmul.mubr.msk.f32.vlgmr.msra.gmra.mrb[10].mxu1 %vm2024_vm4, %v3191_v51 }
 0xc22   : > { %v2591_v54 = vpop.f32.mrb[2].mxu1 }
 0xc23   : > { %v2592_v55 = vadd.f32 %v8261_v7, %v2591_v54  ;;  %v5484_v56 = vpop.f32.mrb[3].mxu1 }
 0xc25   : > { %v2595_v57 = vsel %vm2101_vm5, %v2592_v55, -inf }
 0xc26   : > { %2596 = vmax.xlane.f32.xlu0 %v2595_v57  ;;  %v2771_v59 = vpop.f32.mrb[4].mxu1 }
 0xc27   : > { %v2772_v60 = vadd.f32 %v8261_v7, %v2771_v59  ;;  %v8335_v61 = vpop.f32.mrb[10].mxu0  ;;  %v5494_v62 = vpop.f32.mrb[5].mxu1 }
 0xc28   : > { %v5469_v0 = vpop.f32.mrb[11].mxu0 }
 0xc29   : > { %v2775_v1 = vsel %vm2101_vm5, %v2772_v60, -inf }
 0xc2a   : > { %2776 = vmax.xlane.f32.xlu0 %v2775_v1  ;;  %v2933_v3 = vpop.f32.mrb[6].mxu1 }
 0xc2b   : > { %v2934_v4 = vadd.f32 %v8261_v7, %v2933_v3  ;;  %v2426_v5 = vpop.f32.mrb[12].mxu0  ;;  %v5504_v6 = vpop.f32.mrb[7].mxu1 }
 0xc2c   : > { %v2427_v8 = vadd.f32 %v8261_v7, %v2426_v5  ;;  %v5474_v9 = vpop.f32.mrb[13].mxu0 }
 0xc2d   : > { %v2937_v10 = vsel %vm2101_vm5, %v2934_v4, -inf }
 0xc2e   : > { %2938 = vmax.xlane.f32.xlu0 %v2937_v10  ;;  %v3099_v13 = vpop.f32.mrb[8].mxu1  ;;  %v2430_v14 = vsel %vm2101_vm5, %v2427_v8, -inf }
 0xc2f   : > { %v3100_v15 = vadd.f32 %v8261_v7, %v3099_v13  ;;  %v5514_v16 = vpop.f32.mrb[9].mxu1  ;;  %2431 = vmax.xlane.f32.xlu1 %v2430_v14 }
 0xc31   : > { %v3103_v17 = vsel %vm2101_vm5, %v3100_v15, -inf }
 0xc32   : > { %v3264_v18 = vpop.f32.mrb[10].mxu1 }
 0xc33   : > { %v3265_v19 = vadd.f32 %v8261_v7, %v3264_v18  ;;  %v5524_v20 = vpop.f32.mrb[11].mxu1  ;;  %3104 = vmax.xlane.f32.xlu1 %v3103_v17 }
 0xc34   : > { %v3370_v20 = vld [vmem:[%s8072_s6] sm:$0xff] }
 0xc35   : > { %v3268_v21 = vsel %vm2101_vm5, %v3265_v19, -inf }
 0xc36   : > { %3269 = vmax.xlane.f32.xlu0 %v3268_v21  ;;  %v3371_v21 = vld [vmem:[%s8072_s6 + $0x8] sm:$0xff] }
 0xcb3   : > { %v2597_v22 = vpop.xlane.xlu0 %2596 }
 0xcb4   : > { %v2598_v23 = vsub.f32 %v2592_v55, %v2597_v22  ;;  %v3372_v22 = vld [vmem:[%s8072_s6 + $0x10] sm:$0xff] }
 0xcb6   : > { %v2599_v25 = vmul.f32 1.442695, %v2598_v23  ;;  %v5840_v23 = vpack.c.bf16 %v3371_v21, %v3370_v20 }
 0xcb7   : > { %v2777_v26 = vpop.xlane.xlu0 %2776 }
 0xcb8   : > { %6458 = vpow2.f32 %v2599_v25  ;;  %v2778_v27 = vsub.f32 %v2772_v60, %v2777_v26  ;;  %v3373_v25 = vld [vmem:[%s8072_s6 + $0x18] sm:$0xff]  ;;  %5841 = vmatprep.subr.bf16.mxu1 %v5840_v23 }
 0xcb9   : > { %v5844_v26 = vpack.c.bf16 %v3373_v25, %v3372_v22  ;;  %5843 = vmatpush3.bf16.msra.mxu1 %v5840_v23  ;;  %v3513_v25 = vld [vmem:[%s8085_s4 + $0x8] sm:$0xff] }
 0xcba   : > { %v2779_v28 = vmul.f32 1.442695, %v2778_v27  ;;  %v3374_v27 = vld [vmem:[%s8072_s6 + $0x20] sm:$0xff] }
 0xcbb   : > { %v2939_v29 = vpop.xlane.xlu0 %2938  ;;  %5845 = vmatprep.subr.bf16.mxu1 %v5844_v26 }
 0xcbc   : > { %6460 = vpow2.f32 %v2779_v28  ;;  %v2940_v30 = vsub.f32 %v2934_v4, %v2939_v29  ;;  %v2432_v31 = vpop.xlane.xlu1 %2431  ;;  %v3375_v28 = vld [vmem:[%s8072_s6 + $0x28] sm:$0xff] }
 0xcbd   : > { %v2433_v33 = vsub.f32 %v2427_v8, %v2432_v31  ;;  %v5848_v29 = vpack.c.bf16 %v3375_v28, %v3374_v27  ;;  %v3377_v31 = vld [vmem:[%s8072_s6 + $0x38] sm:$0xff]  ;;  %5847 = vmatpush3.bf16.msra.mxu1 %v5844_v26  ;;  %v3517_v26 = vld [vmem:[%s8085_s4 + $0x28] sm:$0xff] }
 0xcbe   : > { %v2941_v32 = vmul.f32 1.442695, %v2940_v30  ;;  %v3376_v30 = vld [vmem:[%s8072_s6 + $0x30] sm:$0xff]  ;;  %v5872_v27 = vpack.c.bf16 %v3517_v26, %v3513_v25  ;;  %v3519_v28 = vld [vmem:[%s8085_s4 + $0x38] sm:$0xff] }
 0xcbf   : > { %v2434_v38 = vmul.f32 1.442695, %v2433_v33  ;;  %5849 = vmatprep.subr.bf16.mxu1 %v5848_v29  ;;  %v3378_v33 = vld [vmem:[%s8072_s6 + $0x40] sm:$0xff]  ;;  %v3549_v25 = vld [vmem:[%s8085_s4 + $0x128] sm:$0xff] }
 0xcc0   : > { %6462 = vpow2.f32 %v2941_v32  ;;  %v3105_v7 = vpop.xlane.xlu1 %3104  ;;  %v5852_v32 = vpack.c.bf16 %v3377_v31, %v3376_v30  ;;  %v3547_v26 = vld [vmem:[%s8085_s4 + $0x118] sm:$0xff] }
 0xcc1   : > { %v3106_v34 = vsub.f32 %v3100_v15, %v3105_v7  ;;  %v3379_v7 = vld [vmem:[%s8072_s6 + $0x48] sm:$0xff]  ;;  %5851 = vmatpush3.bf16.msra.mxu1 %v5848_v29 }
 0xcc2   : > { %v6459_v37 = vpop.eup %6458  ;;  %5853 = vmatprep.subr.bf16.mxu1 %v5852_v32  ;;  %v3512_v29 = vld [vmem:[%s8085_s4] sm:$0xff] }
 0xcc3   : > { %v3107_v39 = vmul.f32 1.442695, %v3106_v34  ;;  %v3270_v40 = vpop.xlane.xlu0 %3269  ;;  %v2601_v41 = vsel %vm2101_vm5, %v6459_v37, 0.0  ;;  %v5856_v34 = vpack.c.bf16 %v3379_v7, %v3378_v33  ;;  %v3518_v33 = vld [vmem:[%s8085_s4 + $0x30] sm:$0xff]  ;;  %v3521_v7 = vld [vmem:[%s8085_s4 + $0x48] sm:$0xff] }
 0xcc4   : > { %v3271_v42 = vsub.f32 %v3265_v19, %v3270_v40  ;;  %2602 = vadd.xlane.f32.xlu0 %v2601_v41 }
 0xcc5   : > { %6464 = vpow2.f32 %v3107_v39  ;;  %5855 = vmatpush3.bf16.msra.mxu1 %v5852_v32  ;;  %v3381_v39 = vld [vmem:[%s8072_s6 + $0x58] sm:$0xff] }
 0xcc6   : > { %v6461_v43 = vpop.eup %6460  ;;  %v3272_v44 = vmul.f32 1.442695, %v3271_v42  ;;  %6466 = vpow2.f32 %v2434_v38  ;;  %5857 = vmatprep.subr.bf16.mxu1 %v5856_v34  ;;  %v3380_v38 = vld [vmem:[%s8072_s6 + $0x50] sm:$0xff] }
 0xcc7   : > { %v2781_v45 = vsel %vm2101_vm5, %v6461_v43, 0.0  ;;  %v5860_v41 = vpack.c.bf16 %v3381_v39, %v3380_v38  ;;  %v3514_v32 = vld [vmem:[%s8085_s4 + $0x10] sm:$0xff]  ;;  %v3523_v38 = vld [vmem:[%s8085_s4 + $0x58] sm:$0xff] }
 0xcc8   : > { %6468 = vpow2.f32 %v3272_v44  ;;  %2782 = vadd.xlane.f32.xlu1 %v2781_v45  ;;  %v3383_v44 = vld [vmem:[%s8072_s6 + $0x68] sm:$0xff]  ;;  %v3527_v39 = vld [vmem:[%s8085_s4 + $0x78] sm:$0xff] }
 0xcc9   : > { %5859 = vmatpush3.bf16.msra.mxu1 %v5856_v34  ;;  %v5906_v34 = vpack.c.bf16 %v3518_v33, %v3514_v32  ;;  %v3550_v32 = vld [vmem:[%s8085_s4 + $0x130] sm:$0xff] }
 0xcca   : > { %v6463_v46 = vpop.eup %6462  ;;  %5861 = vmatprep.subr.bf16.mxu1 %v5860_v41 }
 0xccb   : > { %v2943_v47 = vsel %vm2101_vm5, %v6463_v46, 0.0 }
 0xccc   : > { %2944 = vadd.xlane.f32.xlu0 %v2943_v47 }
 0xccd   : > { %5863 = vmatpush3.bf16.msra.mxu1 %v5860_v41  ;;  %v5908_v41 = vpack.c.bf16 %v3527_v39, %v3523_v38  ;;  %v3559_v39 = vld [vmem:[%s8085_s4 + $0x178] sm:$0xff] }
 0xccf   : > { %v6465_v48 = vpop.eup %6464 }
 0xcd0   : > { %v3109_v49 = vsel %vm2101_vm5, %v6465_v48, 0.0  ;;  %v6467_v35 = vpop.eup %6466 }
 0xcd1   : > { %3110 = vadd.xlane.f32.xlu1 %v3109_v49  ;;  %v2436_v55 = vsel %vm2101_vm5, %v6467_v35, 0.0  ;;  %v3385_v49 = vld [vmem:[%s8072_s6 + $0x78] sm:$0xff] }
 0xcd2   : > { %v6469_v51 = vpop.eup %6468 }
 0xcd3   : > { %v3274_v54 = vsel %vm2101_vm5, %v6469_v51, 0.0 }
 0xcd4   : > { %3275 = vadd.xlane.f32.xlu0 %v3274_v54 }
 0xcd5   : > { %2437 = vadd.xlane.f32.xlu1 %v2436_v55 }
 0xce6   : > { %2441 = vrot.lane.b32.xlu1 %v8245_v2, %s7415_s16 }
 0xcea   : > { %2606 = vrot.lane.b32.xlu0 %v8245_v2, %s7416_s25  ;;  %2949 = vrot.lane.b32.xlu1 %v8242_v63, %s7414_s13 }
 0xcee   : > { %3114 = vrot.lane.b32.xlu1 %v8242_v63, %s7415_s16 }
 0xcf2   : > { %3279 = vrot.lane.b32.xlu1 %v8242_v63, %s7416_s25 }
 0xd51   : > { %v2603_v59 = vpop.xlane.xlu0 %2602 }
 0xd55   : > { %v2783_v56 = vpop.xlane.xlu1 %2782 }
 0xd59   : > { %v2945_v62 = vpop.xlane.xlu0 %2944 }
 0xd5e   : > { %v3111_v57 = vpop.xlane.xlu1 %3110 }
 0xd61   : > { %v3276_v2 = vpop.xlane.xlu0 %3275 }
 0xd62   : > { %v2438_v60 = vpop.xlane.xlu1 %2437 }
 0xd63   : > { %6470 = vrcp.f32 %v2438_v60 }
 0xd64   : > { %6472 = vrcp.f32 %v2603_v59 }
 0xd65   : > { %6474 = vrcp.f32 %v2783_v56  ;;  %v2607_v5 = vpop.permute.xlu0 %2606 }
 0xd66   : > { %v2442_v0 = vpop.permute.xlu1 %2441  ;;  %6476 = vrcp.f32 %v2945_v62 }
 0xd67   : > { %5476 = vmatpush3.msra.mxu0 %v2442_v0  ;;  %6478 = vrcp.f32 %v3111_v57 }
 0xd68   : > { %5485 = vmatprep.subr.mxu0 %v7412_v58  ;;  %6480 = vrcp.f32 %v3276_v2 }
 0xd6a   : > { %v2950_v9 = vpop.permute.xlu1 %2949 }
 0xd6d   : > { %v6471_v1 = vpop.eup %6470 }
 0xd6e   : > { %v2440_v3 = vmul.f32 %v6471_v1, %v6467_v35  ;;  %v6473_v4 = vpop.eup %6472  ;;  %v3115_v15 = vpop.permute.xlu1 %3114 }
 0xd6f   : > { %v2605_v6 = vmul.f32 %v6473_v4, %v6459_v37  ;;  %v6475_v8 = vpop.eup %6474 }
 0xd70   : > { %5478 = vmatmul.mubr.msk.f32.vlgmr.msra.gmra.mrb[14].mxu0 %vm2101_vm5, %v2440_v3  ;;  %v2785_v10 = vmul.f32 %v6475_v8, %v6461_v43  ;;  %v6477_v13 = vpop.eup %6476  ;;  %v3382_v43 = vld [vmem:[%s8072_s6 + $0x60] sm:$0xff] }
 0xd71   : > { %5486 = vmatpush3.msra.mxu0 %v2607_v5  ;;  %5487 = vmatprep.mubr.msk.f32.mxu0 %vm7413_vm3, %v7412_v58  ;;  %v2947_v14 = vmul.f32 %v6477_v13, %v6463_v46  ;;  %v5864_v46 = vpack.c.bf16 %v3383_v44, %v3382_v43  ;;  %v3524_v43 = vld [vmem:[%s8085_s4 + $0x60] sm:$0xff]  ;;  %v3522_v44 = vld [vmem:[%s8085_s4 + $0x50] sm:$0xff] }
 0xd72   : > { %5495 = vmatprep.subr.mxu0 %v7412_v58  ;;  %v3280_v18 = vpop.permute.xlu1 %3279 }
 0xd73   : > { %5865 = vmatprep.subr.bf16.mxu1 %v5864_v46 }
 0xd74   : > { %5488 = vmatmul.mubr.msk.f32.vlgmr.msra.gmra.mrb[16].mxu0 %vm2101_vm5, %v2605_v6  ;;  %5867 = vmatpush3.bf16.msra.mxu1 %v5864_v46  ;;  %v3526_v46 = vld [vmem:[%s8085_s4 + $0x70] sm:$0xff] }
 0xd75   : > { %5496 = vmatpush3.msra.mxu0 %v8242_v63  ;;  %5497 = vmatprep.mubr.msk.f32.mxu0 %vm7413_vm3, %v7412_v58  ;;  %v6479_v63 = vpop.eup %6478 }
 0xd76   : > { %5505 = vmatprep.subr.mxu0 %v7412_v58  ;;  %v3113_v16 = vmul.f32 %v6479_v63, %v6465_v48  ;;  %v6481_v17 = vpop.eup %6480  ;;  %v3384_v48 = vld [vmem:[%s8072_s6 + $0x70] sm:$0xff] }
 0xd77   : > { %v3278_v19 = vmul.f32 %v6481_v17, %v6469_v51  ;;  %v5868_v51 = vpack.c.bf16 %v3385_v49, %v3384_v48  ;;  %v3533_v48 = vld [vmem:[%s8085_s4 + $0xa8] sm:$0xff]  ;;  %v5910_v49 = vpack.c.bf16 %v3526_v46, %v3522_v44  ;;  %v3554_v44 = vld [vmem:[%s8085_s4 + $0x150] sm:$0xff] }
 0xd78   : > { %5498 = vmatmul.mubr.msk.f32.vlgmr.msra.gmra.mrb[18].mxu0 %vm2101_vm5, %v2785_v10  ;;  %v3561_v46 = vld [vmem:[%s8085_s4 + $0x188] sm:$0xff] }
 0xd79   : > { %5506 = vmatpush3.msra.mxu0 %v2950_v9  ;;  %5507 = vmatprep.mubr.msk.f32.mxu0 %vm7413_vm3, %v7412_v58 }
 0xd7a   : > { %5515 = vmatprep.subr.mxu0 %v7412_v58  ;;  %5869 = vmatprep.subr.bf16.mxu1 %v5868_v51 }
 0xd7b   : > { %5871 = vmatpush3.bf16.msra.mxu1 %v5868_v51  ;;  %v3531_v51 = vld [vmem:[%s8085_s4 + $0x98] sm:$0xff] }
 0xd7c   : > { %5508 = vmatmul.mubr.msk.f32.vlgmr.msra.gmra.mrb[20].mxu0 %vm2101_vm5, %v2947_v14 }
 0xd7d   : > { %5516 = vmatpush3.msra.mxu0 %v3115_v15  ;;  %5517 = vmatprep.mubr.msk.f32.mxu0 %vm7413_vm3, %v7412_v58 }
 0xd7e   : > { %5525 = vmatprep.subr.mxu0 %v7412_v58 }
 0xd80   : > { %5518 = vmatmul.mubr.msk.f32.vlgmr.msra.gmra.mrb[22].mxu0 %vm2101_vm5, %v3113_v16 }
 0xd81   : > { %5526 = vmatpush3.msra.mxu0 %v3280_v18  ;;  %5527 = vmatprep.mubr.msk.f32.mxu0 %vm7413_vm3, %v7412_v58 }
 0xd82   : > { %5873 = vmatprep.subr.bf16.mxu0 %v5872_v27  ;;  %v3551_v27 = vld [vmem:[%s8085_s4 + $0x138] sm:$0xff] }
 0xd84   : > { %5528 = vmatmul.mubr.msk.f32.vlgmr.msra.gmra.mrb[24].mxu0 %vm2101_vm5, %v3278_v19  ;;  %v5152_v19 = vld [vmem:[%s1588_s28] ss:$0 sm:$0xff] }
 0xd85   : > { %3662 = vmatprep.mubr.f32.mxu0 %v7412_v58 }
 0xe43   : > { %v2513_v37 = vpop.f32.mrb[14].mxu0 }
 0xe44   : > { %v5479_v40 = vpop.f32.mrb[15].mxu0 }
 0xe47   : > { %v2678_v42 = vpop.f32.mrb[16].mxu0 }
 0xe48   : > { %v5489_v45 = vpop.f32.mrb[17].mxu0 }
 0xe4b   : > { %v2855_v47 = vpop.f32.mrb[18].mxu0 }
 0xe4c   : > { %v5499_v35 = vpop.f32.mrb[19].mxu0 }
 0xe4f   : > { %v3021_v54 = vpop.f32.mrb[20].mxu0 }
 0xe50   : > { %v6431_v55 = vpack.i.bf16 %v3021_v54, %v8335_v61  ;;  %v5509_v56 = vpop.f32.mrb[21].mxu0  ;;  %v3535_v54 = vld [vmem:[%s8085_s4 + $0xb8] sm:$0xff] }
 0xe51   : > { %v5912_v56 = vpack.c.bf16 %v3535_v54, %v3531_v51 }
 0xe52   : > { %6432 = vrot.lane.b32.xlu0 %v6431_v55, %s7416_s25  ;;  %v3528_v55 = vld [vmem:[%s8085_s4 + $0x80] sm:$0xff] }
 0xe53   : > { %v3186_v57 = vpop.f32.mrb[22].mxu0 }
 0xe54   : > { %v6436_v59 = vpack.i.bf16 %v3186_v57, %v2513_v37  ;;  %v5519_v60 = vpop.f32.mrb[23].mxu0  ;;  %v3525_v37 = vld [vmem:[%s8085_s4 + $0x68] sm:$0xff]  ;;  %v3532_v57 = vld [vmem:[%s8085_s4 + $0xa0] sm:$0xff] }
 0xe55   : > { %v5876_v40 = vpack.c.bf16 %v3525_v37, %v3521_v7  ;;  %v3534_v60 = vld [vmem:[%s8085_s4 + $0xb0] sm:$0xff]  ;;  %v3553_v7 = vld [vmem:[%s8085_s4 + $0x148] sm:$0xff]  ;;  %v3555_v37 = vld [vmem:[%s8085_s4 + $0x158] sm:$0xff] }
 0xe56   : > { %6437 = vrot.lane.b32.xlu1 %v6436_v59, %s7415_s16  ;;  %v3530_v59 = vld [vmem:[%s8085_s4 + $0x90] sm:$0xff] }
 0xe57   : > { %v3351_v62 = vpop.f32.mrb[24].mxu0 }
 0xe58   : > { %v6441_v0 = vpack.i.bf16 %v3351_v62, %v2678_v42  ;;  %v5529_v2 = vpop.f32.mrb[25].mxu0  ;;  %v3520_v42 = vld [vmem:[%s8085_s4 + $0x40] sm:$0xff]  ;;  %v5882_v62 = vpack.c.bf16 %v3532_v57, %v3528_v55  ;;  %v3562_v57 = vld [vmem:[%s8085_s4 + $0x190] sm:$0xff] }
 0xe59   : > { %v5878_v45 = vpack.c.bf16 %v3524_v43, %v3520_v42  ;;  %v5924_v42 = vpack.c.bf16 %v3559_v39, %v3555_v37  ;;  %v3560_v55 = vld [vmem:[%s8085_s4 + $0x180] sm:$0xff] }
 0xe5a   : > { %6442 = vrot.lane.b32.xlu0 %v6441_v0, %s7414_s13  ;;  %v5914_v0 = vpack.c.bf16 %v3534_v60, %v3530_v59  ;;  %v3566_v60 = vld [vmem:[%s8085_s4 + $0x1b0] sm:$0xff]  ;;  %v3848_v39 = vld [vmem:[%s8087_s1 + $0x100] sm:$0xff] }
 0xec4   : > { %v6433_v1 = vpop.permute.xlu0 %6432 }
 0xec5   : > { %v6435_v4 = vunpack.i.h.bf16 %v6433_v1  ;;  %v6434_v5 = vunpack.i.l.bf16 %v6433_v1 }
 0xec7   : > { %v3367_v9 = vsel %vm2024_vm4, %v2855_v47, %v6435_v4  ;;  %v2694_v14 = vsel %vm2024_vm4, %v8277_v24, %v6434_v5  ;;  %v3529_v47 = vld [vmem:[%s8085_s4 + $0x88] sm:$0xff] }
 0xec8   : > { %v6438_v3 = vpop.permute.xlu1 %6437  ;;  %v5880_v35 = vpack.c.bf16 %v3533_v48, %v3529_v47  ;;  %v3565_v48 = vld [vmem:[%s8085_s4 + $0x1a8] sm:$0xff] }
 0xec9   : > { %v6440_v6 = vunpack.i.h.bf16 %v6438_v3  ;;  %v6439_v8 = vunpack.i.l.bf16 %v6438_v3  ;;  %v5896_v51 = vpack.c.bf16 %v3565_v48, %v3561_v46  ;;  %v3818_v46 = vld [vmem:[%s8087_s1 + $0x10] sm:$0xff] }
 0xecb   : > { %v2696_v15 = vsel %vm2695_vm6, %v2694_v14, %v6439_v8  ;;  %v3368_v63 = vsel %vm2695_vm6, %v3367_v9, %v6440_v6  ;;  %v3537_v9 = vld [vmem:[%s8085_s4 + $0xc8] sm:$0xff] }
 0xecc   : > { %v6443_v61 = vpop.permute.xlu0 %6442 }
 0xecd   : > { %v6445_v10 = vunpack.i.h.bf16 %v6443_v61  ;;  %v6444_v13 = vunpack.i.l.bf16 %v6443_v61 }
 0xecf   : > { %v2698_v16 = vsel %vm2697_vm7, %v2696_v15, %v6444_v13  ;;  %v3369_v17 = vsel %vm2697_vm7, %v3368_v63, %v6445_v10  ;;  %v3541_v10 = vld [vmem:[%s8085_s4 + $0xe8] sm:$0xff]  ;;  %v3539_v13 = vld [vmem:[%s8085_s4 + $0xd8] sm:$0xff]  ;;  %v3536_v63 = vld [vmem:[%s8085_s4 + $0xc0] sm:$0xff] }
 0xed0   : > { %5562 = vmatprep.mubr.f32.mxu1 %v2698_v16  ;;  %v5884_v14 = vpack.c.bf16 %v3541_v10, %v3537_v9  ;;  %v3543_v15 = vld [vmem:[%s8085_s4 + $0xf8] sm:$0xff]  ;;  %v3540_v16 = vld [vmem:[%s8085_s4 + $0xe0] sm:$0xff]  ;;  %v3570_v10 = vld [vmem:[%s8085_s4 + $0x1d0] sm:$0xff] }
 0xed1   : > { %5563 = vmatmul.mubr.f32.vlgmr.msra.gmra.mrb[12].mxu1 %v3369_v17  ;;  %v5916_v17 = vpack.c.bf16 %v3543_v15, %v3539_v13  ;;  %v3572_v9 = vld [vmem:[%s8085_s4 + $0x1e0] sm:$0xff]  ;;  %v3574_v13 = vld [vmem:[%s8085_s4 + $0x1f0] sm:$0xff] }
 0xed2   : > { %3739 = vmatprep.mubr.f32.mxu1 %v7412_v58  ;;  %v5934_v15 = vpack.c.bf16 %v3574_v13, %v3570_v10  ;;  %v3870_v10 = vld [vmem:[%s8087_s1 + $0x1b0] sm:$0xff] }
 0xfa4   : > { %v5564_v18 = vpop.f32.mrb[12].mxu1 }
 0xfa5   : > { %v3462_v20 = vadd.f32 %v5564_v18, %v8152_v12  ;;  %v3452_v24 = vpop.f32.mrb[13].mxu1  ;;  %v3515_v12 = vld [vmem:[%s8085_s4 + $0x18] sm:$0xff]  ;;  %v5886_v18 = vpack.c.bf16 %v3540_v16, %v3536_v63 }
 0xfa6   : > { %v3461_v21 = vadd.f32 %v3452_v24, %v8150_v11  ;;  %v3516_v11 = vld [vmem:[%s8085_s4 + $0x20] sm:$0xff]  ;;  %v5904_v30 = vpack.c.bf16 %v3519_v28, %v3515_v12 }
 0xfa7   : > { %v8414_v22 = vadd.f32 %v5152_v19, %v3462_v20  ;;  %v5874_v31 = vpack.c.bf16 %v3516_v11, %v3512_v29  ;;  %v3542_v20 = vld [vmem:[%s8085_s4 + $0xf0] sm:$0xff]  ;;  %v3544_v28 = vld [vmem:[%s8085_s4 + $0x100] sm:$0xff]  ;;  %v5920_v11 = vpack.c.bf16 %v3551_v27, %v3547_v26  ;;  %v5154_v26 = vld [vmem:[%s8883_s10] ss:$0 sm:$0xff] }
 0xfa8   : > { %v8416_v23 = vadd.f32 %v5152_v19, %v3461_v21  ;;  %5905 = vmatprep.subr.bf16.mxu1 %v5904_v30  ;;  %v3538_v19 = vld [vmem:[%s8085_s4 + $0xd0] sm:$0xff]  ;;  %v3545_v21 = vld [vmem:[%s8085_s4 + $0x108] sm:$0xff]  ;;  %v3548_v29 = vld [vmem:[%s8085_s4 + $0x120] sm:$0xff] }
 0xfa9   : > { %3476 = vadd.xlane.f32.xlu0 %v8414_v22  ;;  %5875 = vmatpush1.bf16.msra.mxu0 %v5874_v31  ;;  %v5918_v24 = vpack.c.bf16 %v3542_v20, %v3538_v19  ;;  %v5888_v12 = vpack.c.bf16 %v3549_v25, %v3545_v21  ;;  %v5890_v30 = vpack.c.bf16 %v3548_v29, %v3544_v28  ;;  %v3546_v31 = vld [vmem:[%s8085_s4 + $0x110] sm:$0xff] }
 0xfaa   : > { %3474 = vadd.xlane.f32.xlu1 %v8416_v23  ;;  %5907 = vmatpush1.bf16.msra.mxu1 %v5906_v34  ;;  %v5922_v33 = vpack.c.bf16 %v3550_v32, %v3546_v31  ;;  %v3557_v34 = vld [vmem:[%s8085_s4 + $0x168] sm:$0xff]  ;;  %v3864_v32 = vld [vmem:[%s8087_s1 + $0x180] sm:$0xff] }
 0xfab   : > { %5877 = vmatprep.subr.bf16.mxu0 %v5876_v40  ;;  %5909 = vmatprep.subr.bf16.mxu1 %v5908_v41  ;;  %v5892_v38 = vpack.c.bf16 %v3557_v34, %v3553_v7  ;;  %v3552_v40 = vld [vmem:[%s8085_s4 + $0x140] sm:$0xff]  ;;  %v3833_v31 = vld [vmem:[%s8087_s1 + $0x88] sm:$0xff] }
 0xfac   : > { %v3556_v41 = vld [vmem:[%s8085_s4 + $0x160] sm:$0xff]  ;;  %v3817_v34 = vld [vmem:[%s8087_s1 + $0x8] sm:$0xff] }
 0xfad   : > { %5879 = vmatpush1.bf16.msra.mxu0 %v5878_v45  ;;  %v5894_v43 = vpack.c.bf16 %v3556_v41, %v3552_v40  ;;  %v3558_v45 = vld [vmem:[%s8085_s4 + $0x170] sm:$0xff]  ;;  %v3816_v7 = vld [vmem:[%s8087_s1] sm:$0xff] }
 0xfae   : > { %5911 = vmatpush1.bf16.msra.mxu1 %v5910_v49  ;;  %5881 = vmatprep.subr.bf16.mxu0 %v5880_v35  ;;  %v5926_v47 = vpack.c.bf16 %v3558_v45, %v3554_v44  ;;  %v3563_v49 = vld [vmem:[%s8085_s4 + $0x198] sm:$0xff]  ;;  %v3834_v41 = vld [vmem:[%s8087_s1 + $0x90] sm:$0xff] }
 0xfaf   : > { %5913 = vmatprep.subr.bf16.mxu1 %v5912_v56  ;;  %v3567_v35 = vld [vmem:[%s8085_s4 + $0x1b8] sm:$0xff]  ;;  %v3564_v56 = vld [vmem:[%s8085_s4 + $0x1a0] sm:$0xff] }
 0xfb0   : > { %v5928_v54 = vpack.c.bf16 %v3567_v35, %v3563_v49  ;;  %v5898_v59 = vpack.c.bf16 %v3564_v56, %v3560_v55  ;;  %v3867_v45 = vld [vmem:[%s8087_s1 + $0x198] sm:$0xff]  ;;  %v3850_v35 = vld [vmem:[%s8087_s1 + $0x110] sm:$0xff]  ;;  %v3836_v55 = vld [vmem:[%s8087_s1 + $0xa0] sm:$0xff] }
 0xfb1   : > { %5883 = vmatpush1.bf16.msra.mxu0 %v5882_v62  ;;  %v3569_v62 = vld [vmem:[%s8085_s4 + $0x1c8] sm:$0xff] }
 0xfb2   : > { %5915 = vmatpush1.bf16.msra.mxu1 %v5914_v0  ;;  %5885 = vmatprep.subr.bf16.mxu0 %v5884_v14  ;;  %v3573_v0 = vld [vmem:[%s8085_s4 + $0x1e8] sm:$0xff] }
 0xfb3   : > { %5917 = vmatprep.subr.bf16.mxu1 %v5916_v17  ;;  %v3837_v56 = vld [vmem:[%s8087_s1 + $0xa8] sm:$0xff] }
 0xfb5   : > { %5887 = vmatpush1.bf16.msra.mxu0 %v5886_v18 }
 0xfb6   : > { %5919 = vmatpush1.bf16.msra.mxu1 %v5918_v24  ;;  %5889 = vmatprep.subr.bf16.mxu0 %v5888_v12 }
 0xfb7   : > { %5921 = vmatprep.subr.bf16.mxu1 %v5920_v11 }
 0xfb9   : > { %5891 = vmatpush1.bf16.msra.mxu0 %v5890_v30  ;;  %v3832_v30 = vld [vmem:[%s8087_s1 + $0x80] sm:$0xff] }
 0xfba   : > { %5923 = vmatpush1.bf16.msra.mxu1 %v5922_v33  ;;  %5893 = vmatprep.subr.bf16.mxu0 %v5892_v38  ;;  %v5936_v33 = vpack.c.bf16 %v3833_v31, %v3832_v30  ;;  %v5938_v38 = vpack.c.bf16 %v3817_v34, %v3816_v7  ;;  %v3857_v30 = vld [vmem:[%s8087_s1 + $0x148] sm:$0xff]  ;;  %v3875_v34 = vld [vmem:[%s8087_s1 + $0x1d8] sm:$0xff] }
 0xfbb   : > { %5925 = vmatprep.subr.bf16.mxu1 %v5924_v42  ;;  %v3835_v42 = vld [vmem:[%s8087_s1 + $0x98] sm:$0xff] }
 0xfbc   : > { %v5940_v44 = vpack.c.bf16 %v3835_v42, %v3834_v41  ;;  %v3859_v41 = vld [vmem:[%s8087_s1 + $0x158] sm:$0xff] }
 0xfbd   : > { %5895 = vmatpush1.bf16.msra.mxu0 %v5894_v43  ;;  %v3866_v43 = vld [vmem:[%s8087_s1 + $0x190] sm:$0xff] }
 0xfbe   : > { %5927 = vmatpush1.bf16.msra.mxu1 %v5926_v47  ;;  %5897 = vmatprep.subr.bf16.mxu0 %v5896_v51  ;;  %v3819_v47 = vld [vmem:[%s8087_s1 + $0x18] sm:$0xff]  ;;  %v5972_v48 = vpack.c.bf16 %v3867_v45, %v3866_v43  ;;  %v3844_v43 = vld [vmem:[%s8087_s1 + $0xe0] sm:$0xff] }
 0xfbf   : > { %5929 = vmatprep.subr.bf16.mxu1 %v5928_v54  ;;  %v5942_v49 = vpack.c.bf16 %v3819_v47, %v3818_v46  ;;  %v3851_v51 = vld [vmem:[%s8087_s1 + $0x118] sm:$0xff]  ;;  %v3876_v45 = vld [vmem:[%s8087_s1 + $0x1e0] sm:$0xff]  ;;  %v3877_v47 = vld [vmem:[%s8087_s1 + $0x1e8] sm:$0xff] }
 0xfc0   : > { %v5974_v54 = vpack.c.bf16 %v3851_v51, %v3850_v35  ;;  %v5992_v35 = vpack.c.bf16 %v3877_v47, %v3876_v45 }
 0xfc1   : > { %5899 = vmatpush1.bf16.msra.mxu0 %v5898_v59  ;;  %v5944_v59 = vpack.c.bf16 %v3837_v56, %v3836_v55  ;;  %v3861_v55 = vld [vmem:[%s8087_s1 + $0x168] sm:$0xff] }
0x1036   : > { %v3477_v2 = vpop.xlane.xlu0 %3476 }
0x1037   : > { %v3475_v1 = vpop.xlane.xlu1 %3474  ;;  %v3479_v3 = vmul.f32 0.0078125, %v3477_v2  ;;  %v5930_v2 = vpack.c.bf16 %v3566_v60, %v3562_v57  ;;  %v3868_v57 = vld [vmem:[%s8087_s1 + $0x1a0] sm:$0xff]  ;;  %v3869_v60 = vld [vmem:[%s8087_s1 + $0x1a8] sm:$0xff] }
0x1038   : > { %v3478_v4 = vmul.f32 0.0078125, %v3475_v1  ;;  %v5900_v1 = vpack.c.bf16 %v3573_v0, %v3569_v62  ;;  %v3820_v62 = vld [vmem:[%s8087_s1 + $0x20] sm:$0xff]  ;;  %v3821_v0 = vld [vmem:[%s8087_s1 + $0x28] sm:$0xff] }
0x1039   : > { %v8448_v6 = vsub.f32 %v8414_v22, %v3479_v3  ;;  %v3571_v3 = vld [vmem:[%s8085_s4 + $0x1d8] sm:$0xff]  ;;  %5931 = vmatpush1.bf16.msra.mxu1 %v5930_v2  ;;  %v5976_v2 = vpack.c.bf16 %v3869_v60, %v3868_v57  ;;  %v3846_v57 = vld [vmem:[%s8087_s1 + $0xf0] sm:$0xff] }
0x103a   : > { %v8445_v5 = vsub.f32 %v8416_v23, %v3478_v4  ;;  %v3575_v4 = vld [vmem:[%s8085_s4 + $0x1f8] sm:$0xff]  ;;  %5901 = vmatprep.subr.bf16.mxu0 %v5900_v1  ;;  %v5946_v1 = vpack.c.bf16 %v3821_v0, %v3820_v62  ;;  %v3878_v60 = vld [vmem:[%s8087_s1 + $0x1f0] sm:$0xff] }
0x103b   : > { %v3483_v61 = vmul.f32 %v8448_v6, %v8448_v6  ;;  %v3879_v0 = vld [vmem:[%s8087_s1 + $0x1f8] sm:$0xff] }
0x103c   : > { %v3482_v8 = vmul.f32 %v8445_v5, %v8445_v5 }
0x103e   : > { %3484 = vadd.xlane.f32.xlu0 %v3482_v8  ;;  %v3568_v8 = vld [vmem:[%s8085_s4 + $0x1c0] sm:$0xff]  ;;  %s8882_s4 = scalar_lea.vmem [#allocation11], %s8069_s7 }
0x103f   : > { %v5902_v14 = vpack.c.bf16 %v3572_v9, %v3568_v8  ;;  %v5153_v21 = vld [vmem:[%s8882_s4] ss:$0 sm:$0xff]  ;;  %v3839_v9 = vld [vmem:[%s8087_s1 + $0xb8] sm:$0xff] }
0x1041   : > { %5903 = vmatpush1.bf16.msra.mxu0 %v5902_v14  ;;  %v3871_v14 = vld [vmem:[%s8087_s1 + $0x1b8] sm:$0xff] }
0x1042   : > { %3486 = vadd.xlane.f32.xlu0 %v3483_v61  ;;  %v5932_v61 = vpack.c.bf16 %v3575_v4, %v3571_v3  ;;  %5937 = vmatprep.subr.bf16.mxu0 %v5936_v33  ;;  %v3852_v3 = vld [vmem:[%s8087_s1 + $0x120] sm:$0xff]  ;;  %v3853_v4 = vld [vmem:[%s8087_s1 + $0x128] sm:$0xff]  ;;  %v3843_v33 = vld [vmem:[%s8087_s1 + $0xd8] sm:$0xff] }
0x1043   : > { %v5978_v8 = vpack.c.bf16 %v3853_v4, %v3852_v3  ;;  %v5996_v3 = vpack.c.bf16 %v3879_v0, %v3878_v60 }
0x1044   : > { %5933 = vmatprep.subr.bf16.mxu1 %v5932_v61  ;;  %v3838_v61 = vld [vmem:[%s8087_s1 + $0xb0] sm:$0xff] }
0x1045   : > { %5935 = vmatpush1.bf16.msra.mxu1 %v5934_v15  ;;  %v5948_v13 = vpack.c.bf16 %v3839_v9, %v3838_v61  ;;  %v3822_v15 = vld [vmem:[%s8087_s1 + $0x30] sm:$0xff]  ;;  %v3863_v61 = vld [vmem:[%s8087_s1 + $0x178] sm:$0xff] }
0x10cb   : > { %v3485_v63 = vpop.xlane.xlu0 %3484 }
0x10cc   : > { %v3488_v16 = vmul.f32 0.0078125, %v3485_v63  ;;  %v3823_v63 = vld [vmem:[%s8087_s1 + $0x38] sm:$0xff] }
0x10ce   : > { %v3490_v17 = vadd.f32 1e-05, %v3488_v16  ;;  %v5980_v16 = vpack.c.bf16 %v3871_v14, %v3870_v10  ;;  %v3576_v10 = vld [vmem:[%s8139_s12] sm:$0xf]  ;;  %s8884_s12 = scalar_lea.vmem [#allocation17], %s8069_s7 }
0x10cf   : > { %v3487_v18 = vpop.xlane.xlu0 %3486  ;;  %v3581_v14 = vrot.slane %v3576_v10, %v1850_v50 }
0x10d0   : > { %6482 = vrsqrt.f32 %v3490_v17  ;;  %v3489_v19 = vmul.f32 0.0078125, %v3487_v18  ;;  %v5950_v17 = vpack.c.bf16 %v3823_v63, %v3822_v15  ;;  %v3854_v18 = vld [vmem:[%s8087_s1 + $0x130] sm:$0xff]  ;;  %v3589_v15 = vrot.slane %v3576_v10, %v1858_v53 }
0x10d1   : > { %v3585_v63 = vrot.slane %v3576_v10, %v1854_v52 }
0x10d2   : > { %v3491_v20 = vadd.f32 1e-05, %v3489_v19  ;;  %v3855_v19 = vld [vmem:[%s8087_s1 + $0x138] sm:$0xff] }
0x10d4   : > { %6484 = vrsqrt.f32 %v3491_v20  ;;  %v5982_v20 = vpack.c.bf16 %v3855_v19, %v3854_v18 }
0x10da   : > { %v6483_v24 = vpop.eup %6482 }
0x10db   : > { %v3494_v25 = vmul.f32 %v6483_v24, %v8445_v5  ;;  %v3840_v24 = vld [vmem:[%s8087_s1 + $0xc0] sm:$0xff] }
0x10dd   : > { %v3502_v12 = vmul.f32 %v5153_v21, %v3494_v25  ;;  %v3872_v25 = vld [vmem:[%s8087_s1 + $0x1c0] sm:$0xff] }
0x10de   : > { %v6485_v27 = vpop.eup %6484 }
0x10df   : > { %v3510_v28 = vadd.f32 %v5154_v26, %v3502_v12  ;;  %v3495_v29 = vmul.f32 %v6485_v27, %v8448_v6  ;;  %v3865_v6 = vld [vmem:[%s8087_s1 + $0x188] sm:$0xff]  ;;  %v3824_v27 = vld [vmem:[%s8087_s1 + $0x40] sm:$0xff] }
0x10e0   : > { %v5968_v37 = vpack.c.bf16 %v3865_v6, %v3864_v32  ;;  %v3873_v12 = vld [vmem:[%s8087_s1 + $0x1c8] sm:$0xff]  ;;  %v3842_v32 = vld [vmem:[%s8087_s1 + $0xd0] sm:$0xff] }
0x10e1   : > { %3663 = vmatmul.mubr.f32.vlgmr.msra.gmra.mrb[26].mxu0 %v3510_v28  ;;  %3740 = vmatmul.mubr.f32.vlgmr.msra.gmra.mrb[14].mxu1 %v3510_v28  ;;  %v3503_v11 = vmul.f32 %v5153_v21, %v3495_v29  ;;  %v3841_v21 = vld [vmem:[%s8087_s1 + $0xc8] sm:$0xff]  ;;  %v5984_v29 = vpack.c.bf16 %v3873_v12, %v3872_v25  ;;  %v3874_v6 = vld [vmem:[%s8087_s1 + $0x1d0] sm:$0xff]  ;;  %v5956_v7 = vpack.c.bf16 %v3843_v33, %v3842_v32 }
0x10e2   : > { %3668 = vmatprep.mubr.f32.mxu0 %v7412_v58  ;;  %3745 = vmatprep.mubr.f32.mxu1 %v7412_v58  ;;  %v3849_v58 = vld [vmem:[%s8087_s1 + $0x108] sm:$0xff] }
0x10e3   : > { %v3511_v5 = vadd.f32 %v5154_v26, %v3503_v11  ;;  %v5970_v40 = vpack.c.bf16 %v3849_v58, %v3848_v39  ;;  %5969 = vmatprep.subr.bf16.mxu1 %v5968_v37  ;;  %5939 = vmatpush3.bf16.msra.mxu0 %v5938_v38  ;;  %v5952_v26 = vpack.c.bf16 %v3841_v21, %v3840_v24  ;;  %v3825_v28 = vld [vmem:[%s8087_s1 + $0x48] sm:$0xff]  ;;  %v3826_v37 = vld [vmem:[%s8087_s1 + $0x50] sm:$0xff]  ;;  %v3827_v38 = vld [vmem:[%s8087_s1 + $0x58] sm:$0xff] }
0x10e4   : > { %5941 = vmatprep.subr.bf16.mxu0 %v5940_v44  ;;  %v5954_v11 = vpack.c.bf16 %v3825_v28, %v3824_v27  ;;  %v5988_v39 = vpack.c.bf16 %v3875_v34, %v3874_v6  ;;  %v5958_v58 = vpack.c.bf16 %v3827_v38, %v3826_v37  ;;  %v3845_v44 = vld [vmem:[%s8087_s1 + $0xe8] sm:$0xff] }
0x10e5   : > { %3669 = vmatmul.mubr.f32.gmra.mrb[28].mxu0 %v3511_v5  ;;  %3746 = vmatmul.mubr.f32.gmra.mrb[16].mxu1 %v3511_v5  ;;  %v3856_v5 = vld [vmem:[%s8087_s1 + $0x140] sm:$0xff]  ;;  %v5960_v46 = vpack.c.bf16 %v3845_v44, %v3844_v43 }
0x10e6   : > { %5971 = vmatpush3.bf16.msra.mxu1 %v5970_v40  ;;  %v5986_v31 = vpack.c.bf16 %v3857_v30, %v3856_v5  ;;  %v3858_v40 = vld [vmem:[%s8087_s1 + $0x150] sm:$0xff] }
0x10e7   : > { %5973 = vmatprep.subr.bf16.mxu1 %v5972_v48  ;;  %5943 = vmatpush3.bf16.msra.mxu0 %v5942_v49  ;;  %v5990_v42 = vpack.c.bf16 %v3859_v41, %v3858_v40  ;;  %v3828_v48 = vld [vmem:[%s8087_s1 + $0x60] sm:$0xff]  ;;  %v3829_v49 = vld [vmem:[%s8087_s1 + $0x68] sm:$0xff] }
0x10e8   : > { %5945 = vmatprep.subr.bf16.mxu0 %v5944_v59  ;;  %v5962_v51 = vpack.c.bf16 %v3829_v49, %v3828_v48  ;;  %v3847_v59 = vld [vmem:[%s8087_s1 + $0xf8] sm:$0xff] }
0x10e9   : > { %v5964_v62 = vpack.c.bf16 %v3847_v59, %v3846_v57 }
0x10ea   : > { %5975 = vmatpush3.bf16.msra.mxu1 %v5974_v54  ;;  %v3860_v54 = vld [vmem:[%s8087_s1 + $0x160] sm:$0xff] }
0x10eb   : > { %5977 = vmatprep.subr.bf16.mxu1 %v5976_v2  ;;  %5947 = vmatpush3.bf16.msra.mxu0 %v5946_v1  ;;  %v5994_v56 = vpack.c.bf16 %v3861_v55, %v3860_v54  ;;  %v3830_v2 = vld [vmem:[%s8087_s1 + $0x70] sm:$0xff]  ;;  %v3831_v1 = vld [vmem:[%s8087_s1 + $0x78] sm:$0xff] }
0x10ec   : > { %5949 = vmatprep.subr.bf16.mxu0 %v5948_v13  ;;  %v5966_v4 = vpack.c.bf16 %v3831_v1, %v3830_v2  ;;  %v3592_v13 = vsub.s32 3, %v8230_v36 }
0x10ee   : > { %5979 = vmatpush3.bf16.msra.mxu1 %v5978_v8  ;;  %v3862_v8 = vld [vmem:[%s8087_s1 + $0x170] sm:$0xff]  ;;  %s8885_s1 = sld [smem:[#allocation76_spill]] (!%p5164_p13) }
0x10ef   : > { %5981 = vmatprep.subr.bf16.mxu1 %v5980_v16  ;;  %5951 = vmatpush3.bf16.msra.mxu0 %v5950_v17  ;;  %v5998_v9 = vpack.c.bf16 %v3863_v61, %v3862_v8  ;;  %v3593_v16 = vrot.slane %v3576_v10, %v3592_v13 }
0x10f0   : > { %5953 = vmatprep.subr.bf16.mxu0 %v5952_v26 }
0x10f2   : > { %5983 = vmatpush3.bf16.msra.mxu1 %v5982_v20 }
0x10f3   : > { %5985 = vmatprep.subr.bf16.mxu1 %v5984_v29  ;;  %5955 = vmatpush3.bf16.msra.mxu0 %v5954_v11 }
0x10f4   : > { %5957 = vmatprep.subr.bf16.mxu0 %v5956_v7  ;;  %s8886_s3 = smov (!%p5164_p13), %s8885_s1 }
0x10f6   : > { %5987 = vmatpush3.bf16.msra.mxu1 %v5986_v31 }
0x10f7   : > { %5989 = vmatprep.subr.bf16.mxu1 %v5988_v39  ;;  %5959 = vmatpush3.bf16.msra.mxu0 %v5958_v58 }
0x10f8   : > { %5961 = vmatprep.subr.bf16.mxu0 %v5960_v46 }
0x10fa   : > { %5991 = vmatpush3.bf16.msra.mxu1 %v5990_v42 }
0x10fb   : > { %5993 = vmatprep.subr.bf16.mxu1 %v5992_v35  ;;  %5963 = vmatpush3.bf16.msra.mxu0 %v5962_v51 }
0x10fc   : > { %5965 = vmatprep.subr.bf16.mxu0 %v5964_v62 }
0x10fe   : > { %5995 = vmatpush3.bf16.msra.mxu1 %v5994_v56 }
0x10ff   : > { %5997 = vmatprep.subr.bf16.mxu1 %v5996_v3  ;;  %5967 = vmatpush3.bf16.msra.mxu0 %v5966_v4 }
0x1102   : > { %5999 = vmatpush3.bf16.msra.mxu1 %v5998_v9 }
0x11b4   : > { %v3664_v17 = vpop.f32.mrb[26].mxu0  ;;  %v3741_v18 = vpop.f32.mrb[14].mxu1 }
0x11b5   : > { %v8574_v19 = vadd.f32 %v3664_v17, %v3581_v14  ;;  %v8576_v20 = vadd.f32 %v3741_v18, %v3589_v15  ;;  %v3666_v24 = vpop.f32.mrb[27].mxu0  ;;  %v3743_v21 = vpop.f32.mrb[15].mxu1 }
0x11b6   : > { %v3667_v25 = vadd.f32 %v3666_v24, %v3585_v63  ;;  %v8578_v26 = vadd.f32 %v3743_v21, %v3593_v16 }
0x11b7   : > { %v5155_v50 = vmul.f32 -1.702, %v8574_v19  ;;  %v5157_v12 = vmul.f32 -1.702, %v8576_v20 }
0x11b8   : > { %v5156_v53 = vmul.f32 -1.702, %v3667_v25  ;;  %v5158_v36 = vmul.f32 -1.702, %v8578_v26  ;;  %v3670_v52 = vpop.f32.mrb[28].mxu0  ;;  %v3747_v27 = vpop.f32.mrb[16].mxu1 }
0x11b9   : > { %v3768_v28 = vmul.f32 1.442695, %v5155_v50  ;;  %v3772_v29 = vmul.f32 1.442695, %v5157_v12  ;;  %v8583_v11 = vadd.f32 %v3670_v52, %v3581_v14  ;;  %v8585_v5 = vadd.f32 %v3747_v27, %v3589_v15  ;;  %v3672_v30 = vpop.f32.mrb[29].mxu0  ;;  %v3749_v31 = vpop.f32.mrb[17].mxu1 }
0x11ba   : > { %v3770_v32 = vmul.f32 1.442695, %v5156_v53  ;;  %v3774_v33 = vmul.f32 1.442695, %v5158_v36  ;;  %v3673_v6 = vadd.f32 %v3672_v30, %v3585_v63  ;;  %v3750_v7 = vadd.f32 %v3749_v31, %v3593_v16  ;;  %v5163_v52 = vld [vmem:[%s8884_s12] ss:$0 sm:$0xff] }
0x11bb   : > { %6486 = vpow2.f32 %v3768_v28  ;;  %v5159_v34 = vmul.f32 -1.702, %v8583_v11  ;;  %v5161_v37 = vmul.f32 -1.702, %v8585_v5 }
0x11bc   : > { %6488 = vpow2.f32 %v3772_v29  ;;  %v5160_v38 = vmul.f32 -1.702, %v3673_v6  ;;  %v5162_v39 = vmul.f32 -1.702, %v3750_v7 }
0x11bd   : > { %6490 = vpow2.f32 %v3770_v32  ;;  %v3776_v58 = vmul.f32 1.442695, %v5159_v34  ;;  %v3780_v40 = vmul.f32 1.442695, %v5161_v37  ;;  %v4084_v34 = vld [vmem:[%s8886_s3 + $0x10] sm:$0xff] (!%p5164_p13)  ;;  %v7417_v37 = vmov (!%p5164_p13), 0.0|0.0  }
0x11be   : > { %6492 = vpow2.f32 %v3774_v33  ;;  %v3778_v41 = vmul.f32 1.442695, %v5160_v38  ;;  %v3782_v42 = vmul.f32 1.442695, %v5162_v39  ;;  %6000 = vmatprep.subr.bf16.mxu0 (!%p5164_p13), %v7417_v37  ;;  %v4085_v39 = vld [vmem:[%s8886_s3 + $0x18] sm:$0xff] (!%p5164_p13)  ;;  %6024 = vmatprep.subr.bf16.mxu1 (!%p5164_p13), %v7417_v37 }
0x11bf   : > { %6494 = vpow2.f32 %v3776_v58  ;;  %v6004_v58 = vpack.c.bf16 (!%p5164_p13), %v4085_v39, %v4084_v34  ;;  %v4183_v34 = vld [vmem:[#allocation24 + $0x60] sm:$0xff] (!%p5164_p13) }
0x11c0   : > { %6496 = vpow2.f32 %v3780_v40  ;;  %v4086_v40 = vld [vmem:[%s8886_s3 + $0x20] sm:$0xff] (!%p5164_p13) }
0x11c1   : > { %6498 = vpow2.f32 %v3778_v41  ;;  %v4087_v41 = vld [vmem:[%s8886_s3 + $0x28] sm:$0xff] (!%p5164_p13) }
0x11c2   : > { %6500 = vpow2.f32 %v3782_v42  ;;  %v6007_v42 = vpack.c.bf16 (!%p5164_p13), %v4087_v41, %v4086_v40  ;;  %v4186_v40 = vld [vmem:[#allocation24 + $0x78] sm:$0xff] (!%p5164_p13) }
0x11c5   : > { %v6487_v43 = vpop.eup %6486 }
0x11c6   : > { %v6489_v44 = vpop.eup %6488  ;;  %v3784_v45 = vadd.f32 1.0, %v6487_v43 }
0x11c7   : > { %v6491_v46 = vpop.eup %6490  ;;  %v3786_v47 = vadd.f32 1.0, %v6489_v44 }
0x11c8   : > { %v6493_v48 = vpop.eup %6492  ;;  %6502 = vrcp.f32 %v3784_v45  ;;  %v3785_v49 = vadd.f32 1.0, %v6491_v46 }
0x11c9   : > { %v6495_v35 = vpop.eup %6494  ;;  %6504 = vrcp.f32 %v3786_v47  ;;  %v3787_v51 = vadd.f32 1.0, %v6493_v48  ;;  %v4088_v48 = vld [vmem:[%s8886_s3 + $0x30] sm:$0xff] (!%p5164_p13) }
0x11ca   : > { %v6497_v54 = vpop.eup %6496  ;;  %6506 = vrcp.f32 %v3785_v49  ;;  %v3788_v55 = vadd.f32 1.0, %v6495_v35  ;;  %v4089_v49 = vld [vmem:[%s8886_s3 + $0x38] sm:$0xff] (!%p5164_p13) }
0x11cb   : > { %v6499_v56 = vpop.eup %6498  ;;  %6508 = vrcp.f32 %v3787_v51  ;;  %v3790_v57 = vadd.f32 1.0, %v6497_v54  ;;  %v6010_v35 = vpack.c.bf16 (!%p5164_p13), %v4089_v49, %v4088_v48  ;;  %v4090_v51 = vld [vmem:[%s8886_s3 + $0x40] sm:$0xff] (!%p5164_p13)  ;;  %v4091_v54 = vld [vmem:[%s8886_s3 + $0x48] sm:$0xff] (!%p5164_p13)  ;;  %v5167_v49 = vld [vmem:[#allocation21] ss:$0 sm:$0xff] (!%p5164_p13) }
0x11cc   : > { %v6501_v59 = vpop.eup %6500  ;;  %6510 = vrcp.f32 %v3788_v55  ;;  %v3789_v60 = vadd.f32 1.0, %v6499_v56  ;;  %v6013_v55 = vpack.c.bf16 (!%p5164_p13), %v4091_v54, %v4090_v51  ;;  %v4092_v56 = vld [vmem:[%s8886_s3 + $0x50] sm:$0xff] (!%p5164_p13) }
0x11cd   : > { %6512 = vrcp.f32 %v3790_v57  ;;  %v3791_v62 = vadd.f32 1.0, %v6501_v59  ;;  %v4093_v57 = vld [vmem:[%s8886_s3 + $0x58] sm:$0xff] (!%p5164_p13)  ;;  %v7419_v59 = vmov (!%p5164_p13), 0.0   ;;  %v4396_v51 = vld [vmem:[#allocation33] sm:$0xff] (!%p5164_p13) }
0x11ce   : > { %6514 = vrcp.f32 %v3789_v60  ;;  %v6016_v60 = vpack.c.bf16 (!%p5164_p13), %v4093_v57, %v4092_v56  ;;  %v4397_v54 = vld [vmem:[#allocation33 + $0x8] sm:$0xff] (!%p5164_p13) }
0x11cf   : > { %6516 = vrcp.f32 %v3791_v62  ;;  %v4094_v62 = vld [vmem:[%s8886_s3 + $0x60] sm:$0xff] (!%p5164_p13)  ;;  %v6073_v57 = vpack.c.bf16 (!%p5164_p13), %v4397_v54, %v4396_v51  ;;  %v4414_v51 = vld [vmem:[#allocation36 + $0x8] sm:$0xff] (!%p5164_p13) }
0x11d2   : > { %v6503_v0 = vpop.eup %6502 }
0x11d3   : > { %v6505_v2 = vpop.eup %6504  ;;  %v3808_v61 = vmul.f32 %v6503_v0, %v8574_v19  ;;  %v4095_v0 = vld [vmem:[%s8886_s3 + $0x68] sm:$0xff] (!%p5164_p13) }
0x11d4   : > { %v6507_v1 = vpop.eup %6506  ;;  %v3810_v13 = vmul.f32 %v6505_v2, %v8576_v20  ;;  %v6019_v2 = vpack.c.bf16 (!%p5164_p13), %v4095_v0, %v4094_v62  ;;  %v4398_v62 = vld [vmem:[#allocation33 + $0x10] sm:$0xff] (!%p5164_p13)  ;;  %v4399_v0 = vld [vmem:[#allocation33 + $0x18] sm:$0xff] (!%p5164_p13) }
0x11d5   : > { %v6509_v3 = vpop.eup %6508  ;;  %v3809_v4 = vmul.f32 %v6507_v1, %v3667_v25  ;;  %v4096_v1 = vld [vmem:[%s8886_s3 + $0x70] sm:$0xff] (!%p5164_p13) }
0x11d6   : > { %v6511_v8 = vpop.eup %6510  ;;  %v3811_v9 = vmul.f32 %v6509_v3, %v8578_v26  ;;  %v4097_v3 = vld [vmem:[%s8886_s3 + $0x78] sm:$0xff] (!%p5164_p13) }
0x11d7   : > { %v6513_v10 = vpop.eup %6512  ;;  %3944 = vmatprep.mubr.f32.mxu0 %v3809_v4  ;;  %v3812_v16 = vmul.f32 %v6511_v8, %v8583_v11  ;;  %v6022_v4 = vpack.c.bf16 (!%p5164_p13), %v4097_v3, %v4096_v1  ;;  %v4400_v1 = vld [vmem:[#allocation33 + $0x20] sm:$0xff] (!%p5164_p13)  ;;  %v4401_v3 = vld [vmem:[#allocation33 + $0x28] sm:$0xff] (!%p5164_p13) }
0x11d8   : > { %v6515_v14 = vpop.eup %6514  ;;  %4019 = vmatprep.mubr.f32.mxu1 %v3811_v9  ;;  %3945 = vmatmul.mubr.f32.vlgmr.msra.gmra.mrb[30].mxu0 %v3808_v61  ;;  %v3814_v18 = vmul.f32 %v6513_v10, %v8585_v5 }
0x11d9   : > { %v6517_v15 = vpop.eup %6516  ;;  %v3813_v63 = vmul.f32 %v6515_v14, %v3673_v6  ;;  %4020 = vmatmul.mubr.f32.vlgmr.msra.gmra.mrb[18].mxu1 %v3810_v13  ;;  %v5165_v13 = vld [vmem:[#allocation18] ss:$0 sm:$0xff] (!%p5164_p13) }
0x11da   : > { %v3815_v17 = vmul.f32 %v6517_v15, %v3750_v7  ;;  %v4082_v7 = vld [vmem:[%s8885_s1] sm:$0xff] (!%p5164_p13)  ;;  %v5166_v15 = vld [vmem:[#allocation20] ss:$0 sm:$0xff] (!%p5164_p13) }
0x11db   : > { %3949 = vmatprep.mubr.f32.mxu0 %v3813_v63 }
0x11dc   : > { %4024 = vmatprep.mubr.f32.mxu1 %v3815_v17  ;;  %3950 = vmatmul.mubr.f32.gmra.mrb[32].mxu0 %v3812_v16 }
0x11dd   : > { %4025 = vmatmul.mubr.f32.gmra.mrb[20].mxu1 %v3814_v18  ;;  %5597 = vmatprep.mubr.msk.f32.mxu0 (!%p5164_p13), %vm7418_vm10, %v7419_v59 }
0x11de   : > { %5632 = vmatprep.mubr.msk.f32.mxu1 (!%p5164_p13), %vm7418_vm10, %v7419_v59 }
0x12ab   : > { %v5286_v19 = vpop.f32.mrb[30].mxu0 }
0x12ac   : > { %v5324_v24 = vpop.f32.mrb[18].mxu1  ;;  %v5287_v20 = vpop.f32.mrb[31].mxu0 }
0x12ad   : > { %v5288_v21 = vadd.f32 %v5287_v20, %v5286_v19  ;;  %v5325_v25 = vpop.f32.mrb[19].mxu1  ;;  %v4172_v20 = vld [vmem:[#allocation24 + $0x8] sm:$0xff] (!%p5164_p13) }
0x12ae   : > { %v5326_v26 = vadd.f32 %v5325_v25, %v5324_v24  ;;  %v4171_v24 = vld [vmem:[#allocation24] sm:$0xff] (!%p5164_p13) }
0x12af   : > { %v5289_v50 = vpop.f32.mrb[32].mxu0  ;;  %v6025_v25 = vpack.c.bf16 (!%p5164_p13), %v4172_v20, %v4171_v24  ;;  %v4410_v24 = vld [vmem:[#allocation33 + $0x70] sm:$0xff] (!%p5164_p13)  ;;  %v4411_v20 = vld [vmem:[#allocation33 + $0x78] sm:$0xff] (!%p5164_p13) }
0x12b0   : > { %v4022_v12 = vadd.f32 %v5326_v26, %v5288_v21  ;;  %v5327_v53 = vpop.f32.mrb[20].mxu1  ;;  %v5290_v36 = vpop.f32.mrb[33].mxu0  ;;  %v4173_v21 = vld [vmem:[#allocation24 + $0x10] sm:$0xff] (!%p5164_p13)  ;;  %v4174_v26 = vld [vmem:[#allocation24 + $0x18] sm:$0xff] (!%p5164_p13) }
0x12b1   : > { %v5291_v27 = vadd.f32 %v5290_v36, %v5289_v50  ;;  %v5328_v28 = vpop.f32.mrb[21].mxu1  ;;  %6026 = vmatpush3.bf16.msra.mxu1 (!%p5164_p13), %v6025_v25  ;;  %v6028_v50 = vpack.c.bf16 (!%p5164_p13), %v4174_v26, %v4173_v21  ;;  %v5171_v21 = vld [vmem:[#allocation30] ss:$0 sm:$0xff] (!%p5164_p13)  ;;  %v6094_v25 = vpack.c.bf16 (!%p5164_p13), %v4411_v20, %v4410_v24  ;;  %v4423_v20 = vld [vmem:[#allocation36 + $0x50] sm:$0xff] (!%p5164_p13) }
0x12b2   : > { %v4030_v29 = vadd.f32 %v4022_v12, %v8416_v23  ;;  %v5329_v11 = vadd.f32 %v5328_v28, %v5327_v53  ;;  %6027 = vmatprep.subr.bf16.mxu1 (!%p5164_p13), %v7417_v37  ;;  %v4175_v12 = vld [vmem:[#allocation24 + $0x20] sm:$0xff] (!%p5164_p13)  ;;  %v4176_v53 = vld [vmem:[#allocation24 + $0x28] sm:$0xff] (!%p5164_p13) }
0x12b3   : > { %v6031_v36 = vpack.c.bf16 (!%p5164_p13), %v4176_v53, %v4175_v12  ;;  %v4190_v53 = vld [vmem:[#allocation27 + $0x10] sm:$0xff] (!%p5164_p13) }
0x12b4   : > { %v4039_v5 = vadd.f32 %v5163_v52, %v4030_v29  ;;  %v4027_v30 = vadd.f32 %v5329_v11, %v5291_v27  ;;  %4046 = sbr.rel (%p5164_p13) target bundleno = 6121 (0x17e9), region = 256 }
0x12b5   : > { %6029 = vmatpush3.bf16.msra.mxu1 (!%p5164_p13), %v6028_v50  ;;  %v5172_v50 = vld [vmem:[#allocation32] ss:$0 sm:$0xff] (!%p5164_p13) }
0x12b6   : > { %4041 = vst [vmem:[#allocation2] sm:$0xff] %v4039_v5  ;;  %v4031_v31 = vadd.f32 %v4027_v30, %v8414_v22  ;;  %v4083_v22 = vld [vmem:[%s8886_s3 + $0x8] sm:$0xff] (!%p5164_p13)  ;;  %6030 = vmatprep.subr.bf16.mxu1 (!%p5164_p13), %v7417_v37  ;;  %v4178_v30 = vld [vmem:[#allocation24 + $0x38] sm:$0xff] (!%p5164_p13) }
0x12b7   : > { %v6001_v38 = vpack.c.bf16 (!%p5164_p13), %v4083_v22, %v4082_v7  ;;  %v4182_v7 = vld [vmem:[#allocation24 + $0x58] sm:$0xff] (!%p5164_p13) }
0x12b8   : > { %v4040_v32 = vadd.f32 %v5163_v52, %v4031_v31 }
0x12b9   : > { %6002 = vmatpush3.bf16.msra.mxu0 (!%p5164_p13), %v6001_v38  ;;  %6032 = vmatpush3.bf16.msra.mxu1 (!%p5164_p13), %v6031_v36  ;;  %v4184_v38 = vld [vmem:[#allocation24 + $0x68] sm:$0xff] (!%p5164_p13)  ;;  %v4191_v36 = vld [vmem:[#allocation27 + $0x18] sm:$0xff] (!%p5164_p13) }
0x12ba   : > { %4042 = vst [vmem:[#allocation2 + $0x8] sm:$0xff] %v4040_v32  ;;  %v4048_v33 = vrot.slane (!%p5164_p13), %v4040_v32, 7  ;;  %6003 = vmatprep.subr.bf16.mxu0 (!%p5164_p13), %v7417_v37  ;;  %6033 = vmatprep.subr.bf16.mxu1 (!%p5164_p13), %v7417_v37  ;;  %v4179_v32 = vld [vmem:[#allocation24 + $0x40] sm:$0xff] (!%p5164_p13)  ;;  %v6043_v39 = vpack.c.bf16 (!%p5164_p13), %v4184_v38, %v4183_v34  ;;  %v4201_v34 = vld [vmem:[#allocation27 + $0x68] sm:$0xff] (!%p5164_p13) }
0x12bc   : > { %v4051_v23 = vsel %vm4050_vm8, %v4039_v5, %v4048_v33  ;;  %v4177_v5 = vld [vmem:[#allocation24 + $0x30] sm:$0xff]  ;;  %v4180_v33 = vld [vmem:[#allocation24 + $0x48] sm:$0xff] }
0x12bd   : > { %v4055_v6 = vsel %vm4054_vm9, %v4051_v23, 0.0  ;;  %6005 = vmatpush3.bf16.msra.mxu0 %v6004_v58  ;;  %v6034_v31 = vpack.c.bf16 %v4178_v30, %v4177_v5  ;;  %v4185_v58 = vld [vmem:[#allocation24 + $0x70] sm:$0xff]  ;;  %v4195_v5 = vld [vmem:[#allocation27 + $0x38] sm:$0xff] }
0x12be   : > { %4056 = vadd.xlane.f32.xlu0 %v4055_v6  ;;  %6006 = vmatprep.subr.bf16.mxu0 %v7417_v37  ;;  %v4181_v6 = vld [vmem:[#allocation24 + $0x50] sm:$0xff]  ;;  %v6046_v41 = vpack.c.bf16 %v4186_v40, %v4185_v58  ;;  %v4203_v58 = vld [vmem:[#allocation27 + $0x78] sm:$0xff] }
0x12bf   : > { %6035 = vmatpush3.bf16.msra.mxu1 %v6034_v31  ;;  %v6040_v22 = vpack.c.bf16 %v4182_v7, %v4181_v6  ;;  %v4196_v31 = vld [vmem:[#allocation27 + $0x40] sm:$0xff]  ;;  %v4199_v6 = vld [vmem:[#allocation27 + $0x58] sm:$0xff] }
0x12c0   : > { %6036 = vmatprep.subr.bf16.mxu1 %v7417_v37 }
0x12c1   : > { %6008 = vmatpush3.bf16.msra.mxu0 %v6007_v42  ;;  %v4188_v42 = vld [vmem:[#allocation27] sm:$0xff] }
0x12c2   : > { %6009 = vmatprep.subr.bf16.mxu0 %v7417_v37 }
0x12c5   : > { %6011 = vmatpush3.bf16.msra.mxu0 %v6010_v35 }
0x12c6   : > { %6012 = vmatprep.subr.bf16.mxu0 %v7417_v37 }
0x12c9   : > { %6014 = vmatpush3.bf16.msra.mxu0 %v6013_v55  ;;  %v5168_v55 = vld [vmem:[#allocation23] ss:$0 sm:$0xff] }
0x12ca   : > { %6015 = vmatprep.subr.bf16.mxu0 %v7417_v37 }
0x12cd   : > { %6017 = vmatpush3.bf16.msra.mxu0 %v6016_v60 }
0x12ce   : > { %6018 = vmatprep.subr.bf16.mxu0 %v7417_v37 }
0x12d1   : > { %6020 = vmatpush3.bf16.msra.mxu0 %v6019_v2  ;;  %v6076_v2 = vpack.c.bf16 %v4399_v0, %v4398_v62  ;;  %v4415_v62 = vld [vmem:[#allocation36 + $0x10] sm:$0xff]  ;;  %v4416_v0 = vld [vmem:[#allocation36 + $0x18] sm:$0xff] }
0x12d2   : > { %6021 = vmatprep.subr.bf16.mxu0 %v7417_v37 }
0x12d5   : > { %6023 = vmatpush3.bf16.msra.mxu0 %v6022_v4  ;;  %v6079_v4 = vpack.c.bf16 %v4401_v3, %v4400_v1  ;;  %v5173_v1 = vld [vmem:[#allocation35] ss:$0 sm:$0xff]  ;;  %v4417_v3 = vld [vmem:[#allocation36 + $0x20] sm:$0xff] }
0x12d6   : > { %6048 = vmatprep.subr.bf16.mxu0 %v7417_v37 }
0x134b   : > { %v4057_v43 = vpop.xlane.xlu0 %4056 }
0x134c   : > { %v4058_v44 = vmul.f32 0.0078125, %v4057_v43  ;;  %v4189_v43 = vld [vmem:[#allocation27 + $0x8] sm:$0xff] }
0x134e   : > { %v4059_v45 = vsub.f32 %v4051_v23, %v4058_v44  ;;  %v6037_v23 = vpack.c.bf16 %v4180_v33, %v4179_v32  ;;  %v6049_v44 = vpack.c.bf16 %v4189_v43, %v4188_v42  ;;  %v4197_v32 = vld [vmem:[#allocation27 + $0x48] sm:$0xff] }
0x134f   : > { %v6061_v33 = vpack.c.bf16 %v4197_v32, %v4196_v31 }
0x1350   : > { %v4060_v46 = vmul.f32 %v4059_v45, %v4059_v45  ;;  %6038 = vmatpush3.bf16.msra.mxu1 %v6037_v23  ;;  %v4198_v23 = vld [vmem:[#allocation27 + $0x50] sm:$0xff] }
0x1351   : > { %6039 = vmatprep.subr.bf16.mxu1 %v7417_v37  ;;  %v6064_v7 = vpack.c.bf16 %v4199_v6, %v4198_v23  ;;  %v5174_v23 = vld [vmem:[#allocation38] ss:$0 sm:$0xff] }
0x1352   : > { %v4061_v47 = vsel %vm4054_vm9, %v4060_v46, 0.0 }
0x1353   : > { %4062 = vadd.xlane.f32.xlu0 %v4061_v47 }
0x1354   : > { %6041 = vmatpush3.bf16.msra.mxu1 %v6040_v22  ;;  %v4200_v22 = vld [vmem:[#allocation27 + $0x60] sm:$0xff] }
0x1355   : > { %6042 = vmatprep.subr.bf16.mxu1 %v7417_v37  ;;  %v6067_v38 = vpack.c.bf16 %v4201_v34, %v4200_v22 }
0x1358   : > { %6044 = vmatpush3.bf16.msra.mxu1 %v6043_v39  ;;  %v4202_v39 = vld [vmem:[#allocation27 + $0x70] sm:$0xff] }
0x1359   : > { %6045 = vmatprep.subr.bf16.mxu1 %v7417_v37  ;;  %v6070_v40 = vpack.c.bf16 %v4203_v58, %v4202_v39 }
0x135c   : > { %6047 = vmatpush3.bf16.msra.mxu1 %v6046_v41  ;;  %v5169_v41 = vld [vmem:[#allocation26] ss:$0 sm:$0xff] }
0x135d   : > { %6072 = vmatprep.subr.bf16.mxu1 %v7417_v37 }
0x13e0   : > { %v4063_v8 = vpop.xlane.xlu0 %4062 }
0x13e1   : > { %v4064_v61 = vmul.f32 0.0078125, %v4063_v8  ;;  %v4402_v8 = vld [vmem:[#allocation33 + $0x30] sm:$0xff] }
0x13e3   : > { %v4065_v9 = vadd.f32 1e-05, %v4064_v61  ;;  %v4403_v61 = vld [vmem:[#allocation33 + $0x38] sm:$0xff] }
0x13e5   : > { %6518 = vrsqrt.f32 %v4065_v9  ;;  %v6082_v9 = vpack.c.bf16 %v4403_v61, %v4402_v8 }
0x13ef   : > { %v6519_v10 = vpop.eup %6518 }
0x13f0   : > { %v4067_v14 = vmul.f32 %v6519_v10, %v4059_v45  ;;  %v4404_v10 = vld [vmem:[#allocation33 + $0x40] sm:$0xff] }
0x13f2   : > { %v4074_v63 = vmul.f32 %v5165_v13, %v4067_v14  ;;  %v4405_v13 = vld [vmem:[#allocation33 + $0x48] sm:$0xff] }
0x13f3   : > { %v6085_v14 = vpack.c.bf16 %v4405_v13, %v4404_v10  ;;  %v4419_v13 = vld [vmem:[#allocation36 + $0x30] sm:$0xff] }
0x13f4   : > { %v4081_v16 = vadd.f32 %v5166_v15, %v4074_v63  ;;  %v4406_v15 = vld [vmem:[#allocation33 + $0x50] sm:$0xff]  ;;  %v4407_v63 = vld [vmem:[#allocation33 + $0x58] sm:$0xff] }
0x13f6   : > { %5598 = vmatmul.mubr.f32.vlgmr.msra.gmra.mrb[0].mxu0 %v4081_v16  ;;  %v6088_v16 = vpack.c.bf16 %v4407_v63, %v4406_v15 }
0x13f7   : > { %5667 = vmatprep.mubr.msk.f32.mxu0 %vm7418_vm10, %v7419_v59  ;;  %6050 = vmatpush3.bf16.msra.mxu0 %v6049_v44 }
0x13f8   : > { %6051 = vmatprep.subr.bf16.mxu0 %v7417_v37 }
0x14c9   : > { %v4164_v17 = vpop.f32.mrb[0].mxu0 }
0x14ca   : > { %4168 = vst [vmem:[#allocation39] sm:$0x3] %v4164_v17  ;;  %v5599_v18 = vpop.f32.mrb[1].mxu0  ;;  %v4205_v19 = vsel %vm4054_vm9, %v4164_v17, 0.0 }
0x14cb   : > { %4206 = vadd.xlane.f32.xlu1 %v4205_v19  ;;  %v4409_v18 = vld [vmem:[#allocation33 + $0x68] sm:$0xff] }
0x1558   : > { %v4207_v52 = vpop.xlane.xlu1 %4206 }
0x1559   : > { %v4208_v27 = vmul.f32 0.0078125, %v4207_v52  ;;  %v6052_v52 = vpack.c.bf16 %v4191_v36, %v4190_v53  ;;  %v4427_v36 = vld [vmem:[#allocation36 + $0x70] sm:$0xff] }
0x155b   : > { %v4209_v28 = vsub.f32 %v4164_v17, %v4208_v27  ;;  %v4408_v17 = vld [vmem:[#allocation33 + $0x60] sm:$0xff]  ;;  %6053 = vmatpush3.bf16.msra.mxu0 %v6052_v52 }
0x155c   : > { %v6091_v19 = vpack.c.bf16 %v4409_v18, %v4408_v17  ;;  %6054 = vmatprep.subr.bf16.mxu0 %v7417_v37  ;;  %v4192_v27 = vld [vmem:[#allocation27 + $0x20] sm:$0xff]  ;;  %v4422_v17 = vld [vmem:[#allocation36 + $0x48] sm:$0xff] }
0x155d   : > { %v4210_v29 = vmul.f32 %v4209_v28, %v4209_v28  ;;  %v4428_v52 = vld [vmem:[#allocation36 + $0x78] sm:$0xff] }
0x155f   : > { %v4211_v11 = vsel %vm4054_vm9, %v4210_v29, 0.0 }
0x1560   : > { %4212 = vadd.xlane.f32.xlu1 %v4211_v11  ;;  %v4194_v11 = vld [vmem:[#allocation27 + $0x30] sm:$0xff] }
0x1561   : > { %v6058_v30 = vpack.c.bf16 %v4195_v5, %v4194_v11 }
0x15ed   : > { %v4213_v45 = vpop.xlane.xlu1 %4212 }
0x15ee   : > { %v4214_v46 = vmul.f32 0.0078125, %v4213_v45 }
0x15f0   : > { %v4215_v47 = vadd.f32 1e-05, %v4214_v46 }
0x15f2   : > { %6520 = vrsqrt.f32 %v4215_v47 }
0x15fc   : > { %v6521_v48 = vpop.eup %6520 }
0x15fd   : > { %v4217_v35 = vmul.f32 %v6521_v48, %v4209_v28  ;;  %v4193_v28 = vld [vmem:[#allocation27 + $0x28] sm:$0xff] }
0x15fe   : > { %v6055_v29 = vpack.c.bf16 %v4193_v28, %v4192_v27  ;;  %v6118_v27 = vpack.c.bf16 %v4428_v52, %v4427_v36 }
0x15ff   : > { %v4224_v56 = vmul.f32 %v5167_v49, %v4217_v35  ;;  %v4436_v26 = vmul.f32 %v5171_v21, %v4217_v35  ;;  %v4413_v35 = vld [vmem:[#allocation36] sm:$0xff]  ;;  %v4424_v21 = vld [vmem:[#allocation36 + $0x58] sm:$0xff] }
0x1600   : > { %6056 = vmatpush3.bf16.msra.mxu0 %v6055_v29 }
0x1601   : > { %v4231_v60 = vadd.f32 %v5168_v55, %v4224_v56  ;;  %v4443_v12 = vadd.f32 %v5172_v50, %v4436_v26  ;;  %6057 = vmatprep.subr.bf16.mxu0 %v7417_v37  ;;  %v6112_v26 = vpack.c.bf16 %v4424_v21, %v4423_v20  ;;  %v4425_v50 = vld [vmem:[#allocation36 + $0x60] sm:$0xff] }
0x1603   : > { %5633 = vmatmul.mubr.f32.vlgmr.msra.gmra.mrb[0].mxu1 %v4231_v60 }
0x1604   : > { %6074 = vmatpush3.bf16.msra.mxu1 %v6073_v57  ;;  %5702 = vmatprep.mubr.msk.f32.mxu1 %vm7418_vm10, %v7419_v59  ;;  %v6097_v57 = vpack.c.bf16 %v4414_v51, %v4413_v35 }
0x1605   : > { %6075 = vmatprep.subr.bf16.mxu1 %v7417_v37  ;;  %6059 = vmatpush3.bf16.msra.mxu0 %v6058_v30  ;;  %v5170_v30 = vld [vmem:[#allocation29] ss:$0 sm:$0xff] }
0x1606   : > { %6060 = vmatprep.subr.bf16.mxu0 %v7417_v37 }
0x1608   : > { %6077 = vmatpush3.bf16.msra.mxu1 %v6076_v2  ;;  %v6100_v2 = vpack.c.bf16 %v4416_v0, %v4415_v62 }
0x1609   : > { %6078 = vmatprep.subr.bf16.mxu1 %v7417_v37  ;;  %6062 = vmatpush3.bf16.msra.mxu0 %v6061_v33 }
0x160a   : > { %6063 = vmatprep.subr.bf16.mxu0 %v7417_v37 }
0x160c   : > { %6080 = vmatpush3.bf16.msra.mxu1 %v6079_v4  ;;  %v4418_v4 = vld [vmem:[#allocation36 + $0x28] sm:$0xff] }
0x160d   : > { %6081 = vmatprep.subr.bf16.mxu1 %v7417_v37  ;;  %6065 = vmatpush3.bf16.msra.mxu0 %v6064_v7  ;;  %v6103_v10 = vpack.c.bf16 %v4418_v4, %v4417_v3 }
0x160e   : > { %6066 = vmatprep.subr.bf16.mxu0 %v7417_v37 }
0x1610   : > { %6083 = vmatpush3.bf16.msra.mxu1 %v6082_v9 }
0x1611   : > { %6084 = vmatprep.subr.bf16.mxu1 %v7417_v37  ;;  %6068 = vmatpush3.bf16.msra.mxu0 %v6067_v38 }
0x1612   : > { %6069 = vmatprep.subr.bf16.mxu0 %v7417_v37 }
0x1614   : > { %6086 = vmatpush3.bf16.msra.mxu1 %v6085_v14  ;;  %v4420_v14 = vld [vmem:[#allocation36 + $0x38] sm:$0xff] }
0x1615   : > { %6087 = vmatprep.subr.bf16.mxu1 %v7417_v37  ;;  %6071 = vmatpush3.bf16.msra.mxu0 %v6070_v40 }
0x1616   : > { %6096 = vmatprep.subr.bf16.mxu0 %v7417_v37 }
0x1618   : > { %6089 = vmatpush3.bf16.msra.mxu1 %v6088_v16  ;;  %v6106_v16 = vpack.c.bf16 %v4420_v14, %v4419_v13 }
0x1619   : > { %6090 = vmatprep.subr.bf16.mxu1 %v7417_v37 }
0x161c   : > { %6092 = vmatpush3.bf16.msra.mxu1 %v6091_v19 }
0x161d   : > { %6093 = vmatprep.subr.bf16.mxu1 %v7417_v37 }
0x1620   : > { %6095 = vmatpush3.bf16.msra.mxu1 %v6094_v25 }
0x1623   : > { %5703 = vmatmul.mubr.f32.vlgmr.msra.gmra.mrb[2].mxu1 %v4443_v12  ;;  %v4426_v12 = vld [vmem:[#allocation36 + $0x68] sm:$0xff] }
0x1624   : > { %v6115_v53 = vpack.c.bf16 %v4426_v12, %v4425_v50 }
0x16d6   : > { %v4304_v42 = vpop.f32.mrb[0].mxu1 }
0x16d7   : > { %v4305_v43 = vadd.f32 %v5169_v41, %v4304_v42  ;;  %v5634_v44 = vpop.f32.mrb[1].mxu1 }
0x16d9   : > { %v4309_v45 = vmul.f32 0.044715, %v4305_v43  ;;  %v4308_v55 = vmul.f32 0.5, %v4305_v43 }
0x16db   : > { %v4310_v46 = vmul.f32 %v4309_v45, %v4305_v43 }
0x16dd   : > { %v4311_v47 = vmul.f32 %v4310_v46, %v4305_v43 }
0x16df   : > { %v4312_v48 = vadd.f32 %v4311_v47, %v4305_v43 }
0x16e1   : > { %v4313_v49 = vmul.f32 0.7978846, %v4312_v48 }
0x16e3   : > { %6522 = vtanh.f32 %v4313_v49 }
0x16ed   : > { %v6523_v54 = vpop.eup %6522 }
0x16ee   : > { %v4315_v56 = vadd.f32 1.0, %v6523_v54 }
0x16f0   : > { %v4316_v60 = vmul.f32 %v4315_v56, %v4308_v55 }
0x16f2   : > { %5668 = vmatmul.mubr.f32.vlgmr.msra.gmra.mrb[2].mxu0 %v4316_v60 }
0x16f3   : > { %6098 = vmatpush3.bf16.msra.mxu0 %v6097_v57  ;;  %5737 = vmatprep.mubr.msk.f32.mxu0 %vm7418_vm10, %v7419_v59  ;;  %v4421_v59 = vld [vmem:[#allocation36 + $0x40] sm:$0xff] }
0x16f4   : > { %6099 = vmatprep.subr.bf16.mxu0 %v7417_v37  ;;  %v6109_v24 = vpack.c.bf16 %v4422_v17, %v4421_v59 }
0x16f6   : > { %v4516_v8 = vpop.f32.mrb[2].mxu1 }
0x16f7   : > { %v4517_v61 = vadd.f32 %v5173_v1, %v4516_v8  ;;  %v5704_v9 = vpop.f32.mrb[3].mxu1  ;;  %6101 = vmatpush3.bf16.msra.mxu0 %v6100_v2 }
0x16f8   : > { %6102 = vmatprep.subr.bf16.mxu0 %v7417_v37 }
0x16f9   : > { %v4521_v15 = vmul.f32 0.044715, %v4517_v61  ;;  %v4520_v29 = vmul.f32 0.5, %v4517_v61 }
0x16fb   : > { %v4522_v63 = vmul.f32 %v4521_v15, %v4517_v61  ;;  %6104 = vmatpush3.bf16.msra.mxu0 %v6103_v10 }
0x16fc   : > { %6105 = vmatprep.subr.bf16.mxu0 %v7417_v37 }
0x16fd   : > { %v4523_v18 = vmul.f32 %v4522_v63, %v4517_v61 }
0x16ff   : > { %v4524_v19 = vadd.f32 %v4523_v18, %v4517_v61  ;;  %6107 = vmatpush3.bf16.msra.mxu0 %v6106_v16 }
0x1700   : > { %6108 = vmatprep.subr.bf16.mxu0 %v7417_v37 }
0x1701   : > { %v4525_v25 = vmul.f32 0.7978846, %v4524_v19 }
0x1703   : > { %6110 = vmatpush3.bf16.msra.mxu0 %v6109_v24  ;;  %6524 = vtanh.f32 %v4525_v25 }
0x1704   : > { %6111 = vmatprep.subr.bf16.mxu0 %v7417_v37 }
0x1707   : > { %6113 = vmatpush3.bf16.msra.mxu0 %v6112_v26 }
0x1708   : > { %6114 = vmatprep.subr.bf16.mxu0 %v7417_v37 }
0x170b   : > { %6116 = vmatpush3.bf16.msra.mxu0 %v6115_v53 }
0x170c   : > { %6117 = vmatprep.subr.bf16.mxu0 %v7417_v37 }
0x170d   : > { %v6525_v28 = vpop.eup %6524 }
0x170e   : > { %v4527_v11 = vadd.f32 1.0, %v6525_v28 }
0x170f   : > { %6119 = vmatpush3.bf16.msra.mxu0 %v6118_v27 }
0x1710   : > { %v4528_v5 = vmul.f32 %v4527_v11, %v4520_v29 }
0x1712   : > { %5738 = vmatmul.mubr.f32.vlgmr.msra.gmra.mrb[4].mxu0 %v4528_v5 }
0x17c5   : > { %v4389_v31 = vpop.f32.mrb[2].mxu0 }
0x17c6   : > { %v4390_v32 = vadd.f32 %v5170_v30, %v4389_v31  ;;  %v5669_v33 = vpop.f32.mrb[3].mxu0 }
0x17c8   : > { %4393 = vst [vmem:[#allocation40] sm:$0x3] %v4390_v32 }
0x17e5   : > { %v4601_v6 = vpop.f32.mrb[4].mxu0 }
0x17e6   : > { %v4602_v7 = vadd.f32 %v5174_v23, %v4601_v6  ;;  %v5739_v22 = vpop.f32.mrb[5].mxu0 }
0x17e8   : > { %4605 = vst [vmem:[#allocation42] sm:$0x3] %v4602_v7 }
0x17e9 PF: > { %p6320_p11 = scmp.eq.s32.totalorder %s7634_s11, 1  ;;  %s7420_s7 = smov [#allocation40]  }
0x17ea   : > { %s4624_s15 = sshll.u32 %s7420_s7, 4  ;;  %s7421_s23 = smov [#allocation39]   ;;  %s4625_s15 = int_to_ptr.vmem [resolvable:$true] %s4624_s15 }
0x17eb   : > { %s4613_s9 = sshll.u32 %s7421_s23, 4  ;;  %s7182_s30 = scalar_lea.vmem %s4625_s15, 32  ;;  %s4614_s9 = int_to_ptr.vmem [resolvable:$true] %s4613_s9 }
0x17ec   : > { %p7183_p7 = scmp.ne.s32.totalorder %s4625_s15, %s7182_s30  ;;  %p7189_p3 = scmp.lt.s32.totalorder %s4625_s15, %s4625_s15 }
0x17ed   : > { %p7190_p12 = scmp.lt.s32.totalorder %s7182_s30, %s7182_s30 }
0x17ee   : > { %p7184_p4 = pnand %p7183_p7, %p6320_p11 }
0x17ef   : > { %p7191_p1 = por %p7190_p12, %p7189_p3 }
0x17f0   : > { %p7185_p0 = pneg %p7184_p4 }
0x17f2   : > { %p7192_p5 = pnand %p7191_p1, %p7185_p0 }
0x17f4   : > { %7195 = shalt.err (!%p7192_p5)
}
0x17f5   : > { %s7196_s28 = scalar_lea.hbm %s7606_s8, 32 }
0x17f6   : > { %p7197_p2 = scmp.ne.s32.totalorder %s7606_s8, %s7196_s28  ;;  %p7202_p9 = scmp.lt.u32.totalorder %s7196_s28, %s7606_s8 }
0x17f8   : > { %p7198_p10 = pnand %p7197_p2, %p6320_p11 }
0x17fa   : > { %p7199_p6 = pneg %p7198_p10 }
0x17fc   : > { %p7204_p8 = pnand %p7202_p9, %p7199_p6 }
0x17fe   : > { %7207 = shalt.err (!%p7204_p8)
}
0x17ff   : > { %6205 = dma.vmem_to_hbm [thread:$0]  (%p6320_p11), %s4625_s15, 32, %s7606_s8, [#allocation41]  }
0x1800   : > { %s7208_s26 = scalar_lea.vmem %s4614_s9, 32  ;;  %p7215_p0 = scmp.lt.s32.totalorder %s4614_s9, %s4614_s9 }
0x1801   : > { %p7209_p13 = scmp.ne.s32.totalorder %s4614_s9, %s7208_s26  ;;  %p7216_p3 = scmp.lt.s32.totalorder %s7208_s26, %s7208_s26 }
0x1803   : > { %p7210_p7 = pnand %p7209_p13, %p6320_p11  ;;  %p7217_p12 = por %p7216_p3, %p7215_p0 }
0x1805   : > { %p7211_p4 = pneg %p7210_p7 }
0x1807   : > { %p7218_p1 = pnand %p7217_p12, %p7211_p4 }
0x1809   : > { %7221 = shalt.err (!%p7218_p1)
}
0x180a   : > { %s8887_s5 = sld [smem:[#allocation88_spill]] }
0x1810   : > { %s7222_s18 = scalar_lea.hbm %s8887_s5, 32 }
0x1811   : > { %p7223_p5 = scmp.ne.s32.totalorder %s8887_s5, %s7222_s18  ;;  %p7228_p6 = scmp.lt.u32.totalorder %s7222_s18, %s8887_s5 }
0x1813   : > { %p7224_p2 = pnand %p7223_p5, %p6320_p11 }
0x1815   : > { %p7225_p10 = pneg %p7224_p2 }
0x1817   : > { %p7230_p9 = pnand %p7228_p6, %p7225_p10 }
0x1819   : > { %7233 = shalt.err (!%p7230_p9)
}
0x181a   : > { %6203 = dma.vmem_to_hbm [thread:$0]  (%p6320_p11), %s4614_s9, 32, %s8887_s5, [#allocation5]  }
0x181b   : > { %s7422_s17 = smov [#allocation42]  }
0x181c   : > { %s4635_s2 = sshll.u32 %s7422_s17, 4  ;;  %s4636_s2 = int_to_ptr.vmem [resolvable:$true] %s4635_s2 }
0x181d   : > { %s7234_s13 = scalar_lea.vmem %s4636_s2, 32  ;;  %p7241_p4 = scmp.lt.s32.totalorder %s4636_s2, %s4636_s2 }
0x181e   : > { %p7235_p8 = scmp.ne.s32.totalorder %s4636_s2, %s7234_s13  ;;  %p7242_p0 = scmp.lt.s32.totalorder %s7234_s13, %s7234_s13 }
0x1820   : > { %p7236_p13 = pnand %p7235_p8, %p6320_p11  ;;  %p7243_p3 = por %p7242_p0, %p7241_p4 }
0x1822   : > { %p7237_p7 = pneg %p7236_p13 }
0x1824   : > { %p7244_p12 = pnand %p7243_p3, %p7237_p7 }
0x1826   : > { %7247 = shalt.err (!%p7244_p12)
}
0x1827   : > { %s8888_s16 = sld [smem:[#allocation89_spill]] }
0x182d   : > { %s7248_s25 = scalar_lea.hbm %s8888_s16, 32 }
0x182e   : > { %p7249_p1 = scmp.ne.s32.totalorder %s8888_s16, %s7248_s25  ;;  %p7254_p10 = scmp.lt.u32.totalorder %s7248_s25, %s8888_s16 }
0x1830   : > { %p7250_p5 = pnand %p7249_p1, %p6320_p11 }
0x1832   : > { %p7251_p2 = pneg %p7250_p5 }
0x1834   : > { %p7256_p6 = pnand %p7254_p10, %p7251_p2 }
0x1836   : > { %7259 = shalt.err (!%p7256_p6)
}
0x1837   : > { %6207 = dma.vmem_to_hbm [thread:$0]  (%p6320_p11), %s4636_s2, 32, %s8888_s16, [#allocation41]  }
0x1838   : > { %7325 = dma.done.wait (%p6320_p11), [#allocation5], 32  }
0x1839   : > { %7327 = vsyncadd (%p6320_p11), [#allocation5], 4294967264 }
0x183a   : > { %7329 = dma.done.wait (%p6320_p11), [#allocation41], 64  }
0x183b   : > { %7331 = vsyncadd (%p6320_p11), [#allocation41], 4294967232 }
0x183c PF: > { %s8889_s2 = sld [smem:[#allocation91_spill]]  ;;  %s8890_s6 = sld [smem:[#allocation90_spill]] }
0x183d   : > { %s8891_s1 = sld [smem:[#allocation92_spill]]  ;;  %s8892_s28 = smov %s7338_s0 }
0x1842   : > { %p101_p9 = scmp.ge.s32.totalorder %s8889_s2, 4   ;;  %s8893_s0 = smov %s8890_s6 }
0x1844   :  { %103 = sbr.rel (!%p101_p9) target bundleno = 92 (0x5c), region = 399 }
0x184b   :  { %4656 = vsyncpa [#allocation4], 1 }
0x184c   :  { %4658 = vsyncpa [#allocation4 + $0x1], 1 }
0x184d   :  { %4659 = vsyncpa [#allocation7], 1 }
0x184e   :  { %4660 = vsyncpa [#allocation10], 1 }
0x184f   :  { %4662 = vsyncpa [#allocation10 + $0x1], 1 }
0x1850   :  { %4663 = vsyncpa [#allocation13], 1 }
0x1851   :  { %4665 = vsyncpa [#allocation13 + $0x1], 1 }
0x1852   :  { %4666 = vsyncpa [#allocation16], 1 }
0x1853   :  { %4668 = vsyncpa [#allocation16 + $0x1], 1 }
0x1854   :  { %4669 = vsyncpa [#allocation19], 1 }
0x1855   :  { %4670 = vsyncpa [#allocation22], 1 }
0x1856   :  { %4671 = vsyncpa [#allocation25], 1 }
0x1857   :  { %4672 = vsyncpa [#allocation28], 1 }
0x1858   :  { %4673 = vsyncpa [#allocation31], 1 }
0x1859   :  { %4674 = vsyncpa [#allocation34], 1 }
0x185a   :  { %4675 = vsyncpa [#allocation37], 1 }
0x185b   :  { %4676 = vsyncpa [#allocation5], 1 }
0x185c   :  { %4678 = vsyncpa [#allocation5 + $0x1], 1 }
0x185d   :  { %4679 = vsyncpa [#allocation41], 1 }

</bundles_post_ra>
